<compile_context>
chip_gen: v6e
topology: v6e:2x2x1
jax: 0.10.0
libtpu: 0.0.40
codegen_flags: <defaults>
</compile_context>

<pallas_src>
import math

import jax
import jax.numpy as jnp
from jax.experimental import pallas as pl
from jax.experimental.pallas import tpu as pltpu

# ---- small synthetic XLM-R-like config -------------------------------------
VOCAB = 128            # vocab size
HID = 128              # hidden size (lane-dense)
NH = 2                 # attention heads
DH = HID // NH         # head dim (64)
FFN = 256              # intermediate size
LAYERS = 2             # encoder layers
SEQ = 8                # sequence length (last position is the <mask> token)
SEQ_LOG2 = 3           # SEQ == 1 << SEQ_LOG2
MASK_ID = VOCAB - 1    # synthetic mask_token_id
TOP_K = 3
OUT_W = 128            # lane-dense output width (top-k packed into first TOP_K lanes)
LN_EPS = 1e-5
ATTN_SCALE = 1.0 / math.sqrt(DH)

assert SEQ == (1 << SEQ_LOG2)


# ---------------------------------------------------------------------------
# In-kernel helpers
# ---------------------------------------------------------------------------
def _layernorm(x, g, b):
    mu = jnp.mean(x, axis=-1, keepdims=True)
    var = jnp.mean((x - mu) * (x - mu), axis=-1, keepdims=True)
    return (x - mu) * jax.lax.rsqrt(var + LN_EPS) * g + b


def _qkv_idx(l, which, hh):      # which: 0=Q, 1=K, 2=V ; head axis is major
    return (l * 3 + which) * NH + hh


def _wo_idx(l, hh):
    return l * NH + hh


# ---------------------------------------------------------------------------
# Fused forward kernel: the whole batch in one invocation (no grid)
# ---------------------------------------------------------------------------
def _fused_forward_kernel(
    ids_ref, tgt_ref,                      # (BS,1) int32 token ids, (B,1) int32 global mask rows
    word_emb_ref, pos_emb_ref,             # (VOCAB,HID) f32, (SEQ,HID) f32
    emb_ln_g_ref, emb_ln_b_ref,            # (1,HID) f32
    wqkv_ref, bqkv_ref,                    # (L*3*NH, HID, DH) bf16, (L*3*NH, 1, DH) f32
    wo_ref, bo_ref,                        # (L*NH, DH, HID) bf16, (L, 1, HID) f32
    ln1_g_ref, ln1_b_ref,                  # (L, 1, HID) f32
    w1_ref, b1_ref,                        # (L, HID, FFN) bf16, (L, 1, FFN) f32
    w2_ref, b2_ref,                        # (L, FFN, HID) bf16, (L, 1, HID) f32
    ln2_g_ref, ln2_b_ref,                  # (L, 1, HID) f32
    head_w_ref, head_b_ref,                # (HID,HID) bf16, (1,HID) f32
    head_ln_g_ref, head_ln_b_ref,          # (1,HID) f32
    dec_w_ref, dec_b_ref,                  # (HID,VOCAB) bf16, (1,VOCAB) f32
    vals_ref, idx_ref,                     # (B, OUT_W) f32 / int32
):
    BS = ids_ref.shape[0]                  # B*SEQ (static)
    B = tgt_ref.shape[0]

    # --- in-kernel embedding lookup: one-hot matmul over VOCAB (exact) ---
    ids = ids_ref[...]                                               # (BS,1) int32
    vlane = jax.lax.broadcasted_iota(jnp.int32, (BS, VOCAB), 1)
    tok_onehot = (vlane == ids).astype(jnp.float32)                  # (BS,VOCAB)
    x = jnp.dot(tok_onehot, word_emb_ref[...],
                preferred_element_type=jnp.float32)                  # (BS,HID)
    # position embeddings: tile (SEQ,HID) along the (major) row axis, one copy per sequence
    x = x + jnp.concatenate([pos_emb_ref[...]] * B, axis=0)

    # --- embedding LayerNorm ---
    h = _layernorm(x, emb_ln_g_ref[...], emb_ln_b_ref[...])          # (BS,HID) f32

    # --- block-diagonal attention bias: rows of different sequences never attend ---
    r2 = jax.lax.broadcasted_iota(jnp.int32, (BS, BS), 0)
    c2 = jax.lax.broadcasted_iota(jnp.int32, (BS, BS), 1)
    same_seq = (r2 >> SEQ_LOG2) == (c2 >> SEQ_LOG2)                  # (BS,BS) bool

    # --- encoder layers (LAYERS=2: unrolled; everything stays on-chip) ---
    for l in range(LAYERS):
        h_bf = h.astype(jnp.bfloat16)                                # one cast feeds 3*NH matmuls
        attn = jnp.zeros((BS, HID), jnp.float32)
        for hh in range(NH):
            q = jnp.dot(h_bf, wqkv_ref[_qkv_idx(l, 0, hh)],
                        preferred_element_type=jnp.float32) + bqkv_ref[_qkv_idx(l, 0, hh)]
            k = jnp.dot(h_bf, wqkv_ref[_qkv_idx(l, 1, hh)],
                        preferred_element_type=jnp.float32) + bqkv_ref[_qkv_idx(l, 1, hh)]
            v = jnp.dot(h_bf, wqkv_ref[_qkv_idx(l, 2, hh)],
                        preferred_element_type=jnp.float32) + bqkv_ref[_qkv_idx(l, 2, hh)]
            s = jax.lax.dot_general(
                q.astype(jnp.bfloat16), k.astype(jnp.bfloat16),
                (((1,), (1,)), ((), ())),
                preferred_element_type=jnp.float32) * ATTN_SCALE      # (BS,BS)
            s = jnp.where(same_seq, s, -1e30)
            s = s - jnp.max(s, axis=-1, keepdims=True)
            p = jnp.exp(s)
            p = p / jnp.sum(p, axis=-1, keepdims=True)                # exact normalizer
            ctx = jnp.dot(p.astype(jnp.bfloat16), v.astype(jnp.bfloat16),
                          preferred_element_type=jnp.float32)         # (BS,DH)
            # per-head output projection accumulation (no concat of head outputs)
            attn = attn + jnp.dot(ctx.astype(jnp.bfloat16), wo_ref[_wo_idx(l, hh)],
                                  preferred_element_type=jnp.float32)
        attn = attn + bo_ref[l]
        h = _layernorm(attn + h, ln1_g_ref[l], ln1_b_ref[l])

        h_bf = h.astype(jnp.bfloat16)
        # TODO(synk): HF XLM-R uses exact erf-GELU; tanh approximation kept (synthetic weights).
        ffn = jax.nn.gelu(jnp.dot(h_bf, w1_ref[l],
                                  preferred_element_type=jnp.float32) + b1_ref[l],
                          approximate=True)
        ffn = jnp.dot(ffn.astype(jnp.bfloat16), w2_ref[l],
                      preferred_element_type=jnp.float32) + b2_ref[l]
        h = _layernorm(ffn + h, ln2_g_ref[l], ln2_b_ref[l])

    # --- select the mask rows (one-hot selector matmul; exact) ---
    tgt = tgt_ref[...]                                                # (B,1) global row ids
    rsel = jax.lax.broadcasted_iota(jnp.int32, (B, BS), 1)
    sel = (rsel == tgt).astype(jnp.float32)                           # (B,BS)
    hm = jnp.dot(sel, h, preferred_element_type=jnp.float32)          # (B,HID)

    # --- LM head only at the mask rows ---
    t = jax.nn.gelu(jnp.dot(hm.astype(jnp.bfloat16), head_w_ref[...],
                            preferred_element_type=jnp.float32) + head_b_ref[...],
                    approximate=True)
    t = _layernorm(t, head_ln_g_ref[...], head_ln_b_ref[...])
    logits = jnp.dot(t.astype(jnp.bfloat16), dec_w_ref[...],
                     preferred_element_type=jnp.float32) + dec_b_ref[...]   # (B,VOCAB)

    # --- fused top-k (iterative argmax; k tiny and static); lane-dense outputs ---
    lane = jax.lax.broadcasted_iota(jnp.int32, (B, VOCAB), 1)
    out_lane = jax.lax.broadcasted_iota(jnp.int32, (B, OUT_W), 1)
    vals = jnp.zeros((B, OUT_W), jnp.float32)
    idxs = jnp.zeros((B, OUT_W), jnp.int32)
    x = logits
    for j in range(TOP_K):
        m = jnp.max(x, axis=-1, keepdims=True)
        am = jnp.min(jnp.where(x == m, lane, VOCAB), axis=-1, keepdims=True)
        vals = jnp.where(out_lane == j, m, vals)
        idxs = jnp.where(out_lane == j, am, idxs)
        x = jnp.where(lane == am, -jnp.inf, x)
    vals_ref[...] = vals
    idx_ref[...] = idxs


# ---------------------------------------------------------------------------
# Parameters (synthetic, deterministic).  Head axis stored MAJOR for Q/K/V/Wo.
# ---------------------------------------------------------------------------
def init_params(key):
    def nrm(k, shape, scale=0.02):
        return scale * jax.random.normal(k, shape, jnp.float32)

    keys = iter(jax.random.split(key, 16))
    word_emb = nrm(next(keys), (VOCAB, HID))
    return {
        "word_emb": word_emb,                                      # f32, exact one-hot gather
        "pos_emb": nrm(next(keys), (SEQ, HID)),
        "emb_ln_g": jnp.ones((1, HID), jnp.float32),
        "emb_ln_b": jnp.zeros((1, HID), jnp.float32),
        # per-(layer, q/k/v, head) projection weights, head axis major; bf16 for the MXU
        "wqkv": nrm(next(keys), (LAYERS * 3 * NH, HID, DH)).astype(jnp.bfloat16),
        "bqkv": jnp.zeros((LAYERS * 3 * NH, 1, DH), jnp.float32),
        "wo": nrm(next(keys), (LAYERS * NH, DH, HID)).astype(jnp.bfloat16),
        "bo": jnp.zeros((LAYERS, 1, HID), jnp.float32),
        "ln1_g": jnp.ones((LAYERS, 1, HID), jnp.float32),
        "ln1_b": jnp.zeros((LAYERS, 1, HID), jnp.float32),
        "w1": nrm(next(keys), (LAYERS, HID, FFN)).astype(jnp.bfloat16),
        "b1": jnp.zeros((LAYERS, 1, FFN), jnp.float32),
        "w2": nrm(next(keys), (LAYERS, FFN, HID)).astype(jnp.bfloat16),
        "b2": jnp.zeros((LAYERS, 1, HID), jnp.float32),
        "ln2_g": jnp.ones((LAYERS, 1, HID), jnp.float32),
        "ln2_b": jnp.zeros((LAYERS, 1, HID), jnp.float32),
        "head_w": nrm(next(keys), (HID, HID)).astype(jnp.bfloat16),
        "head_b": jnp.zeros((1, HID), jnp.float32),
        "head_ln_g": jnp.ones((1, HID), jnp.float32),
        "head_ln_b": jnp.zeros((1, HID), jnp.float32),
        "dec_w": word_emb.T.astype(jnp.bfloat16),                  # tied LM-head decoder
        "dec_b": jnp.zeros((1, VOCAB), jnp.float32),
    }


# ---------------------------------------------------------------------------
# Forward: one grid-less fused pallas_call for the whole batch
# ---------------------------------------------------------------------------
@jax.jit
def forward(params, batch_ids):
    """(B, SEQ) token ids -> (top_k values (B, K), top_k indices (B, K))."""
    B, S = batch_ids.shape
    BS = B * S
    # first mask position per sequence (matches torch: first index where id == mask_id),
    # converted to a global row index in the batch-folded activation matrix
    mask_pos = jnp.argmax(batch_ids == MASK_ID, axis=1).astype(jnp.int32)      # (B,)
    tgt = (jnp.arange(B, dtype=jnp.int32) * SEQ + mask_pos).reshape(B, 1)      # (B,1)
    ids = batch_ids.reshape(BS, 1).astype(jnp.int32)                           # (BS,1)

    args = (
        ids, tgt,
        params["word_emb"], params["pos_emb"],
        params["emb_ln_g"], params["emb_ln_b"],
        params["wqkv"], params["bqkv"],
        params["wo"], params["bo"],
        params["ln1_g"], params["ln1_b"],
        params["w1"], params["b1"],
        params["w2"], params["b2"],
        params["ln2_g"], params["ln2_b"],
        params["head_w"], params["head_b"],
        params["head_ln_g"], params["head_ln_b"],
        params["dec_w"], params["dec_b"],
    )
    vmem_spec = pl.BlockSpec(memory_space=pltpu.MemorySpace.VMEM)   # whole array, resident

    vals, idxs = pl.pallas_call(
        _fused_forward_kernel,
        out_shape=(
            jax.ShapeDtypeStruct((B, OUT_W), jnp.float32),
            jax.ShapeDtypeStruct((B, OUT_W), jnp.int32),
        ),
        in_specs=[vmem_spec] * len(args),
        out_specs=(vmem_spec, vmem_spec),
    )(*args)
    # top-k packed in the first TOP_K lanes of the lane-dense output slabs
    return vals[:, :TOP_K], idxs[:, :TOP_K]


if __name__ == "__main__":
    key = jax.random.PRNGKey(0)
    pkey, dkey = jax.random.split(key)
    params = init_params(pkey)

    B = 2
    ids = jax.random.randint(dkey, (B, SEQ), 3, VOCAB - 1, dtype=jnp.int32)
    ids = ids.at[:, -1].set(MASK_ID)   # "x + tokenizer.mask_token" -> mask at the end

    topk_vals, topk_idx = forward(params, ids)
    jax.block_until_ready((topk_vals, topk_idx))
    assert topk_vals.shape == (B, TOP_K) and topk_idx.shape == (B, TOP_K)
    print("KERNEL_OK")
</pallas_src>

<mosaic_0001>
module attributes {stable_mosaic.version = 11 : i64} {
  func.func @_fused_forward_kernel(%arg0: memref<16x1xi32, #tpu.memory_space<vmem>>, %arg1: memref<2x1xi32, #tpu.memory_space<vmem>>, %arg2: memref<128x128xf32, #tpu.memory_space<vmem>>, %arg3: memref<8x128xf32, #tpu.memory_space<vmem>>, %arg4: memref<1x128xf32, #tpu.memory_space<vmem>>, %arg5: memref<1x128xf32, #tpu.memory_space<vmem>>, %arg6: memref<12x128x64xbf16, #tpu.memory_space<vmem>>, %arg7: memref<12x1x64xf32, #tpu.memory_space<vmem>>, %arg8: memref<4x64x128xbf16, #tpu.memory_space<vmem>>, %arg9: memref<2x1x128xf32, #tpu.memory_space<vmem>>, %arg10: memref<2x1x128xf32, #tpu.memory_space<vmem>>, %arg11: memref<2x1x128xf32, #tpu.memory_space<vmem>>, %arg12: memref<2x128x256xbf16, #tpu.memory_space<vmem>>, %arg13: memref<2x1x256xf32, #tpu.memory_space<vmem>>, %arg14: memref<2x256x128xbf16, #tpu.memory_space<vmem>>, %arg15: memref<2x1x128xf32, #tpu.memory_space<vmem>>, %arg16: memref<2x1x128xf32, #tpu.memory_space<vmem>>, %arg17: memref<2x1x128xf32, #tpu.memory_space<vmem>>, %arg18: memref<128x128xbf16, #tpu.memory_space<vmem>>, %arg19: memref<1x128xf32, #tpu.memory_space<vmem>>, %arg20: memref<1x128xf32, #tpu.memory_space<vmem>>, %arg21: memref<1x128xf32, #tpu.memory_space<vmem>>, %arg22: memref<128x128xbf16, #tpu.memory_space<vmem>>, %arg23: memref<1x128xf32, #tpu.memory_space<vmem>>, %arg24: memref<2x128xf32, #tpu.memory_space<vmem>>, %arg25: memref<2x128xi32, #tpu.memory_space<vmem>>) attributes {dimension_semantics = [], scalar_prefetch = 0 : i64, scratch_operands = 0 : i64, tpu.core_type = #tpu.core_type<tc>} {
    %c0 = arith.constant 0 : index
    %c0_0 = arith.constant 0 : index
    %0 = vector.load %arg0[%c0, %c0_0] : memref<16x1xi32, #tpu.memory_space<vmem>>, vector<16x1xi32>
    %1 = tpu.iota {dimensions = array<i32: 1>} : vector<16x128xi32>
    %2 = vector.broadcast %0 : vector<16x1xi32> to vector<16x128xi32>
    %3 = arith.cmpi eq, %1, %2 : vector<16x128xi32>
    %4 = arith.extui %3 : vector<16x128xi1> to vector<16x128xi32>
    %5 = arith.sitofp %4 : vector<16x128xi32> to vector<16x128xf32>
    %c0_1 = arith.constant 0 : index
    %c0_2 = arith.constant 0 : index
    %6 = vector.load %arg2[%c0_1, %c0_2] : memref<128x128xf32, #tpu.memory_space<vmem>>, vector<128x128xf32>
    %cst = arith.constant dense<0.000000e+00> : vector<16x128xf32>
    %7 = tpu.matmul %5, %6, %cst {dimension_numbers = #tpu.dot_dimension_numbers<[1], [0], [0], [1], [0, 0, 1, 1], [], []>} : vector<16x128xf32>, vector<128x128xf32>, vector<16x128xf32> -> vector<16x128xf32>
    %c0_3 = arith.constant 0 : index
    %c0_4 = arith.constant 0 : index
    %8 = vector.load %arg3[%c0_3, %c0_4] : memref<8x128xf32, #tpu.memory_space<vmem>>, vector<8x128xf32>
    %9 = tpu.concatenate %8, %8 in 0 : vector<8x128xf32>, vector<8x128xf32> -> vector<16x128xf32>
    %10 = arith.addf %7, %9 : vector<16x128xf32>
    %c0_5 = arith.constant 0 : index
    %c0_6 = arith.constant 0 : index
    %11 = vector.load %arg4[%c0_5, %c0_6] : memref<1x128xf32, #tpu.memory_space<vmem>>, vector<1x128xf32>
    %c0_7 = arith.constant 0 : index
    %c0_8 = arith.constant 0 : index
    %12 = vector.load %arg5[%c0_7, %c0_8] : memref<1x128xf32, #tpu.memory_space<vmem>>, vector<1x128xf32>
    %cst_9 = arith.constant dense<0.000000e+00> : vector<16xf32>
    %13 = vector.multi_reduction <add>, %10, %cst_9 [1] : vector<16x128xf32> to vector<16xf32>
    %14 = vector.shape_cast %13 : vector<16xf32> to vector<16x1xf32>
    %cst_10 = arith.constant 1.280000e+02 : f32
    %15 = vector.broadcast %cst_10 : f32 to vector<16x1xf32>
    %16 = arith.divf %14, %15 : vector<16x1xf32>
    %17 = vector.broadcast %16 : vector<16x1xf32> to vector<16x128xf32>
    %18 = arith.subf %10, %17 : vector<16x128xf32>
    %19 = vector.broadcast %16 : vector<16x1xf32> to vector<16x128xf32>
    %20 = arith.subf %10, %19 : vector<16x128xf32>
    %21 = arith.mulf %18, %20 : vector<16x128xf32>
    %cst_11 = arith.constant dense<0.000000e+00> : vector<16xf32>
    %22 = vector.multi_reduction <add>, %21, %cst_11 [1] : vector<16x128xf32> to vector<16xf32>
    %23 = vector.shape_cast %22 : vector<16xf32> to vector<16x1xf32>
    %cst_12 = arith.constant 1.280000e+02 : f32
    %24 = vector.broadcast %cst_12 : f32 to vector<16x1xf32>
    %25 = arith.divf %23, %24 : vector<16x1xf32>
    %26 = vector.broadcast %16 : vector<16x1xf32> to vector<16x128xf32>
    %27 = arith.subf %10, %26 : vector<16x128xf32>
    %cst_13 = arith.constant 9.99999974E-6 : f32
    %28 = vector.broadcast %cst_13 : f32 to vector<16x1xf32>
    %29 = arith.addf %25, %28 : vector<16x1xf32>
    %30 = math.rsqrt %29 : vector<16x1xf32>
    %31 = vector.broadcast %30 : vector<16x1xf32> to vector<16x128xf32>
    %32 = arith.mulf %27, %31 : vector<16x128xf32>
    %33 = vector.broadcast %11 : vector<1x128xf32> to vector<16x128xf32>
    %34 = arith.mulf %32, %33 : vector<16x128xf32>
    %35 = vector.broadcast %12 : vector<1x128xf32> to vector<16x128xf32>
    %36 = arith.addf %34, %35 : vector<16x128xf32>
    %37 = tpu.iota {dimensions = array<i32: 0>} : vector<16x16xi32>
    %38 = tpu.iota {dimensions = array<i32: 1>} : vector<16x16xi32>
    %c3_i32 = arith.constant 3 : i32
    %39 = vector.broadcast %c3_i32 : i32 to vector<16x16xi32>
    %40 = arith.shrsi %37, %39 : vector<16x16xi32>
    %c3_i32_14 = arith.constant 3 : i32
    %41 = vector.broadcast %c3_i32_14 : i32 to vector<16x16xi32>
    %42 = arith.shrsi %38, %41 : vector<16x16xi32>
    %43 = arith.cmpi eq, %40, %42 : vector<16x16xi32>
    %44 = arith.truncf %36 : vector<16x128xf32> to vector<16x128xbf16>
    %cst_15 = arith.constant 0.000000e+00 : f32
    %45 = vector.broadcast %cst_15 : f32 to vector<16x128xf32>
    %c0_16 = arith.constant 0 : index
    %c0_17 = arith.constant 0 : index
    %c0_18 = arith.constant 0 : index
    %46 = vector.load %arg6[%c0_16, %c0_17, %c0_18] : memref<12x128x64xbf16, #tpu.memory_space<vmem>>, vector<1x128x64xbf16>
    %47 = vector.shape_cast %46 : vector<1x128x64xbf16> to vector<128x64xbf16>
    %cst_19 = arith.constant dense<0.000000e+00> : vector<16x64xf32>
    %48 = tpu.matmul %44, %47, %cst_19 {dimension_numbers = #tpu.dot_dimension_numbers<[1], [0], [0], [1], [0, 0, 1, 1], [], []>} : vector<16x128xbf16>, vector<128x64xbf16>, vector<16x64xf32> -> vector<16x64xf32>
    %c0_20 = arith.constant 0 : index
    %c0_21 = arith.constant 0 : index
    %c0_22 = arith.constant 0 : index
    %49 = vector.load %arg7[%c0_20, %c0_21, %c0_22] : memref<12x1x64xf32, #tpu.memory_space<vmem>>, vector<1x1x64xf32>
    %50 = vector.shape_cast %49 : vector<1x1x64xf32> to vector<1x64xf32>
    %51 = vector.broadcast %50 : vector<1x64xf32> to vector<16x64xf32>
    %52 = arith.addf %48, %51 : vector<16x64xf32>
    %c2 = arith.constant 2 : index
    %c0_23 = arith.constant 0 : index
    %c0_24 = arith.constant 0 : index
    %53 = vector.load %arg6[%c2, %c0_23, %c0_24] : memref<12x128x64xbf16, #tpu.memory_space<vmem>>, vector<1x128x64xbf16>
    %54 = vector.shape_cast %53 : vector<1x128x64xbf16> to vector<128x64xbf16>
    %cst_25 = arith.constant dense<0.000000e+00> : vector<16x64xf32>
    %55 = tpu.matmul %44, %54, %cst_25 {dimension_numbers = #tpu.dot_dimension_numbers<[1], [0], [0], [1], [0, 0, 1, 1], [], []>} : vector<16x128xbf16>, vector<128x64xbf16>, vector<16x64xf32> -> vector<16x64xf32>
    %c2_26 = arith.constant 2 : index
    %c0_27 = arith.constant 0 : index
    %c0_28 = arith.constant 0 : index
    %56 = vector.load %arg7[%c2_26, %c0_27, %c0_28] : memref<12x1x64xf32, #tpu.memory_space<vmem>>, vector<1x1x64xf32>
    %57 = vector.shape_cast %56 : vector<1x1x64xf32> to vector<1x64xf32>
    %58 = vector.broadcast %57 : vector<1x64xf32> to vector<16x64xf32>
    %59 = arith.addf %55, %58 : vector<16x64xf32>
    %c4 = arith.constant 4 : index
    %c0_29 = arith.constant 0 : index
    %c0_30 = arith.constant 0 : index
    %60 = vector.load %arg6[%c4, %c0_29, %c0_30] : memref<12x128x64xbf16, #tpu.memory_space<vmem>>, vector<1x128x64xbf16>
    %61 = vector.shape_cast %60 : vector<1x128x64xbf16> to vector<128x64xbf16>
    %cst_31 = arith.constant dense<0.000000e+00> : vector<16x64xf32>
    %62 = tpu.matmul %44, %61, %cst_31 {dimension_numbers = #tpu.dot_dimension_numbers<[1], [0], [0], [1], [0, 0, 1, 1], [], []>} : vector<16x128xbf16>, vector<128x64xbf16>, vector<16x64xf32> -> vector<16x64xf32>
    %c4_32 = arith.constant 4 : index
    %c0_33 = arith.constant 0 : index
    %c0_34 = arith.constant 0 : index
    %63 = vector.load %arg7[%c4_32, %c0_33, %c0_34] : memref<12x1x64xf32, #tpu.memory_space<vmem>>, vector<1x1x64xf32>
    %64 = vector.shape_cast %63 : vector<1x1x64xf32> to vector<1x64xf32>
    %65 = vector.broadcast %64 : vector<1x64xf32> to vector<16x64xf32>
    %66 = arith.addf %62, %65 : vector<16x64xf32>
    %67 = arith.truncf %52 : vector<16x64xf32> to vector<16x64xbf16>
    %68 = arith.truncf %59 : vector<16x64xf32> to vector<16x64xbf16>
    %cst_35 = arith.constant dense<0.000000e+00> : vector<16x16xf32>
    %69 = tpu.matmul %67, %68, %cst_35 {dimension_numbers = #tpu.dot_dimension_numbers<[1], [1], [0], [0], [0, 0, 1, 0], [], []>} : vector<16x64xbf16>, vector<16x64xbf16>, vector<16x16xf32> -> vector<16x16xf32>
    %cst_36 = arith.constant 1.250000e-01 : f32
    %70 = vector.broadcast %cst_36 : f32 to vector<16x16xf32>
    %71 = arith.mulf %69, %70 : vector<16x16xf32>
    %cst_37 = arith.constant -1.000000e+30 : f32
    %72 = vector.broadcast %cst_37 : f32 to vector<16x16xf32>
    %73 = arith.select %43, %71, %72 : vector<16x16xi1>, vector<16x16xf32>
    %cst_38 = arith.constant dense<0xFF800000> : vector<16xf32>
    %74 = vector.multi_reduction <maximumf>, %73, %cst_38 [1] : vector<16x16xf32> to vector<16xf32>
    %75 = vector.shape_cast %74 : vector<16xf32> to vector<16x1xf32>
    %76 = vector.broadcast %75 : vector<16x1xf32> to vector<16x16xf32>
    %77 = arith.subf %73, %76 : vector<16x16xf32>
    %78 = math.exp %77 : vector<16x16xf32>
    %cst_39 = arith.constant dense<0.000000e+00> : vector<16xf32>
    %79 = vector.multi_reduction <add>, %78, %cst_39 [1] : vector<16x16xf32> to vector<16xf32>
    %80 = vector.shape_cast %79 : vector<16xf32> to vector<16x1xf32>
    %81 = vector.broadcast %80 : vector<16x1xf32> to vector<16x16xf32>
    %82 = arith.divf %78, %81 : vector<16x16xf32>
    %83 = arith.truncf %82 : vector<16x16xf32> to vector<16x16xbf16>
    %84 = arith.truncf %66 : vector<16x64xf32> to vector<16x64xbf16>
    %cst_40 = arith.constant dense<0.000000e+00> : vector<16x64xf32>
    %85 = tpu.matmul %83, %84, %cst_40 {dimension_numbers = #tpu.dot_dimension_numbers<[1], [0], [0], [1], [0, 0, 1, 1], [], []>} : vector<16x16xbf16>, vector<16x64xbf16>, vector<16x64xf32> -> vector<16x64xf32>
    %86 = arith.truncf %85 : vector<16x64xf32> to vector<16x64xbf16>
    %c0_41 = arith.constant 0 : index
    %c0_42 = arith.constant 0 : index
    %c0_43 = arith.constant 0 : index
    %87 = vector.load %arg8[%c0_41, %c0_42, %c0_43] : memref<4x64x128xbf16, #tpu.memory_space<vmem>>, vector<1x64x128xbf16>
    %88 = vector.shape_cast %87 : vector<1x64x128xbf16> to vector<64x128xbf16>
    %cst_44 = arith.constant dense<0.000000e+00> : vector<16x128xf32>
    %89 = tpu.matmul %86, %88, %cst_44 {dimension_numbers = #tpu.dot_dimension_numbers<[1], [0], [0], [1], [0, 0, 1, 1], [], []>} : vector<16x64xbf16>, vector<64x128xbf16>, vector<16x128xf32> -> vector<16x128xf32>
    %90 = arith.addf %45, %89 : vector<16x128xf32>
    %c1 = arith.constant 1 : index
    %c0_45 = arith.constant 0 : index
    %c0_46 = arith.constant 0 : index
    %91 = vector.load %arg6[%c1, %c0_45, %c0_46] : memref<12x128x64xbf16, #tpu.memory_space<vmem>>, vector<1x128x64xbf16>
    %92 = vector.shape_cast %91 : vector<1x128x64xbf16> to vector<128x64xbf16>
    %cst_47 = arith.constant dense<0.000000e+00> : vector<16x64xf32>
    %93 = tpu.matmul %44, %92, %cst_47 {dimension_numbers = #tpu.dot_dimension_numbers<[1], [0], [0], [1], [0, 0, 1, 1], [], []>} : vector<16x128xbf16>, vector<128x64xbf16>, vector<16x64xf32> -> vector<16x64xf32>
    %c1_48 = arith.constant 1 : index
    %c0_49 = arith.constant 0 : index
    %c0_50 = arith.constant 0 : index
    %94 = vector.load %arg7[%c1_48, %c0_49, %c0_50] : memref<12x1x64xf32, #tpu.memory_space<vmem>>, vector<1x1x64xf32>
    %95 = vector.shape_cast %94 : vector<1x1x64xf32> to vector<1x64xf32>
    %96 = vector.broadcast %95 : vector<1x64xf32> to vector<16x64xf32>
    %97 = arith.addf %93, %96 : vector<16x64xf32>
    %c3 = arith.constant 3 : index
    %c0_51 = arith.constant 0 : index
    %c0_52 = arith.constant 0 : index
    %98 = vector.load %arg6[%c3, %c0_51, %c0_52] : memref<12x128x64xbf16, #tpu.memory_space<vmem>>, vector<1x128x64xbf16>
    %99 = vector.shape_cast %98 : vector<1x128x64xbf16> to vector<128x64xbf16>
    %cst_53 = arith.constant dense<0.000000e+00> : vector<16x64xf32>
    %100 = tpu.matmul %44, %99, %cst_53 {dimension_numbers = #tpu.dot_dimension_numbers<[1], [0], [0], [1], [0, 0, 1, 1], [], []>} : vector<16x128xbf16>, vector<128x64xbf16>, vector<16x64xf32> -> vector<16x64xf32>
    %c3_54 = arith.constant 3 : index
    %c0_55 = arith.constant 0 : index
    %c0_56 = arith.constant 0 : index
    %101 = vector.load %arg7[%c3_54, %c0_55, %c0_56] : memref<12x1x64xf32, #tpu.memory_space<vmem>>, vector<1x1x64xf32>
    %102 = vector.shape_cast %101 : vector<1x1x64xf32> to vector<1x64xf32>
    %103 = vector.broadcast %102 : vector<1x64xf32> to vector<16x64xf32>
    %104 = arith.addf %100, %103 : vector<16x64xf32>
    %c5 = arith.constant 5 : index
    %c0_57 = arith.constant 0 : index
    %c0_58 = arith.constant 0 : index
    %105 = vector.load %arg6[%c5, %c0_57, %c0_58] : memref<12x128x64xbf16, #tpu.memory_space<vmem>>, vector<1x128x64xbf16>
    %106 = vector.shape_cast %105 : vector<1x128x64xbf16> to vector<128x64xbf16>
    %cst_59 = arith.constant dense<0.000000e+00> : vector<16x64xf32>
    %107 = tpu.matmul %44, %106, %cst_59 {dimension_numbers = #tpu.dot_dimension_numbers<[1], [0], [0], [1], [0, 0, 1, 1], [], []>} : vector<16x128xbf16>, vector<128x64xbf16>, vector<16x64xf32> -> vector<16x64xf32>
    %c5_60 = arith.constant 5 : index
    %c0_61 = arith.constant 0 : index
    %c0_62 = arith.constant 0 : index
    %108 = vector.load %arg7[%c5_60, %c0_61, %c0_62] : memref<12x1x64xf32, #tpu.memory_space<vmem>>, vector<1x1x64xf32>
    %109 = vector.shape_cast %108 : vector<1x1x64xf32> to vector<1x64xf32>
    %110 = vector.broadcast %109 : vector<1x64xf32> to vector<16x64xf32>
    %111 = arith.addf %107, %110 : vector<16x64xf32>
    %112 = arith.truncf %97 : vector<16x64xf32> to vector<16x64xbf16>
    %113 = arith.truncf %104 : vector<16x64xf32> to vector<16x64xbf16>
    %cst_63 = arith.constant dense<0.000000e+00> : vector<16x16xf32>
    %114 = tpu.matmul %112, %113, %cst_63 {dimension_numbers = #tpu.dot_dimension_numbers<[1], [1], [0], [0], [0, 0, 1, 0], [], []>} : vector<16x64xbf16>, vector<16x64xbf16>, vector<16x16xf32> -> vector<16x16xf32>
    %cst_64 = arith.constant 1.250000e-01 : f32
    %115 = vector.broadcast %cst_64 : f32 to vector<16x16xf32>
    %116 = arith.mulf %114, %115 : vector<16x16xf32>
    %cst_65 = arith.constant -1.000000e+30 : f32
    %117 = vector.broadcast %cst_65 : f32 to vector<16x16xf32>
    %118 = arith.select %43, %116, %117 : vector<16x16xi1>, vector<16x16xf32>
    %cst_66 = arith.constant dense<0xFF800000> : vector<16xf32>
    %119 = vector.multi_reduction <maximumf>, %118, %cst_66 [1] : vector<16x16xf32> to vector<16xf32>
    %120 = vector.shape_cast %119 : vector<16xf32> to vector<16x1xf32>
    %121 = vector.broadcast %120 : vector<16x1xf32> to vector<16x16xf32>
    %122 = arith.subf %118, %121 : vector<16x16xf32>
    %123 = math.exp %122 : vector<16x16xf32>
    %cst_67 = arith.constant dense<0.000000e+00> : vector<16xf32>
    %124 = vector.multi_reduction <add>, %123, %cst_67 [1] : vector<16x16xf32> to vector<16xf32>
    %125 = vector.shape_cast %124 : vector<16xf32> to vector<16x1xf32>
    %126 = vector.broadcast %125 : vector<16x1xf32> to vector<16x16xf32>
    %127 = arith.divf %123, %126 : vector<16x16xf32>
    %128 = arith.truncf %127 : vector<16x16xf32> to vector<16x16xbf16>
    %129 = arith.truncf %111 : vector<16x64xf32> to vector<16x64xbf16>
    %cst_68 = arith.constant dense<0.000000e+00> : vector<16x64xf32>
    %130 = tpu.matmul %128, %129, %cst_68 {dimension_numbers = #tpu.dot_dimension_numbers<[1], [0], [0], [1], [0, 0, 1, 1], [], []>} : vector<16x16xbf16>, vector<16x64xbf16>, vector<16x64xf32> -> vector<16x64xf32>
    %131 = arith.truncf %130 : vector<16x64xf32> to vector<16x64xbf16>
    %c1_69 = arith.constant 1 : index
    %c0_70 = arith.constant 0 : index
    %c0_71 = arith.constant 0 : index
    %132 = vector.load %arg8[%c1_69, %c0_70, %c0_71] : memref<4x64x128xbf16, #tpu.memory_space<vmem>>, vector<1x64x128xbf16>
    %133 = vector.shape_cast %132 : vector<1x64x128xbf16> to vector<64x128xbf16>
    %cst_72 = arith.constant dense<0.000000e+00> : vector<16x128xf32>
    %134 = tpu.matmul %131, %133, %cst_72 {dimension_numbers = #tpu.dot_dimension_numbers<[1], [0], [0], [1], [0, 0, 1, 1], [], []>} : vector<16x64xbf16>, vector<64x128xbf16>, vector<16x128xf32> -> vector<16x128xf32>
    %135 = arith.addf %90, %134 : vector<16x128xf32>
    %c0_73 = arith.constant 0 : index
    %c0_74 = arith.constant 0 : index
    %c0_75 = arith.constant 0 : index
    %136 = vector.load %arg9[%c0_73, %c0_74, %c0_75] : memref<2x1x128xf32, #tpu.memory_space<vmem>>, vector<1x1x128xf32>
    %137 = vector.shape_cast %136 : vector<1x1x128xf32> to vector<1x128xf32>
    %138 = vector.broadcast %137 : vector<1x128xf32> to vector<16x128xf32>
    %139 = arith.addf %135, %138 : vector<16x128xf32>
    %140 = arith.addf %139, %36 : vector<16x128xf32>
    %c0_76 = arith.constant 0 : index
    %c0_77 = arith.constant 0 : index
    %c0_78 = arith.constant 0 : index
    %141 = vector.load %arg10[%c0_76, %c0_77, %c0_78] : memref<2x1x128xf32, #tpu.memory_space<vmem>>, vector<1x1x128xf32>
    %142 = vector.shape_cast %141 : vector<1x1x128xf32> to vector<1x128xf32>
    %c0_79 = arith.constant 0 : index
    %c0_80 = arith.constant 0 : index
    %c0_81 = arith.constant 0 : index
    %143 = vector.load %arg11[%c0_79, %c0_80, %c0_81] : memref<2x1x128xf32, #tpu.memory_space<vmem>>, vector<1x1x128xf32>
    %144 = vector.shape_cast %143 : vector<1x1x128xf32> to vector<1x128xf32>
    %cst_82 = arith.constant dense<0.000000e+00> : vector<16xf32>
    %145 = vector.multi_reduction <add>, %140, %cst_82 [1] : vector<16x128xf32> to vector<16xf32>
    %146 = vector.shape_cast %145 : vector<16xf32> to vector<16x1xf32>
    %cst_83 = arith.constant 1.280000e+02 : f32
    %147 = vector.broadcast %cst_83 : f32 to vector<16x1xf32>
    %148 = arith.divf %146, %147 : vector<16x1xf32>
    %149 = vector.broadcast %148 : vector<16x1xf32> to vector<16x128xf32>
    %150 = arith.subf %140, %149 : vector<16x128xf32>
    %151 = vector.broadcast %148 : vector<16x1xf32> to vector<16x128xf32>
    %152 = arith.subf %140, %151 : vector<16x128xf32>
    %153 = arith.mulf %150, %152 : vector<16x128xf32>
    %cst_84 = arith.constant dense<0.000000e+00> : vector<16xf32>
    %154 = vector.multi_reduction <add>, %153, %cst_84 [1] : vector<16x128xf32> to vector<16xf32>
    %155 = vector.shape_cast %154 : vector<16xf32> to vector<16x1xf32>
    %cst_85 = arith.constant 1.280000e+02 : f32
    %156 = vector.broadcast %cst_85 : f32 to vector<16x1xf32>
    %157 = arith.divf %155, %156 : vector<16x1xf32>
    %158 = vector.broadcast %148 : vector<16x1xf32> to vector<16x128xf32>
    %159 = arith.subf %140, %158 : vector<16x128xf32>
    %cst_86 = arith.constant 9.99999974E-6 : f32
    %160 = vector.broadcast %cst_86 : f32 to vector<16x1xf32>
    %161 = arith.addf %157, %160 : vector<16x1xf32>
    %162 = math.rsqrt %161 : vector<16x1xf32>
    %163 = vector.broadcast %162 : vector<16x1xf32> to vector<16x128xf32>
    %164 = arith.mulf %159, %163 : vector<16x128xf32>
    %165 = vector.broadcast %142 : vector<1x128xf32> to vector<16x128xf32>
    %166 = arith.mulf %164, %165 : vector<16x128xf32>
    %167 = vector.broadcast %144 : vector<1x128xf32> to vector<16x128xf32>
    %168 = arith.addf %166, %167 : vector<16x128xf32>
    %169 = arith.truncf %168 : vector<16x128xf32> to vector<16x128xbf16>
    %c0_87 = arith.constant 0 : index
    %c0_88 = arith.constant 0 : index
    %c0_89 = arith.constant 0 : index
    %170 = vector.load %arg12[%c0_87, %c0_88, %c0_89] : memref<2x128x256xbf16, #tpu.memory_space<vmem>>, vector<1x128x256xbf16>
    %171 = vector.shape_cast %170 : vector<1x128x256xbf16> to vector<128x256xbf16>
    %cst_90 = arith.constant dense<0.000000e+00> : vector<16x256xf32>
    %172 = tpu.matmul %169, %171, %cst_90 {dimension_numbers = #tpu.dot_dimension_numbers<[1], [0], [0], [1], [0, 0, 1, 1], [], []>} : vector<16x128xbf16>, vector<128x256xbf16>, vector<16x256xf32> -> vector<16x256xf32>
    %c0_91 = arith.constant 0 : index
    %c0_92 = arith.constant 0 : index
    %c0_93 = arith.constant 0 : index
    %173 = vector.load %arg13[%c0_91, %c0_92, %c0_93] : memref<2x1x256xf32, #tpu.memory_space<vmem>>, vector<1x1x256xf32>
    %174 = vector.shape_cast %173 : vector<1x1x256xf32> to vector<1x256xf32>
    %175 = vector.broadcast %174 : vector<1x256xf32> to vector<16x256xf32>
    %176 = arith.addf %172, %175 : vector<16x256xf32>
    %177 = arith.mulf %176, %176 : vector<16x256xf32>
    %178 = arith.mulf %176, %177 : vector<16x256xf32>
    %cst_94 = arith.constant 4.471500e-02 : f32
    %179 = vector.broadcast %cst_94 : f32 to vector<16x256xf32>
    %180 = arith.mulf %179, %178 : vector<16x256xf32>
    %181 = arith.addf %176, %180 : vector<16x256xf32>
    %cst_95 = arith.constant 0.797884583 : f32
    %182 = vector.broadcast %cst_95 : f32 to vector<16x256xf32>
    %183 = arith.mulf %182, %181 : vector<16x256xf32>
    %184 = math.tanh %183 : vector<16x256xf32>
    %cst_96 = arith.constant 1.000000e+00 : f32
    %185 = vector.broadcast %cst_96 : f32 to vector<16x256xf32>
    %186 = arith.addf %185, %184 : vector<16x256xf32>
    %cst_97 = arith.constant 5.000000e-01 : f32
    %187 = vector.broadcast %cst_97 : f32 to vector<16x256xf32>
    %188 = arith.mulf %187, %186 : vector<16x256xf32>
    %189 = arith.mulf %176, %188 : vector<16x256xf32>
    %190 = arith.truncf %189 : vector<16x256xf32> to vector<16x256xbf16>
    %c0_98 = arith.constant 0 : index
    %c0_99 = arith.constant 0 : index
    %c0_100 = arith.constant 0 : index
    %191 = vector.load %arg14[%c0_98, %c0_99, %c0_100] : memref<2x256x128xbf16, #tpu.memory_space<vmem>>, vector<1x256x128xbf16>
    %192 = vector.shape_cast %191 : vector<1x256x128xbf16> to vector<256x128xbf16>
    %cst_101 = arith.constant dense<0.000000e+00> : vector<16x128xf32>
    %193 = tpu.matmul %190, %192, %cst_101 {dimension_numbers = #tpu.dot_dimension_numbers<[1], [0], [0], [1], [0, 0, 1, 1], [], []>} : vector<16x256xbf16>, vector<256x128xbf16>, vector<16x128xf32> -> vector<16x128xf32>
    %c0_102 = arith.constant 0 : index
    %c0_103 = arith.constant 0 : index
    %c0_104 = arith.constant 0 : index
    %194 = vector.load %arg15[%c0_102, %c0_103, %c0_104] : memref<2x1x128xf32, #tpu.memory_space<vmem>>, vector<1x1x128xf32>
    %195 = vector.shape_cast %194 : vector<1x1x128xf32> to vector<1x128xf32>
    %196 = vector.broadcast %195 : vector<1x128xf32> to vector<16x128xf32>
    %197 = arith.addf %193, %196 : vector<16x128xf32>
    %198 = arith.addf %197, %168 : vector<16x128xf32>
    %c0_105 = arith.constant 0 : index
    %c0_106 = arith.constant 0 : index
    %c0_107 = arith.constant 0 : index
    %199 = vector.load %arg16[%c0_105, %c0_106, %c0_107] : memref<2x1x128xf32, #tpu.memory_space<vmem>>, vector<1x1x128xf32>
    %200 = vector.shape_cast %199 : vector<1x1x128xf32> to vector<1x128xf32>
    %c0_108 = arith.constant 0 : index
    %c0_109 = arith.constant 0 : index
    %c0_110 = arith.constant 0 : index
    %201 = vector.load %arg17[%c0_108, %c0_109, %c0_110] : memref<2x1x128xf32, #tpu.memory_space<vmem>>, vector<1x1x128xf32>
    %202 = vector.shape_cast %201 : vector<1x1x128xf32> to vector<1x128xf32>
    %cst_111 = arith.constant dense<0.000000e+00> : vector<16xf32>
    %203 = vector.multi_reduction <add>, %198, %cst_111 [1] : vector<16x128xf32> to vector<16xf32>
    %204 = vector.shape_cast %203 : vector<16xf32> to vector<16x1xf32>
    %cst_112 = arith.constant 1.280000e+02 : f32
    %205 = vector.broadcast %cst_112 : f32 to vector<16x1xf32>
    %206 = arith.divf %204, %205 : vector<16x1xf32>
    %207 = vector.broadcast %206 : vector<16x1xf32> to vector<16x128xf32>
    %208 = arith.subf %198, %207 : vector<16x128xf32>
    %209 = vector.broadcast %206 : vector<16x1xf32> to vector<16x128xf32>
    %210 = arith.subf %198, %209 : vector<16x128xf32>
    %211 = arith.mulf %208, %210 : vector<16x128xf32>
    %cst_113 = arith.constant dense<0.000000e+00> : vector<16xf32>
    %212 = vector.multi_reduction <add>, %211, %cst_113 [1] : vector<16x128xf32> to vector<16xf32>
    %213 = vector.shape_cast %212 : vector<16xf32> to vector<16x1xf32>
    %cst_114 = arith.constant 1.280000e+02 : f32
    %214 = vector.broadcast %cst_114 : f32 to vector<16x1xf32>
    %215 = arith.divf %213, %214 : vector<16x1xf32>
    %216 = vector.broadcast %206 : vector<16x1xf32> to vector<16x128xf32>
    %217 = arith.subf %198, %216 : vector<16x128xf32>
    %cst_115 = arith.constant 9.99999974E-6 : f32
    %218 = vector.broadcast %cst_115 : f32 to vector<16x1xf32>
    %219 = arith.addf %215, %218 : vector<16x1xf32>
    %220 = math.rsqrt %219 : vector<16x1xf32>
    %221 = vector.broadcast %220 : vector<16x1xf32> to vector<16x128xf32>
    %222 = arith.mulf %217, %221 : vector<16x128xf32>
    %223 = vector.broadcast %200 : vector<1x128xf32> to vector<16x128xf32>
    %224 = arith.mulf %222, %223 : vector<16x128xf32>
    %225 = vector.broadcast %202 : vector<1x128xf32> to vector<16x128xf32>
    %226 = arith.addf %224, %225 : vector<16x128xf32>
    %227 = arith.truncf %226 : vector<16x128xf32> to vector<16x128xbf16>
    %cst_116 = arith.constant 0.000000e+00 : f32
    %228 = vector.broadcast %cst_116 : f32 to vector<16x128xf32>
    %c6 = arith.constant 6 : index
    %c0_117 = arith.constant 0 : index
    %c0_118 = arith.constant 0 : index
    %229 = vector.load %arg6[%c6, %c0_117, %c0_118] : memref<12x128x64xbf16, #tpu.memory_space<vmem>>, vector<1x128x64xbf16>
    %230 = vector.shape_cast %229 : vector<1x128x64xbf16> to vector<128x64xbf16>
    %cst_119 = arith.constant dense<0.000000e+00> : vector<16x64xf32>
    %231 = tpu.matmul %227, %230, %cst_119 {dimension_numbers = #tpu.dot_dimension_numbers<[1], [0], [0], [1], [0, 0, 1, 1], [], []>} : vector<16x128xbf16>, vector<128x64xbf16>, vector<16x64xf32> -> vector<16x64xf32>
    %c6_120 = arith.constant 6 : index
    %c0_121 = arith.constant 0 : index
    %c0_122 = arith.constant 0 : index
    %232 = vector.load %arg7[%c6_120, %c0_121, %c0_122] : memref<12x1x64xf32, #tpu.memory_space<vmem>>, vector<1x1x64xf32>
    %233 = vector.shape_cast %232 : vector<1x1x64xf32> to vector<1x64xf32>
    %234 = vector.broadcast %233 : vector<1x64xf32> to vector<16x64xf32>
    %235 = arith.addf %231, %234 : vector<16x64xf32>
    %c8 = arith.constant 8 : index
    %c0_123 = arith.constant 0 : index
    %c0_124 = arith.constant 0 : index
    %236 = vector.load %arg6[%c8, %c0_123, %c0_124] : memref<12x128x64xbf16, #tpu.memory_space<vmem>>, vector<1x128x64xbf16>
    %237 = vector.shape_cast %236 : vector<1x128x64xbf16> to vector<128x64xbf16>
    %cst_125 = arith.constant dense<0.000000e+00> : vector<16x64xf32>
    %238 = tpu.matmul %227, %237, %cst_125 {dimension_numbers = #tpu.dot_dimension_numbers<[1], [0], [0], [1], [0, 0, 1, 1], [], []>} : vector<16x128xbf16>, vector<128x64xbf16>, vector<16x64xf32> -> vector<16x64xf32>
    %c8_126 = arith.constant 8 : index
    %c0_127 = arith.constant 0 : index
    %c0_128 = arith.constant 0 : index
    %239 = vector.load %arg7[%c8_126, %c0_127, %c0_128] : memref<12x1x64xf32, #tpu.memory_space<vmem>>, vector<1x1x64xf32>
    %240 = vector.shape_cast %239 : vector<1x1x64xf32> to vector<1x64xf32>
    %241 = vector.broadcast %240 : vector<1x64xf32> to vector<16x64xf32>
    %242 = arith.addf %238, %241 : vector<16x64xf32>
    %c10 = arith.constant 10 : index
    %c0_129 = arith.constant 0 : index
    %c0_130 = arith.constant 0 : index
    %243 = vector.load %arg6[%c10, %c0_129, %c0_130] : memref<12x128x64xbf16, #tpu.memory_space<vmem>>, vector<1x128x64xbf16>
    %244 = vector.shape_cast %243 : vector<1x128x64xbf16> to vector<128x64xbf16>
    %cst_131 = arith.constant dense<0.000000e+00> : vector<16x64xf32>
    %245 = tpu.matmul %227, %244, %cst_131 {dimension_numbers = #tpu.dot_dimension_numbers<[1], [0], [0], [1], [0, 0, 1, 1], [], []>} : vector<16x128xbf16>, vector<128x64xbf16>, vector<16x64xf32> -> vector<16x64xf32>
    %c10_132 = arith.constant 10 : index
    %c0_133 = arith.constant 0 : index
    %c0_134 = arith.constant 0 : index
    %246 = vector.load %arg7[%c10_132, %c0_133, %c0_134] : memref<12x1x64xf32, #tpu.memory_space<vmem>>, vector<1x1x64xf32>
    %247 = vector.shape_cast %246 : vector<1x1x64xf32> to vector<1x64xf32>
    %248 = vector.broadcast %247 : vector<1x64xf32> to vector<16x64xf32>
    %249 = arith.addf %245, %248 : vector<16x64xf32>
    %250 = arith.truncf %235 : vector<16x64xf32> to vector<16x64xbf16>
    %251 = arith.truncf %242 : vector<16x64xf32> to vector<16x64xbf16>
    %cst_135 = arith.constant dense<0.000000e+00> : vector<16x16xf32>
    %252 = tpu.matmul %250, %251, %cst_135 {dimension_numbers = #tpu.dot_dimension_numbers<[1], [1], [0], [0], [0, 0, 1, 0], [], []>} : vector<16x64xbf16>, vector<16x64xbf16>, vector<16x16xf32> -> vector<16x16xf32>
    %cst_136 = arith.constant 1.250000e-01 : f32
    %253 = vector.broadcast %cst_136 : f32 to vector<16x16xf32>
    %254 = arith.mulf %252, %253 : vector<16x16xf32>
    %cst_137 = arith.constant -1.000000e+30 : f32
    %255 = vector.broadcast %cst_137 : f32 to vector<16x16xf32>
    %256 = arith.select %43, %254, %255 : vector<16x16xi1>, vector<16x16xf32>
    %cst_138 = arith.constant dense<0xFF800000> : vector<16xf32>
    %257 = vector.multi_reduction <maximumf>, %256, %cst_138 [1] : vector<16x16xf32> to vector<16xf32>
    %258 = vector.shape_cast %257 : vector<16xf32> to vector<16x1xf32>
    %259 = vector.broadcast %258 : vector<16x1xf32> to vector<16x16xf32>
    %260 = arith.subf %256, %259 : vector<16x16xf32>
    %261 = math.exp %260 : vector<16x16xf32>
    %cst_139 = arith.constant dense<0.000000e+00> : vector<16xf32>
    %262 = vector.multi_reduction <add>, %261, %cst_139 [1] : vector<16x16xf32> to vector<16xf32>
    %263 = vector.shape_cast %262 : vector<16xf32> to vector<16x1xf32>
    %264 = vector.broadcast %263 : vector<16x1xf32> to vector<16x16xf32>
    %265 = arith.divf %261, %264 : vector<16x16xf32>
    %266 = arith.truncf %265 : vector<16x16xf32> to vector<16x16xbf16>
    %267 = arith.truncf %249 : vector<16x64xf32> to vector<16x64xbf16>
    %cst_140 = arith.constant dense<0.000000e+00> : vector<16x64xf32>
    %268 = tpu.matmul %266, %267, %cst_140 {dimension_numbers = #tpu.dot_dimension_numbers<[1], [0], [0], [1], [0, 0, 1, 1], [], []>} : vector<16x16xbf16>, vector<16x64xbf16>, vector<16x64xf32> -> vector<16x64xf32>
    %269 = arith.truncf %268 : vector<16x64xf32> to vector<16x64xbf16>
    %c2_141 = arith.constant 2 : index
    %c0_142 = arith.constant 0 : index
    %c0_143 = arith.constant 0 : index
    %270 = vector.load %arg8[%c2_141, %c0_142, %c0_143] : memref<4x64x128xbf16, #tpu.memory_space<vmem>>, vector<1x64x128xbf16>
    %271 = vector.shape_cast %270 : vector<1x64x128xbf16> to vector<64x128xbf16>
    %cst_144 = arith.constant dense<0.000000e+00> : vector<16x128xf32>
    %272 = tpu.matmul %269, %271, %cst_144 {dimension_numbers = #tpu.dot_dimension_numbers<[1], [0], [0], [1], [0, 0, 1, 1], [], []>} : vector<16x64xbf16>, vector<64x128xbf16>, vector<16x128xf32> -> vector<16x128xf32>
    %273 = arith.addf %228, %272 : vector<16x128xf32>
    %c7 = arith.constant 7 : index
    %c0_145 = arith.constant 0 : index
    %c0_146 = arith.constant 0 : index
    %274 = vector.load %arg6[%c7, %c0_145, %c0_146] : memref<12x128x64xbf16, #tpu.memory_space<vmem>>, vector<1x128x64xbf16>
    %275 = vector.shape_cast %274 : vector<1x128x64xbf16> to vector<128x64xbf16>
    %cst_147 = arith.constant dense<0.000000e+00> : vector<16x64xf32>
    %276 = tpu.matmul %227, %275, %cst_147 {dimension_numbers = #tpu.dot_dimension_numbers<[1], [0], [0], [1], [0, 0, 1, 1], [], []>} : vector<16x128xbf16>, vector<128x64xbf16>, vector<16x64xf32> -> vector<16x64xf32>
    %c7_148 = arith.constant 7 : index
    %c0_149 = arith.constant 0 : index
    %c0_150 = arith.constant 0 : index
    %277 = vector.load %arg7[%c7_148, %c0_149, %c0_150] : memref<12x1x64xf32, #tpu.memory_space<vmem>>, vector<1x1x64xf32>
    %278 = vector.shape_cast %277 : vector<1x1x64xf32> to vector<1x64xf32>
    %279 = vector.broadcast %278 : vector<1x64xf32> to vector<16x64xf32>
    %280 = arith.addf %276, %279 : vector<16x64xf32>
    %c9 = arith.constant 9 : index
    %c0_151 = arith.constant 0 : index
    %c0_152 = arith.constant 0 : index
    %281 = vector.load %arg6[%c9, %c0_151, %c0_152] : memref<12x128x64xbf16, #tpu.memory_space<vmem>>, vector<1x128x64xbf16>
    %282 = vector.shape_cast %281 : vector<1x128x64xbf16> to vector<128x64xbf16>
    %cst_153 = arith.constant dense<0.000000e+00> : vector<16x64xf32>
    %283 = tpu.matmul %227, %282, %cst_153 {dimension_numbers = #tpu.dot_dimension_numbers<[1], [0], [0], [1], [0, 0, 1, 1], [], []>} : vector<16x128xbf16>, vector<128x64xbf16>, vector<16x64xf32> -> vector<16x64xf32>
    %c9_154 = arith.constant 9 : index
    %c0_155 = arith.constant 0 : index
    %c0_156 = arith.constant 0 : index
    %284 = vector.load %arg7[%c9_154, %c0_155, %c0_156] : memref<12x1x64xf32, #tpu.memory_space<vmem>>, vector<1x1x64xf32>
    %285 = vector.shape_cast %284 : vector<1x1x64xf32> to vector<1x64xf32>
    %286 = vector.broadcast %285 : vector<1x64xf32> to vector<16x64xf32>
    %287 = arith.addf %283, %286 : vector<16x64xf32>
    %c11 = arith.constant 11 : index
    %c0_157 = arith.constant 0 : index
    %c0_158 = arith.constant 0 : index
    %288 = vector.load %arg6[%c11, %c0_157, %c0_158] : memref<12x128x64xbf16, #tpu.memory_space<vmem>>, vector<1x128x64xbf16>
    %289 = vector.shape_cast %288 : vector<1x128x64xbf16> to vector<128x64xbf16>
    %cst_159 = arith.constant dense<0.000000e+00> : vector<16x64xf32>
    %290 = tpu.matmul %227, %289, %cst_159 {dimension_numbers = #tpu.dot_dimension_numbers<[1], [0], [0], [1], [0, 0, 1, 1], [], []>} : vector<16x128xbf16>, vector<128x64xbf16>, vector<16x64xf32> -> vector<16x64xf32>
    %c11_160 = arith.constant 11 : index
    %c0_161 = arith.constant 0 : index
    %c0_162 = arith.constant 0 : index
    %291 = vector.load %arg7[%c11_160, %c0_161, %c0_162] : memref<12x1x64xf32, #tpu.memory_space<vmem>>, vector<1x1x64xf32>
    %292 = vector.shape_cast %291 : vector<1x1x64xf32> to vector<1x64xf32>
    %293 = vector.broadcast %292 : vector<1x64xf32> to vector<16x64xf32>
    %294 = arith.addf %290, %293 : vector<16x64xf32>
    %295 = arith.truncf %280 : vector<16x64xf32> to vector<16x64xbf16>
    %296 = arith.truncf %287 : vector<16x64xf32> to vector<16x64xbf16>
    %cst_163 = arith.constant dense<0.000000e+00> : vector<16x16xf32>
    %297 = tpu.matmul %295, %296, %cst_163 {dimension_numbers = #tpu.dot_dimension_numbers<[1], [1], [0], [0], [0, 0, 1, 0], [], []>} : vector<16x64xbf16>, vector<16x64xbf16>, vector<16x16xf32> -> vector<16x16xf32>
    %cst_164 = arith.constant 1.250000e-01 : f32
    %298 = vector.broadcast %cst_164 : f32 to vector<16x16xf32>
    %299 = arith.mulf %297, %298 : vector<16x16xf32>
    %cst_165 = arith.constant -1.000000e+30 : f32
    %300 = vector.broadcast %cst_165 : f32 to vector<16x16xf32>
    %301 = arith.select %43, %299, %300 : vector<16x16xi1>, vector<16x16xf32>
    %cst_166 = arith.constant dense<0xFF800000> : vector<16xf32>
    %302 = vector.multi_reduction <maximumf>, %301, %cst_166 [1] : vector<16x16xf32> to vector<16xf32>
    %303 = vector.shape_cast %302 : vector<16xf32> to vector<16x1xf32>
    %304 = vector.broadcast %303 : vector<16x1xf32> to vector<16x16xf32>
    %305 = arith.subf %301, %304 : vector<16x16xf32>
    %306 = math.exp %305 : vector<16x16xf32>
    %cst_167 = arith.constant dense<0.000000e+00> : vector<16xf32>
    %307 = vector.multi_reduction <add>, %306, %cst_167 [1] : vector<16x16xf32> to vector<16xf32>
    %308 = vector.shape_cast %307 : vector<16xf32> to vector<16x1xf32>
    %309 = vector.broadcast %308 : vector<16x1xf32> to vector<16x16xf32>
    %310 = arith.divf %306, %309 : vector<16x16xf32>
    %311 = arith.truncf %310 : vector<16x16xf32> to vector<16x16xbf16>
    %312 = arith.truncf %294 : vector<16x64xf32> to vector<16x64xbf16>
    %cst_168 = arith.constant dense<0.000000e+00> : vector<16x64xf32>
    %313 = tpu.matmul %311, %312, %cst_168 {dimension_numbers = #tpu.dot_dimension_numbers<[1], [0], [0], [1], [0, 0, 1, 1], [], []>} : vector<16x16xbf16>, vector<16x64xbf16>, vector<16x64xf32> -> vector<16x64xf32>
    %314 = arith.truncf %313 : vector<16x64xf32> to vector<16x64xbf16>
    %c3_169 = arith.constant 3 : index
    %c0_170 = arith.constant 0 : index
    %c0_171 = arith.constant 0 : index
    %315 = vector.load %arg8[%c3_169, %c0_170, %c0_171] : memref<4x64x128xbf16, #tpu.memory_space<vmem>>, vector<1x64x128xbf16>
    %316 = vector.shape_cast %315 : vector<1x64x128xbf16> to vector<64x128xbf16>
    %cst_172 = arith.constant dense<0.000000e+00> : vector<16x128xf32>
    %317 = tpu.matmul %314, %316, %cst_172 {dimension_numbers = #tpu.dot_dimension_numbers<[1], [0], [0], [1], [0, 0, 1, 1], [], []>} : vector<16x64xbf16>, vector<64x128xbf16>, vector<16x128xf32> -> vector<16x128xf32>
    %318 = arith.addf %273, %317 : vector<16x128xf32>
    %c1_173 = arith.constant 1 : index
    %c0_174 = arith.constant 0 : index
    %c0_175 = arith.constant 0 : index
    %319 = vector.load %arg9[%c1_173, %c0_174, %c0_175] : memref<2x1x128xf32, #tpu.memory_space<vmem>>, vector<1x1x128xf32>
    %320 = vector.shape_cast %319 : vector<1x1x128xf32> to vector<1x128xf32>
    %321 = vector.broadcast %320 : vector<1x128xf32> to vector<16x128xf32>
    %322 = arith.addf %318, %321 : vector<16x128xf32>
    %323 = arith.addf %322, %226 : vector<16x128xf32>
    %c1_176 = arith.constant 1 : index
    %c0_177 = arith.constant 0 : index
    %c0_178 = arith.constant 0 : index
    %324 = vector.load %arg10[%c1_176, %c0_177, %c0_178] : memref<2x1x128xf32, #tpu.memory_space<vmem>>, vector<1x1x128xf32>
    %325 = vector.shape_cast %324 : vector<1x1x128xf32> to vector<1x128xf32>
    %c1_179 = arith.constant 1 : index
    %c0_180 = arith.constant 0 : index
    %c0_181 = arith.constant 0 : index
    %326 = vector.load %arg11[%c1_179, %c0_180, %c0_181] : memref<2x1x128xf32, #tpu.memory_space<vmem>>, vector<1x1x128xf32>
    %327 = vector.shape_cast %326 : vector<1x1x128xf32> to vector<1x128xf32>
    %cst_182 = arith.constant dense<0.000000e+00> : vector<16xf32>
    %328 = vector.multi_reduction <add>, %323, %cst_182 [1] : vector<16x128xf32> to vector<16xf32>
    %329 = vector.shape_cast %328 : vector<16xf32> to vector<16x1xf32>
    %cst_183 = arith.constant 1.280000e+02 : f32
    %330 = vector.broadcast %cst_183 : f32 to vector<16x1xf32>
    %331 = arith.divf %329, %330 : vector<16x1xf32>
    %332 = vector.broadcast %331 : vector<16x1xf32> to vector<16x128xf32>
    %333 = arith.subf %323, %332 : vector<16x128xf32>
    %334 = vector.broadcast %331 : vector<16x1xf32> to vector<16x128xf32>
    %335 = arith.subf %323, %334 : vector<16x128xf32>
    %336 = arith.mulf %333, %335 : vector<16x128xf32>
    %cst_184 = arith.constant dense<0.000000e+00> : vector<16xf32>
    %337 = vector.multi_reduction <add>, %336, %cst_184 [1] : vector<16x128xf32> to vector<16xf32>
    %338 = vector.shape_cast %337 : vector<16xf32> to vector<16x1xf32>
    %cst_185 = arith.constant 1.280000e+02 : f32
    %339 = vector.broadcast %cst_185 : f32 to vector<16x1xf32>
    %340 = arith.divf %338, %339 : vector<16x1xf32>
    %341 = vector.broadcast %331 : vector<16x1xf32> to vector<16x128xf32>
    %342 = arith.subf %323, %341 : vector<16x128xf32>
    %cst_186 = arith.constant 9.99999974E-6 : f32
    %343 = vector.broadcast %cst_186 : f32 to vector<16x1xf32>
    %344 = arith.addf %340, %343 : vector<16x1xf32>
    %345 = math.rsqrt %344 : vector<16x1xf32>
    %346 = vector.broadcast %345 : vector<16x1xf32> to vector<16x128xf32>
    %347 = arith.mulf %342, %346 : vector<16x128xf32>
    %348 = vector.broadcast %325 : vector<1x128xf32> to vector<16x128xf32>
    %349 = arith.mulf %347, %348 : vector<16x128xf32>
    %350 = vector.broadcast %327 : vector<1x128xf32> to vector<16x128xf32>
    %351 = arith.addf %349, %350 : vector<16x128xf32>
    %352 = arith.truncf %351 : vector<16x128xf32> to vector<16x128xbf16>
    %c1_187 = arith.constant 1 : index
    %c0_188 = arith.constant 0 : index
    %c0_189 = arith.constant 0 : index
    %353 = vector.load %arg12[%c1_187, %c0_188, %c0_189] : memref<2x128x256xbf16, #tpu.memory_space<vmem>>, vector<1x128x256xbf16>
    %354 = vector.shape_cast %353 : vector<1x128x256xbf16> to vector<128x256xbf16>
    %cst_190 = arith.constant dense<0.000000e+00> : vector<16x256xf32>
    %355 = tpu.matmul %352, %354, %cst_190 {dimension_numbers = #tpu.dot_dimension_numbers<[1], [0], [0], [1], [0, 0, 1, 1], [], []>} : vector<16x128xbf16>, vector<128x256xbf16>, vector<16x256xf32> -> vector<16x256xf32>
    %c1_191 = arith.constant 1 : index
    %c0_192 = arith.constant 0 : index
    %c0_193 = arith.constant 0 : index
    %356 = vector.load %arg13[%c1_191, %c0_192, %c0_193] : memref<2x1x256xf32, #tpu.memory_space<vmem>>, vector<1x1x256xf32>
    %357 = vector.shape_cast %356 : vector<1x1x256xf32> to vector<1x256xf32>
    %358 = vector.broadcast %357 : vector<1x256xf32> to vector<16x256xf32>
    %359 = arith.addf %355, %358 : vector<16x256xf32>
    %360 = arith.mulf %359, %359 : vector<16x256xf32>
    %361 = arith.mulf %359, %360 : vector<16x256xf32>
    %cst_194 = arith.constant 4.471500e-02 : f32
    %362 = vector.broadcast %cst_194 : f32 to vector<16x256xf32>
    %363 = arith.mulf %362, %361 : vector<16x256xf32>
    %364 = arith.addf %359, %363 : vector<16x256xf32>
    %cst_195 = arith.constant 0.797884583 : f32
    %365 = vector.broadcast %cst_195 : f32 to vector<16x256xf32>
    %366 = arith.mulf %365, %364 : vector<16x256xf32>
    %367 = math.tanh %366 : vector<16x256xf32>
    %cst_196 = arith.constant 1.000000e+00 : f32
    %368 = vector.broadcast %cst_196 : f32 to vector<16x256xf32>
    %369 = arith.addf %368, %367 : vector<16x256xf32>
    %cst_197 = arith.constant 5.000000e-01 : f32
    %370 = vector.broadcast %cst_197 : f32 to vector<16x256xf32>
    %371 = arith.mulf %370, %369 : vector<16x256xf32>
    %372 = arith.mulf %359, %371 : vector<16x256xf32>
    %373 = arith.truncf %372 : vector<16x256xf32> to vector<16x256xbf16>
    %c1_198 = arith.constant 1 : index
    %c0_199 = arith.constant 0 : index
    %c0_200 = arith.constant 0 : index
    %374 = vector.load %arg14[%c1_198, %c0_199, %c0_200] : memref<2x256x128xbf16, #tpu.memory_space<vmem>>, vector<1x256x128xbf16>
    %375 = vector.shape_cast %374 : vector<1x256x128xbf16> to vector<256x128xbf16>
    %cst_201 = arith.constant dense<0.000000e+00> : vector<16x128xf32>
    %376 = tpu.matmul %373, %375, %cst_201 {dimension_numbers = #tpu.dot_dimension_numbers<[1], [0], [0], [1], [0, 0, 1, 1], [], []>} : vector<16x256xbf16>, vector<256x128xbf16>, vector<16x128xf32> -> vector<16x128xf32>
    %c1_202 = arith.constant 1 : index
    %c0_203 = arith.constant 0 : index
    %c0_204 = arith.constant 0 : index
    %377 = vector.load %arg15[%c1_202, %c0_203, %c0_204] : memref<2x1x128xf32, #tpu.memory_space<vmem>>, vector<1x1x128xf32>
    %378 = vector.shape_cast %377 : vector<1x1x128xf32> to vector<1x128xf32>
    %379 = vector.broadcast %378 : vector<1x128xf32> to vector<16x128xf32>
    %380 = arith.addf %376, %379 : vector<16x128xf32>
    %381 = arith.addf %380, %351 : vector<16x128xf32>
    %c1_205 = arith.constant 1 : index
    %c0_206 = arith.constant 0 : index
    %c0_207 = arith.constant 0 : index
    %382 = vector.load %arg16[%c1_205, %c0_206, %c0_207] : memref<2x1x128xf32, #tpu.memory_space<vmem>>, vector<1x1x128xf32>
    %383 = vector.shape_cast %382 : vector<1x1x128xf32> to vector<1x128xf32>
    %c1_208 = arith.constant 1 : index
    %c0_209 = arith.constant 0 : index
    %c0_210 = arith.constant 0 : index
    %384 = vector.load %arg17[%c1_208, %c0_209, %c0_210] : memref<2x1x128xf32, #tpu.memory_space<vmem>>, vector<1x1x128xf32>
    %385 = vector.shape_cast %384 : vector<1x1x128xf32> to vector<1x128xf32>
    %cst_211 = arith.constant dense<0.000000e+00> : vector<16xf32>
    %386 = vector.multi_reduction <add>, %381, %cst_211 [1] : vector<16x128xf32> to vector<16xf32>
    %387 = vector.shape_cast %386 : vector<16xf32> to vector<16x1xf32>
    %cst_212 = arith.constant 1.280000e+02 : f32
    %388 = vector.broadcast %cst_212 : f32 to vector<16x1xf32>
    %389 = arith.divf %387, %388 : vector<16x1xf32>
    %390 = vector.broadcast %389 : vector<16x1xf32> to vector<16x128xf32>
    %391 = arith.subf %381, %390 : vector<16x128xf32>
    %392 = vector.broadcast %389 : vector<16x1xf32> to vector<16x128xf32>
    %393 = arith.subf %381, %392 : vector<16x128xf32>
    %394 = arith.mulf %391, %393 : vector<16x128xf32>
    %cst_213 = arith.constant dense<0.000000e+00> : vector<16xf32>
    %395 = vector.multi_reduction <add>, %394, %cst_213 [1] : vector<16x128xf32> to vector<16xf32>
    %396 = vector.shape_cast %395 : vector<16xf32> to vector<16x1xf32>
    %cst_214 = arith.constant 1.280000e+02 : f32
    %397 = vector.broadcast %cst_214 : f32 to vector<16x1xf32>
    %398 = arith.divf %396, %397 : vector<16x1xf32>
    %399 = vector.broadcast %389 : vector<16x1xf32> to vector<16x128xf32>
    %400 = arith.subf %381, %399 : vector<16x128xf32>
    %cst_215 = arith.constant 9.99999974E-6 : f32
    %401 = vector.broadcast %cst_215 : f32 to vector<16x1xf32>
    %402 = arith.addf %398, %401 : vector<16x1xf32>
    %403 = math.rsqrt %402 : vector<16x1xf32>
    %404 = vector.broadcast %403 : vector<16x1xf32> to vector<16x128xf32>
    %405 = arith.mulf %400, %404 : vector<16x128xf32>
    %406 = vector.broadcast %383 : vector<1x128xf32> to vector<16x128xf32>
    %407 = arith.mulf %405, %406 : vector<16x128xf32>
    %408 = vector.broadcast %385 : vector<1x128xf32> to vector<16x128xf32>
    %409 = arith.addf %407, %408 : vector<16x128xf32>
    %c0_216 = arith.constant 0 : index
    %c0_217 = arith.constant 0 : index
    %410 = vector.load %arg1[%c0_216, %c0_217] : memref<2x1xi32, #tpu.memory_space<vmem>>, vector<2x1xi32>
    %411 = tpu.iota {dimensions = array<i32: 1>} : vector<2x16xi32>
    %412 = vector.broadcast %410 : vector<2x1xi32> to vector<2x16xi32>
    %413 = arith.cmpi eq, %411, %412 : vector<2x16xi32>
    %414 = arith.extui %413 : vector<2x16xi1> to vector<2x16xi32>
    %415 = arith.sitofp %414 : vector<2x16xi32> to vector<2x16xf32>
    %cst_218 = arith.constant dense<0.000000e+00> : vector<2x128xf32>
    %416 = tpu.matmul %415, %409, %cst_218 {dimension_numbers = #tpu.dot_dimension_numbers<[1], [0], [0], [1], [0, 0, 1, 1], [], []>} : vector<2x16xf32>, vector<16x128xf32>, vector<2x128xf32> -> vector<2x128xf32>
    %417 = arith.truncf %416 : vector<2x128xf32> to vector<2x128xbf16>
    %c0_219 = arith.constant 0 : index
    %c0_220 = arith.constant 0 : index
    %418 = vector.load %arg18[%c0_219, %c0_220] : memref<128x128xbf16, #tpu.memory_space<vmem>>, vector<128x128xbf16>
    %cst_221 = arith.constant dense<0.000000e+00> : vector<2x128xf32>
    %419 = tpu.matmul %417, %418, %cst_221 {dimension_numbers = #tpu.dot_dimension_numbers<[1], [0], [0], [1], [0, 0, 1, 1], [], []>} : vector<2x128xbf16>, vector<128x128xbf16>, vector<2x128xf32> -> vector<2x128xf32>
    %c0_222 = arith.constant 0 : index
    %c0_223 = arith.constant 0 : index
    %420 = vector.load %arg19[%c0_222, %c0_223] : memref<1x128xf32, #tpu.memory_space<vmem>>, vector<1x128xf32>
    %421 = vector.broadcast %420 : vector<1x128xf32> to vector<2x128xf32>
    %422 = arith.addf %419, %421 : vector<2x128xf32>
    %423 = arith.mulf %422, %422 : vector<2x128xf32>
    %424 = arith.mulf %422, %423 : vector<2x128xf32>
    %cst_224 = arith.constant 4.471500e-02 : f32
    %425 = vector.broadcast %cst_224 : f32 to vector<2x128xf32>
    %426 = arith.mulf %425, %424 : vector<2x128xf32>
    %427 = arith.addf %422, %426 : vector<2x128xf32>
    %cst_225 = arith.constant 0.797884583 : f32
    %428 = vector.broadcast %cst_225 : f32 to vector<2x128xf32>
    %429 = arith.mulf %428, %427 : vector<2x128xf32>
    %430 = math.tanh %429 : vector<2x128xf32>
    %cst_226 = arith.constant 1.000000e+00 : f32
    %431 = vector.broadcast %cst_226 : f32 to vector<2x128xf32>
    %432 = arith.addf %431, %430 : vector<2x128xf32>
    %cst_227 = arith.constant 5.000000e-01 : f32
    %433 = vector.broadcast %cst_227 : f32 to vector<2x128xf32>
    %434 = arith.mulf %433, %432 : vector<2x128xf32>
    %435 = arith.mulf %422, %434 : vector<2x128xf32>
    %c0_228 = arith.constant 0 : index
    %c0_229 = arith.constant 0 : index
    %436 = vector.load %arg20[%c0_228, %c0_229] : memref<1x128xf32, #tpu.memory_space<vmem>>, vector<1x128xf32>
    %c0_230 = arith.constant 0 : index
    %c0_231 = arith.constant 0 : index
    %437 = vector.load %arg21[%c0_230, %c0_231] : memref<1x128xf32, #tpu.memory_space<vmem>>, vector<1x128xf32>
    %cst_232 = arith.constant dense<0.000000e+00> : vector<2xf32>
    %438 = vector.multi_reduction <add>, %435, %cst_232 [1] : vector<2x128xf32> to vector<2xf32>
    %439 = vector.shape_cast %438 : vector<2xf32> to vector<2x1xf32>
    %cst_233 = arith.constant 1.280000e+02 : f32
    %440 = vector.broadcast %cst_233 : f32 to vector<2x1xf32>
    %441 = arith.divf %439, %440 : vector<2x1xf32>
    %442 = vector.broadcast %441 : vector<2x1xf32> to vector<2x128xf32>
    %443 = arith.subf %435, %442 : vector<2x128xf32>
    %444 = vector.broadcast %441 : vector<2x1xf32> to vector<2x128xf32>
    %445 = arith.subf %435, %444 : vector<2x128xf32>
    %446 = arith.mulf %443, %445 : vector<2x128xf32>
    %cst_234 = arith.constant dense<0.000000e+00> : vector<2xf32>
    %447 = vector.multi_reduction <add>, %446, %cst_234 [1] : vector<2x128xf32> to vector<2xf32>
    %448 = vector.shape_cast %447 : vector<2xf32> to vector<2x1xf32>
    %cst_235 = arith.constant 1.280000e+02 : f32
    %449 = vector.broadcast %cst_235 : f32 to vector<2x1xf32>
    %450 = arith.divf %448, %449 : vector<2x1xf32>
    %451 = vector.broadcast %441 : vector<2x1xf32> to vector<2x128xf32>
    %452 = arith.subf %435, %451 : vector<2x128xf32>
    %cst_236 = arith.constant 9.99999974E-6 : f32
    %453 = vector.broadcast %cst_236 : f32 to vector<2x1xf32>
    %454 = arith.addf %450, %453 : vector<2x1xf32>
    %455 = math.rsqrt %454 : vector<2x1xf32>
    %456 = vector.broadcast %455 : vector<2x1xf32> to vector<2x128xf32>
    %457 = arith.mulf %452, %456 : vector<2x128xf32>
    %458 = vector.broadcast %436 : vector<1x128xf32> to vector<2x128xf32>
    %459 = arith.mulf %457, %458 : vector<2x128xf32>
    %460 = vector.broadcast %437 : vector<1x128xf32> to vector<2x128xf32>
    %461 = arith.addf %459, %460 : vector<2x128xf32>
    %462 = arith.truncf %461 : vector<2x128xf32> to vector<2x128xbf16>
    %c0_237 = arith.constant 0 : index
    %c0_238 = arith.constant 0 : index
    %463 = vector.load %arg22[%c0_237, %c0_238] : memref<128x128xbf16, #tpu.memory_space<vmem>>, vector<128x128xbf16>
    %cst_239 = arith.constant dense<0.000000e+00> : vector<2x128xf32>
    %464 = tpu.matmul %462, %463, %cst_239 {dimension_numbers = #tpu.dot_dimension_numbers<[1], [0], [0], [1], [0, 0, 1, 1], [], []>} : vector<2x128xbf16>, vector<128x128xbf16>, vector<2x128xf32> -> vector<2x128xf32>
    %c0_240 = arith.constant 0 : index
    %c0_241 = arith.constant 0 : index
    %465 = vector.load %arg23[%c0_240, %c0_241] : memref<1x128xf32, #tpu.memory_space<vmem>>, vector<1x128xf32>
    %466 = vector.broadcast %465 : vector<1x128xf32> to vector<2x128xf32>
    %467 = arith.addf %464, %466 : vector<2x128xf32>
    %468 = tpu.iota {dimensions = array<i32: 1>} : vector<2x128xi32>
    %469 = tpu.iota {dimensions = array<i32: 1>} : vector<2x128xi32>
    %cst_242 = arith.constant 0.000000e+00 : f32
    %470 = vector.broadcast %cst_242 : f32 to vector<2x128xf32>
    %c0_i32 = arith.constant 0 : i32
    %471 = vector.broadcast %c0_i32 : i32 to vector<2x128xi32>
    %cst_243 = arith.constant dense<0xFF800000> : vector<2xf32>
    %472 = vector.multi_reduction <maximumf>, %467, %cst_243 [1] : vector<2x128xf32> to vector<2xf32>
    %473 = vector.shape_cast %472 : vector<2xf32> to vector<2x1xf32>
    %474 = vector.broadcast %473 : vector<2x1xf32> to vector<2x128xf32>
    %475 = arith.cmpf oeq, %467, %474 : vector<2x128xf32>
    %c128_i32 = arith.constant 128 : i32
    %476 = vector.broadcast %c128_i32 : i32 to vector<2x128xi32>
    %477 = arith.select %475, %468, %476 : vector<2x128xi1>, vector<2x128xi32>
    %cst_244 = arith.constant dense<2147483647> : vector<2xi32>
    %478 = vector.multi_reduction <minsi>, %477, %cst_244 [1] : vector<2x128xi32> to vector<2xi32>
    %479 = vector.shape_cast %478 : vector<2xi32> to vector<2x1xi32>
    %c0_i32_245 = arith.constant 0 : i32
    %480 = vector.broadcast %c0_i32_245 : i32 to vector<2x128xi32>
    %481 = arith.cmpi eq, %469, %480 : vector<2x128xi32>
    %482 = vector.shape_cast %473 : vector<2x1xf32> to vector<2x1xf32>
    %483 = vector.broadcast %482 : vector<2x1xf32> to vector<2x128xf32>
    %484 = arith.select %481, %483, %470 : vector<2x128xi1>, vector<2x128xf32>
    %c0_i32_246 = arith.constant 0 : i32
    %485 = vector.broadcast %c0_i32_246 : i32 to vector<2x128xi32>
    %486 = arith.cmpi eq, %469, %485 : vector<2x128xi32>
    %487 = vector.shape_cast %479 : vector<2x1xi32> to vector<2x1xi32>
    %488 = vector.broadcast %487 : vector<2x1xi32> to vector<2x128xi32>
    %489 = arith.select %486, %488, %471 : vector<2x128xi1>, vector<2x128xi32>
    %490 = vector.broadcast %479 : vector<2x1xi32> to vector<2x128xi32>
    %491 = arith.cmpi eq, %468, %490 : vector<2x128xi32>
    %cst_247 = arith.constant 0xFF800000 : f32
    %492 = vector.broadcast %cst_247 : f32 to vector<2x128xf32>
    %493 = arith.select %491, %492, %467 : vector<2x128xi1>, vector<2x128xf32>
    %cst_248 = arith.constant dense<0xFF800000> : vector<2xf32>
    %494 = vector.multi_reduction <maximumf>, %493, %cst_248 [1] : vector<2x128xf32> to vector<2xf32>
    %495 = vector.shape_cast %494 : vector<2xf32> to vector<2x1xf32>
    %496 = vector.broadcast %495 : vector<2x1xf32> to vector<2x128xf32>
    %497 = arith.cmpf oeq, %493, %496 : vector<2x128xf32>
    %c128_i32_249 = arith.constant 128 : i32
    %498 = vector.broadcast %c128_i32_249 : i32 to vector<2x128xi32>
    %499 = arith.select %497, %468, %498 : vector<2x128xi1>, vector<2x128xi32>
    %cst_250 = arith.constant dense<2147483647> : vector<2xi32>
    %500 = vector.multi_reduction <minsi>, %499, %cst_250 [1] : vector<2x128xi32> to vector<2xi32>
    %501 = vector.shape_cast %500 : vector<2xi32> to vector<2x1xi32>
    %c1_i32 = arith.constant 1 : i32
    %502 = vector.broadcast %c1_i32 : i32 to vector<2x128xi32>
    %503 = arith.cmpi eq, %469, %502 : vector<2x128xi32>
    %504 = vector.shape_cast %495 : vector<2x1xf32> to vector<2x1xf32>
    %505 = vector.broadcast %504 : vector<2x1xf32> to vector<2x128xf32>
    %506 = arith.select %503, %505, %484 : vector<2x128xi1>, vector<2x128xf32>
    %c1_i32_251 = arith.constant 1 : i32
    %507 = vector.broadcast %c1_i32_251 : i32 to vector<2x128xi32>
    %508 = arith.cmpi eq, %469, %507 : vector<2x128xi32>
    %509 = vector.shape_cast %501 : vector<2x1xi32> to vector<2x1xi32>
    %510 = vector.broadcast %509 : vector<2x1xi32> to vector<2x128xi32>
    %511 = arith.select %508, %510, %489 : vector<2x128xi1>, vector<2x128xi32>
    %512 = vector.broadcast %501 : vector<2x1xi32> to vector<2x128xi32>
    %513 = arith.cmpi eq, %468, %512 : vector<2x128xi32>
    %cst_252 = arith.constant 0xFF800000 : f32
    %514 = vector.broadcast %cst_252 : f32 to vector<2x128xf32>
    %515 = arith.select %513, %514, %493 : vector<2x128xi1>, vector<2x128xf32>
    %cst_253 = arith.constant dense<0xFF800000> : vector<2xf32>
    %516 = vector.multi_reduction <maximumf>, %515, %cst_253 [1] : vector<2x128xf32> to vector<2xf32>
    %517 = vector.shape_cast %516 : vector<2xf32> to vector<2x1xf32>
    %518 = vector.broadcast %517 : vector<2x1xf32> to vector<2x128xf32>
    %519 = arith.cmpf oeq, %515, %518 : vector<2x128xf32>
    %c128_i32_254 = arith.constant 128 : i32
    %520 = vector.broadcast %c128_i32_254 : i32 to vector<2x128xi32>
    %521 = arith.select %519, %468, %520 : vector<2x128xi1>, vector<2x128xi32>
    %cst_255 = arith.constant dense<2147483647> : vector<2xi32>
    %522 = vector.multi_reduction <minsi>, %521, %cst_255 [1] : vector<2x128xi32> to vector<2xi32>
    %523 = vector.shape_cast %522 : vector<2xi32> to vector<2x1xi32>
    %c2_i32 = arith.constant 2 : i32
    %524 = vector.broadcast %c2_i32 : i32 to vector<2x128xi32>
    %525 = arith.cmpi eq, %469, %524 : vector<2x128xi32>
    %526 = vector.shape_cast %517 : vector<2x1xf32> to vector<2x1xf32>
    %527 = vector.broadcast %526 : vector<2x1xf32> to vector<2x128xf32>
    %528 = arith.select %525, %527, %506 : vector<2x128xi1>, vector<2x128xf32>
    %c2_i32_256 = arith.constant 2 : i32
    %529 = vector.broadcast %c2_i32_256 : i32 to vector<2x128xi32>
    %530 = arith.cmpi eq, %469, %529 : vector<2x128xi32>
    %531 = vector.shape_cast %523 : vector<2x1xi32> to vector<2x1xi32>
    %532 = vector.broadcast %531 : vector<2x1xi32> to vector<2x128xi32>
    %533 = arith.select %530, %532, %511 : vector<2x128xi1>, vector<2x128xi32>
    %c0_257 = arith.constant 0 : index
    %c0_258 = arith.constant 0 : index
    %534 = vector.load %arg24[%c0_257, %c0_258] : memref<2x128xf32, #tpu.memory_space<vmem>>, vector<2x128xf32>
    tpu.vector_store %arg24[%c0_257, %c0_258], %528 {strides = array<i32>} : memref<2x128xf32, #tpu.memory_space<vmem>>, vector<2x128xf32>,
    %c0_259 = arith.constant 0 : index
    %c0_260 = arith.constant 0 : index
    %535 = vector.load %arg25[%c0_259, %c0_260] : memref<2x128xi32, #tpu.memory_space<vmem>>, vector<2x128xi32>
    tpu.vector_store %arg25[%c0_259, %c0_260], %533 {strides = array<i32>} : memref<2x128xi32, #tpu.memory_space<vmem>>, vector<2x128xi32>,
    return
  }
}

</mosaic_0001>

<bundles_post_ra>
// kernel: forward.1
= control target key start
LH: loop header
LB: loop body
LE: loop exit
PB: predicated region body
PF: predicated region fallthrough
CT: control target
= control target key end

     0   :  { %s6502_s0 = inlined_call_operand.vmem [shape: s32[16,1], index: 0, kind: input, shape index: {}]   ;;  %s6503_s1 = inlined_call_operand.vmem [shape: s32[2,1], index: 1, kind: input, shape index: {}]   ;;  %s6504_s2 = inlined_call_operand.vmem [shape: f32[128,128], index: 2, kind: input, shape index: {}]   ;;  %s6505_s3 = inlined_call_operand.vmem [shape: f32[8,128], index: 3, kind: input, shape index: {}]   ;;  %s6506_s4 = inlined_call_operand.vmem [shape: f32[1,128], index: 4, kind: input, shape index: {}]   ;;  %s6507_s5 = inlined_call_operand.vmem [shape: f32[1,128], index: 5, kind: input, shape index: {}]   ;;  %s6508_s6 = inlined_call_operand.vmem [shape: bf16[12,128,64], index: 6, kind: input, shape index: {}]   ;;  %s6509_s7 = inlined_call_operand.vmem [shape: f32[12,1,64], index: 7, kind: input, shape index: {}]   ;;  %s6510_s8 = inlined_call_operand.vmem [shape: bf16[4,64,128], index: 8, kind: input, shape index: {}]   ;;  %s6511_s9 = inlined_call_operand.vmem [shape: f32[2,1,128], index: 9, kind: input, shape index: {}]   ;;  %s6512_s10 = inlined_call_operand.vmem [shape: f32[2,1,128], index: 10, kind: input, shape index: {}]   ;;  %s6513_s11 = inlined_call_operand.vmem [shape: f32[2,1,128], index: 11, kind: input, shape index: {}]   ;;  %s6514_s12 = inlined_call_operand.vmem [shape: bf16[2,128,256], index: 12, kind: input, shape index: {}]   ;;  %s6515_s13 = inlined_call_operand.vmem [shape: f32[2,1,256], index: 13, kind: input, shape index: {}]   ;;  %s6516_s14 = inlined_call_operand.vmem [shape: bf16[2,256,128], index: 14, kind: input, shape index: {}]   ;;  %s6517_s15 = inlined_call_operand.vmem [shape: f32[2,1,128], index: 15, kind: input, shape index: {}]   ;;  %s6518_s16 = inlined_call_operand.vmem [shape: f32[2,1,128], index: 16, kind: input, shape index: {}]   ;;  %s6519_s17 = inlined_call_operand.vmem [shape: f32[2,1,128], index: 17, kind: input, shape index: {}]   ;;  %s6520_s18 = inlined_call_operand.vmem [shape: bf16[128,128], index: 18, kind: input, shape index: {}]   ;;  %s6521_s19 = inlined_call_operand.vmem [shape: f32[1,128], index: 19, kind: input, shape index: {}]   ;;  %s6522_s20 = inlined_call_operand.vmem [shape: f32[1,128], index: 20, kind: input, shape index: {}]   ;;  %s6523_s21 = inlined_call_operand.vmem [shape: f32[1,128], index: 21, kind: input, shape index: {}]   ;;  %s6524_s22 = inlined_call_operand.vmem [shape: bf16[128,128], index: 22, kind: input, shape index: {}]   ;;  %s6525_s23 = inlined_call_operand.vmem [shape: f32[1,128], index: 23, kind: input, shape index: {}]   ;;  %s6526_s24 = inlined_call_operand.hbm [shape: f32[2,128], index: 24, kind: output, shape index: {0}]   ;;  %s6527_s25 = inlined_call_operand.hbm [shape: s32[2,128], index: 25, kind: output, shape index: {1}]  }
   0x1   :  { %6534 = sst [smem:[#allocation8_spill]] %s6502_s0 }
   0x2   :  { %6535 = sst [smem:[#allocation9_spill]] %s6503_s1 }
   0x3   :  { %6536 = sst [smem:[#allocation10_spill]] %s6504_s2 }
   0x4   :  { %6537 = sst [smem:[#allocation11_spill]] %s6505_s3 }
   0x5   :  { %6538 = sst [smem:[#allocation12_spill]] %s6506_s4 }
   0x6   :  { %6539 = sst [smem:[#allocation13_spill]] %s6507_s5 }
   0x7   :  { %6540 = sst [smem:[#allocation14_spill]] %s6508_s6 }
   0x8   :  { %6541 = sst [smem:[#allocation15_spill]] %s6509_s7 }
   0x9   :  { %6542 = sst [smem:[#allocation16_spill]] %s6510_s8 }
   0xa   :  { %6543 = sst [smem:[#allocation17_spill]] %s6511_s9 }
   0xb   :  { %31 = vsyncpa [#allocation3], 0  ;;  %s6544_s6 = sld [smem:[#allocation8_spill]]  ;;  %v5260_v2 = vmov 0   ;;  %v84_v19 = vlaneseq }
   0xc   :  { %s6545_s3 = sld [smem:[#allocation10_spill]]  ;;  %4934 = vset.pattern.permute.xlu0 %v5260_v2  ;;  %4935 = vset.pattern.permute.xlu1 %v5260_v2 }
   0xd   :  { %v5453_v20 = vand.u32 127, %v84_v19 }
  0x11   :  { %v82_v0 = vld [vmem:[%s6544_s6] sm:$0xff]  ;;  %v83_v5 = vld [vmem:[%s6544_s6 + $0x8] sm:$0xff] }
  0x12   :  { %v113_v1 = vld [vmem:[%s6545_s3 + $0x78] sm:$0xff]  ;;  %v112_v3 = vld [vmem:[%s6545_s3 + $0x70] sm:$0xff]  ;;  %87 = vperm.xlu0 %4934, %v82_v0   ;;  %v111_v4 = vld [vmem:[%s6545_s3 + $0x68] sm:$0xff] }
  0x13   :  { %4510 = vmatprep.subr.mxu0 %v113_v1  ;;  %v110_v6 = vld [vmem:[%s6545_s3 + $0x60] sm:$0xff]  ;;  %v109_v7 = vld [vmem:[%s6545_s3 + $0x58] sm:$0xff]  ;;  %v108_v8 = vld [vmem:[%s6545_s3 + $0x50] sm:$0xff] }
  0x14   :  { %4511 = vmatpush3.msra.mxu0 %v113_v1  ;;  %v107_v9 = vld [vmem:[%s6545_s3 + $0x48] sm:$0xff]  ;;  %v106_v10 = vld [vmem:[%s6545_s3 + $0x40] sm:$0xff]  ;;  %v105_v11 = vld [vmem:[%s6545_s3 + $0x38] sm:$0xff] }
  0x15   :  { %4512 = vmatprep.subr.mxu0 %v112_v3  ;;  %v104_v12 = vld [vmem:[%s6545_s3 + $0x30] sm:$0xff]  ;;  %v103_v13 = vld [vmem:[%s6545_s3 + $0x28] sm:$0xff]  ;;  %v102_v14 = vld [vmem:[%s6545_s3 + $0x20] sm:$0xff] }
  0x16   :  { %4513 = vmatpush3.msra.mxu0 %v112_v3  ;;  %90 = vperm.xlu0 %4934, %v83_v5   ;;  %v101_v15 = vld [vmem:[%s6545_s3 + $0x18] sm:$0xff]  ;;  %v100_v16 = vld [vmem:[%s6545_s3 + $0x10] sm:$0xff]  ;;  %v99_v17 = vld [vmem:[%s6545_s3 + $0x8] sm:$0xff] }
  0x17   :  { %4514 = vmatprep.subr.mxu0 %v111_v4  ;;  %v98_v18 = vld [vmem:[%s6545_s3] sm:$0xff] }
  0x18   :  { %4515 = vmatpush3.msra.mxu0 %v111_v4 }
  0x19   :  { %4516 = vmatprep.subr.mxu0 %v110_v6 }
  0x1a   :  { %4517 = vmatpush3.msra.mxu0 %v110_v6 }
  0x1b   :  { %4518 = vmatprep.subr.mxu0 %v109_v7 }
  0x1c   :  { %4519 = vmatpush3.msra.mxu0 %v109_v7 }
  0x1d   :  { %4520 = vmatprep.subr.mxu0 %v108_v8 }
  0x1e   :  { %4521 = vmatpush3.msra.mxu0 %v108_v8 }
  0x1f   :  { %4522 = vmatprep.subr.mxu0 %v107_v9 }
  0x20   :  { %4523 = vmatpush3.msra.mxu0 %v107_v9 }
  0x21   :  { %4524 = vmatprep.subr.mxu0 %v106_v10 }
  0x22   :  { %4525 = vmatpush3.msra.mxu0 %v106_v10 }
  0x23   :  { %4526 = vmatprep.subr.mxu0 %v105_v11 }
  0x24   :  { %4527 = vmatpush3.msra.mxu0 %v105_v11 }
  0x25   :  { %4528 = vmatprep.subr.mxu0 %v104_v12 }
  0x26   :  { %4529 = vmatpush3.msra.mxu0 %v104_v12 }
  0x27   :  { %4530 = vmatprep.subr.mxu0 %v103_v13 }
  0x28   :  { %4531 = vmatpush3.msra.mxu0 %v103_v13 }
  0x29   :  { %4532 = vmatprep.subr.mxu0 %v102_v14 }
  0x2a   :  { %4533 = vmatpush3.msra.mxu0 %v102_v14 }
  0x2b   :  { %4534 = vmatprep.subr.mxu0 %v101_v15 }
  0x2c   :  { %4535 = vmatpush3.msra.mxu0 %v101_v15 }
  0x2d   :  { %4536 = vmatprep.subr.mxu0 %v100_v16 }
  0x2e   :  { %4537 = vmatpush3.msra.mxu0 %v100_v16 }
  0x2f   :  { %4538 = vmatprep.subr.mxu0 %v99_v17 }
  0x30   :  { %4539 = vmatpush3.msra.mxu0 %v99_v17 }
  0x31   :  { %4540 = vmatprep.subr.mxu0 %v98_v18 }
  0x32   :  { %4541 = vmatpush3.msra.mxu0 %v98_v18 }
  0x33   :  { %32 = vsyncpa [#allocation5], 0  ;;  %v5261_v22 = vmov 1.0   ;;  %s6546_s28 = sld [smem:[#allocation11_spill]]  ;;  %v5262_v31 = vmov 0.0   ;;  %vm5263_vm2 = vmmov 0  }
  0x34   :  { %s6547_s0 = sld [smem:[#allocation14_spill]]  ;;  %4545 = vmatprep.subr.bf16.mxu1 %v5262_v31  ;;  %4565 = vmatprep.subr.bf16.mxu0 %v5262_v31  ;;  %vm582_vm3 = vcmask 523264   ;;  %vm634_vm5 = vcmask 130048   ;;  %vm3534_vm8 = vcmask 1041408   ;;  %vm3694_vm14 = vcmp.eq.s32.totalorder %v5453_v20, 0 }
  0x35   :  { %4561 = vmatprep.mubr.msk.bf16.mxu1 %vm5263_vm2, %v5262_v31  ;;  %s6548_s7 = sld [smem:[#allocation12_spill]]  ;;  %vm3719_vm15 = vcmp.eq.s32.totalorder %v5453_v20, 1 }
  0x36   :  { %s6549_s8 = sld [smem:[#allocation13_spill]] }
  0x37   :  { %s6550_s9 = sld [smem:[#allocation15_spill]] }
  0x38   :  { %s6555_s30 = sld [smem:[#allocation16_spill]] }
  0x39   :  { %v114_v25 = vld [vmem:[%s6546_s28] sm:$0xff]  ;;  %s6556_s29 = sld [smem:[#allocation17_spill]] }
  0x3a   :  { %v4936_v29 = vld [vmem:[%s6547_s0 + $0x38] sm:$0xff]   ;;  %v4938_v40 = vld [vmem:[%s6547_s0 + $0x30] sm:$0xff]   ;;  %v4940_v42 = vld [vmem:[%s6547_s0 + $0x28] sm:$0xff]   ;;  %s6557_s26 = sld [smem:[#allocation9_spill]] }
  0x3b   :  { %v4937_v30 = vld [vmem:[%s6547_s0 + $0xb8] sm:$0xff]   ;;  %4546 = vmatpush3.bf16.msra.mxu1 %v4936_v29  ;;  %v4939_v41 = vld [vmem:[%s6547_s0 + $0xb0] sm:$0xff]   ;;  %v4941_v43 = vld [vmem:[%s6547_s0 + $0xa8] sm:$0xff]  }
  0x3c   :  { %4547 = vmatprep.subr.bf16.mxu1 %v5262_v31  ;;  %v4942_v44 = vld [vmem:[%s6547_s0 + $0x20] sm:$0xff]   ;;  %v4944_v46 = vld [vmem:[%s6547_s0 + $0x18] sm:$0xff]   ;;  %v4946_v48 = vld [vmem:[%s6547_s0 + $0x10] sm:$0xff]  }
  0x3d   :  { %v4943_v45 = vld [vmem:[%s6547_s0 + $0xa0] sm:$0xff]   ;;  %v4945_v47 = vld [vmem:[%s6547_s0 + $0x98] sm:$0xff]   ;;  %v4947_v49 = vld [vmem:[%s6547_s0 + $0x90] sm:$0xff]  }
  0x3e   :  { %v4948_v50 = vld [vmem:[%s6547_s0 + $0x8] sm:$0xff]   ;;  %v4950_v52 = vld [vmem:[%s6547_s0] sm:$0xff]   ;;  %v4952_v7 = vld [vmem:[%s6547_s0 + $0x138] sm:$0xff]  }
  0x3f   :  { %4548 = vmatpush3.bf16.msra.mxu1 %v4938_v40  ;;  %v4949_v51 = vld [vmem:[%s6547_s0 + $0x88] sm:$0xff]   ;;  %v4951_v53 = vld [vmem:[%s6547_s0 + $0x80] sm:$0xff]   ;;  %v4953_v9 = vld [vmem:[%s6547_s0 + $0x130] sm:$0xff]  }
  0x40   :  { %4549 = vmatprep.subr.bf16.mxu1 %v5262_v31  ;;  %v3781_v62 = vld [vmem:[%s6548_s7] ss:$0 sm:$0xff]  ;;  %v4954_v10 = vld [vmem:[%s6547_s0 + $0x128] sm:$0xff]   ;;  %v4956_v12 = vld [vmem:[%s6547_s0 + $0x118] sm:$0xff]  }
  0x41   :  { %v3782_v3 = vld [vmem:[%s6549_s8] ss:$0 sm:$0xff]  ;;  %v4957_v13 = vld [vmem:[%s6547_s0 + $0x110] sm:$0xff]   ;;  %v4958_v14 = vld [vmem:[%s6547_s0 + $0x108] sm:$0xff]  }
  0x42   :  { %v4955_v11 = vld [vmem:[%s6547_s0 + $0x120] sm:$0xff]   ;;  %v4964_v40 = vld [vmem:[%s6547_s0 + $0x58] sm:$0xff]  }
  0x43   :  { %4550 = vmatpush3.bf16.msra.mxu1 %v4940_v42  ;;  %v4959_v15 = vld [vmem:[%s6547_s0 + $0x100] sm:$0xff]  }
  0x44   :  { %4551 = vmatprep.subr.bf16.mxu1 %v5262_v31  ;;  %v3809_v18 = vld [vmem:[%s6550_s9 + $0x2] ss:$0 sm:$0xff]  ;;  %v3835_v42 = vld [vmem:[%s6550_s9 + $0x4] ss:$0 sm:$0xff] }
  0x47   :  { %4552 = vmatpush3.bf16.msra.mxu1 %v4942_v44  ;;  %v4965_v44 = vld [vmem:[%s6547_s0 + $0x50] sm:$0xff]  }
  0x48   :  { %4553 = vmatprep.subr.bf16.mxu1 %v5262_v31 }
  0x4b   :  { %4554 = vmatpush3.bf16.msra.mxu1 %v4944_v46 }
  0x4c   :  { %4555 = vmatprep.subr.bf16.mxu1 %v5262_v31 }
  0x4f   :  { %4556 = vmatpush3.bf16.msra.mxu1 %v4946_v48 }
  0x50   :  { %4557 = vmatprep.subr.bf16.mxu1 %v5262_v31 }
  0x53   :  { %4558 = vmatpush3.bf16.msra.mxu1 %v4948_v50 }
  0x54   :  { %4559 = vmatprep.subr.bf16.mxu1 %v5262_v31 }
  0x57   :  { %4560 = vmatpush3.bf16.msra.mxu1 %v4950_v52  ;;  %v4968_v52 = vld [vmem:[%s6547_s0 + $0x178] sm:$0xff]  }
  0x58   :  { %4585 = vmatprep.subr.bf16.mxu1 %v5262_v31 }
  0x8d   :  { %v88_v21 = vpop.permute.xlu0 %87 }
  0x8e   :  { %vm92_vm0 = vcmp.eq.s32.totalorder %v5453_v20, %v88_v21 }
  0x8f   :  { %4542 = vmatprep.mubr.msk.f32.mxu0 %vm92_vm0, %v5261_v22 }
  0x91   :  { %v91_v23 = vpop.permute.xlu0 %90 }
  0x92   :  { %vm93_vm1 = vcmp.eq.s32.totalorder %v5453_v20, %v91_v23 }
  0x93   :  { %4543 = vmatmul.mubr.msk.f32.vlgmr.msra.gmra.mxu0 %vm93_vm1, %v5261_v22  ;;  %vm3744_vm1 = vcmp.eq.s32.totalorder %v5453_v20, 2 }
  0x94   :  { %4566 = vmatpush3.bf16.msra.mxu0 %v4937_v30  ;;  %4581 = vmatprep.mubr.msk.bf16.mxu0 %vm5263_vm2, %v5262_v31 }
  0x95   :  { %4567 = vmatprep.subr.bf16.mxu0 %v5262_v31 }
  0x98   :  { %4568 = vmatpush3.bf16.msra.mxu0 %v4939_v41 }
  0x99   :  { %4569 = vmatprep.subr.bf16.mxu0 %v5262_v31 }
  0x9c   :  { %4570 = vmatpush3.bf16.msra.mxu0 %v4941_v43 }
  0x9d   :  { %4571 = vmatprep.subr.bf16.mxu0 %v5262_v31 }
  0xa0   :  { %4572 = vmatpush3.bf16.msra.mxu0 %v4943_v45 }
  0xa1   :  { %4573 = vmatprep.subr.bf16.mxu0 %v5262_v31 }
  0xa4   :  { %4574 = vmatpush3.bf16.msra.mxu0 %v4945_v47 }
  0xa5   :  { %4575 = vmatprep.subr.bf16.mxu0 %v5262_v31 }
  0xa8   :  { %4576 = vmatpush3.bf16.msra.mxu0 %v4947_v49  ;;  %v4966_v49 = vld [vmem:[%s6547_s0 + $0x48] sm:$0xff]  }
  0xa9   :  { %4577 = vmatprep.subr.bf16.mxu0 %v5262_v31 }
  0xac   :  { %4578 = vmatpush3.bf16.msra.mxu0 %v4949_v51  ;;  %v4967_v51 = vld [vmem:[%s6547_s0 + $0x40] sm:$0xff]  }
  0xad   :  { %4579 = vmatprep.subr.bf16.mxu0 %v5262_v31 }
  0xb0   :  { %4580 = vmatpush3.bf16.msra.mxu0 %v4951_v53  ;;  %v4969_v53 = vld [vmem:[%s6547_s0 + $0x170] sm:$0xff]  }
  0xb1   :  { %4605 = vmatprep.subr.bf16.mxu0 %v5262_v31 }
 0x153   :  { %v4544_v24 = vpop.f32.mrf.mxu0 }
 0x154   :  { %v187_v28 = vadd.f32 %v4544_v24, %v114_v25 }
 0x155   :  { %v181_v26 = vpop.f32.mrf.mxu0 }
 0x156   :  { %v182_v27 = vadd.f32 %v181_v26, %v114_v25 }
 0x158   :  { %192 = vadd.xlane.f32.xlu1 %v182_v27 }
 0x15c   :  { %194 = vadd.xlane.f32.xlu1 %v187_v28 }
 0x1e1   :  { %v193_v32 = vpop.xlane.xlu1 %192 }
 0x1e2   :  { %v197_v33 = vmul.f32 0.0078125, %v193_v32  ;;  %v3783_v32 = vld [vmem:[%s6550_s9] ss:$0 sm:$0xff] }
 0x1e4   :  { %v199_v34 = vsub.f32 %v182_v27, %v197_v33 }
 0x1e5   :  { %v195_v35 = vpop.xlane.xlu1 %194 }
 0x1e6   :  { %v198_v36 = vmul.f32 0.0078125, %v195_v35  ;;  %v201_v37 = vmul.f32 %v199_v34, %v199_v34  ;;  %v4960_v35 = vld [vmem:[%s6547_s0 + $0x78] sm:$0xff]  }
 0x1e8   :  { %v200_v38 = vsub.f32 %v187_v28, %v198_v36  ;;  %203 = vadd.xlane.f32.xlu0 %v201_v37  ;;  %v4961_v37 = vld [vmem:[%s6547_s0 + $0x70] sm:$0xff]  }
 0x1ea   :  { %v202_v39 = vmul.f32 %v200_v38, %v200_v38 }
 0x1ec   :  { %205 = vadd.xlane.f32.xlu1 %v202_v39  ;;  %v4963_v39 = vld [vmem:[%s6547_s0 + $0x60] sm:$0xff]  }
 0x271   :  { %v204_v54 = vpop.xlane.xlu0 %203 }
 0x272   :  { %v207_v55 = vmul.f32 0.0078125, %v204_v54  ;;  %v4970_v54 = vld [vmem:[%s6547_s0 + $0x168] sm:$0xff]  }
 0x274   :  { %v209_v56 = vadd.f32 1e-05, %v207_v55  ;;  %v4971_v55 = vld [vmem:[%s6547_s0 + $0x160] sm:$0xff]  }
 0x275   :  { %v206_v57 = vpop.xlane.xlu1 %205 }
 0x276   :  { %5144 = vrsqrt.f32 %v209_v56  ;;  %v208_v58 = vmul.f32 0.0078125, %v206_v57  ;;  %v4972_v56 = vld [vmem:[%s6547_s0 + $0x158] sm:$0xff]   ;;  %v4973_v57 = vld [vmem:[%s6547_s0 + $0x150] sm:$0xff]  }
 0x278   :  { %v210_v59 = vadd.f32 1e-05, %v208_v58  ;;  %v4974_v58 = vld [vmem:[%s6547_s0 + $0x148] sm:$0xff]  }
 0x27a   :  { %5146 = vrsqrt.f32 %v210_v59  ;;  %v4975_v59 = vld [vmem:[%s6547_s0 + $0x140] sm:$0xff]  }
 0x283   :  { %v5145_v60 = vpop.eup %5144 }
 0x284   :  { %v213_v61 = vmul.f32 %v5145_v60, %v199_v34  ;;  %v5671_v60 = vshrl.u32 %v84_v19, 7 }
 0x286   :  { %v221_v0 = vmul.f32 %v3781_v62, %v213_v61  ;;  %v234_v61 = vshra.s32 %v5671_v60, 3 }
 0x287   :  { %v5147_v63 = vpop.eup %5146 }
 0x288   :  { %v214_v1 = vmul.f32 %v5147_v63, %v200_v38  ;;  %v5536_v5 = vadd.f32 %v3782_v3, %v221_v0  ;;  %v4962_v38 = vld [vmem:[%s6547_s0 + $0x68] sm:$0xff]   ;;  %v233_v63 = vadd.s32 8, %v5671_v60 }
 0x28a   :  { %v222_v4 = vmul.f32 %v3781_v62, %v214_v1  ;;  %v236_v62 = vshra.s32 %v5453_v20, 3 }
 0x28c   :  { %v5538_v6 = vadd.f32 %v3782_v3, %v222_v4  ;;  %vm5676_vm4 = vcmp.eq.s32.totalorder %v234_v61, %v236_v62  ;;  %v235_v3 = vshra.s32 %v233_v63, 3  ;;  %v4982_v61 = vld [vmem:[%s6547_s0 + $0xc8] sm:$0xff]  }
 0x28d   :  { %v4986_v63 = vld [vmem:[%s6555_s30 + $0x8] sm:$0xff]  }
 0x28e   :  { %v5545_v8 = vpack.c.bf16 %v5538_v6, %v5536_v5  ;;  %vm5683_vm6 = vcmp.eq.s32.totalorder %v235_v3, %v236_v62  ;;  %v4983_v62 = vld [vmem:[%s6547_s0 + $0xc0] sm:$0xff]  }
 0x290   :  { %4562 = vmatmul.mubr.bf16.vlgmr.msra.gmra.mxu1 %v5545_v8  ;;  %4582 = vmatmul.mubr.bf16.vlgmr.msra.gmra.mxu0 %v5545_v8 }
 0x291   :  { %4586 = vmatpush3.bf16.msra.mxu1 %v4952_v7  ;;  %4601 = vmatprep.mubr.msk.bf16.mxu1 %vm5263_vm2, %v5262_v31 }
 0x292   :  { %4587 = vmatprep.subr.bf16.mxu1 %v5262_v31  ;;  %4607 = vmatprep.mubr.msk.bf16.mxu0 %vm5263_vm2, %v5262_v31 }
 0x295   :  { %4588 = vmatpush3.bf16.msra.mxu1 %v4953_v9 }
 0x296   :  { %4589 = vmatprep.subr.bf16.mxu1 %v5262_v31 }
 0x299   :  { %4590 = vmatpush3.bf16.msra.mxu1 %v4954_v10 }
 0x29a   :  { %4591 = vmatprep.subr.bf16.mxu1 %v5262_v31 }
 0x29d   :  { %4592 = vmatpush3.bf16.msra.mxu1 %v4955_v11 }
 0x29e   :  { %4593 = vmatprep.subr.bf16.mxu1 %v5262_v31 }
 0x2a1   :  { %4594 = vmatpush3.bf16.msra.mxu1 %v4956_v12 }
 0x2a2   :  { %4595 = vmatprep.subr.bf16.mxu1 %v5262_v31 }
 0x2a5   :  { %4596 = vmatpush3.bf16.msra.mxu1 %v4957_v13 }
 0x2a6   :  { %4597 = vmatprep.subr.bf16.mxu1 %v5262_v31 }
 0x2a9   :  { %4598 = vmatpush3.bf16.msra.mxu1 %v4958_v14 }
 0x2aa   :  { %4599 = vmatprep.subr.bf16.mxu1 %v5262_v31 }
 0x2ad   :  { %4600 = vmatpush3.bf16.msra.mxu1 %v4959_v15 }
 0x2ae   :  { %4611 = vmatprep.subr.bf16.mxu1 %v5262_v31 }
 0x2b0   :  { %4602 = vmatmul.mubr.bf16.vlgmr.msra.gmra.mxu1 %v5545_v8 }
 0x2b1   :  { %4613 = vmatprep.mubr.msk.bf16.mxu1 %vm5263_vm2, %v5262_v31 }
 0x350   :  { %v345_v16 = vpop.f32.mrf.mxu1  ;;  %v459_v17 = vpop.f32.mrf.mxu0 }
 0x351   :  { %v460_v25 = vadd.f32 %v3809_v18, %v459_v17  ;;  %v346_v34 = vadd.f32 %v3783_v32, %v345_v16  ;;  %v3863_v17 = vld [vmem:[%s6550_s9 + $0x1] ss:$0 sm:$0xff] }
 0x352   :  { %v4563_v21 = vpop.f32.mrf.mxu1  ;;  %v4583_v22 = vpop.f32.mrf.mxu0 }
 0x354   :  { %v348_v23 = vpop.f32.mrf.mxu1  ;;  %v462_v24 = vpop.f32.mrf.mxu0 }
 0x355   :  { %v463_v26 = vadd.f32 %v3809_v18, %v462_v24  ;;  %v349_v33 = vadd.f32 %v3783_v32, %v348_v23 }
 0x356   :  { %v4564_v27 = vpop.f32.mrf.mxu1  ;;  %v4584_v28 = vpop.f32.mrf.mxu0 }
 0x357   :  { %v581_v29 = vpack.c.bf16 %v463_v26, %v460_v25  ;;  %v580_v36 = vpack.c.bf16 %v349_v33, %v346_v34  ;;  %v3915_v27 = vld [vmem:[%s6550_s9 + $0x5] ss:$0 sm:$0xff] }
 0x359   :  { %v587_v30 = vsel %vm582_vm3, %v581_v29, 0 }
 0x35a   :  { %4606 = vmatpush3.bf16.xpose.msra.mxu0 %v587_v30 }
 0x35b   :  { %4617 = vmatprep.subr.bf16.mxu0 %v5262_v31 }
 0x361   :  { %4608 = vmatmul.mubr.msk.bf16.vlgmr.msra.gmra.mxu0 %vm582_vm3, %v580_v36 }
 0x362   :  { %4618 = vmatpush3.bf16.msra.mxu0 %v4960_v35  ;;  %4633 = vmatprep.mubr.msk.bf16.mxu0 %vm5263_vm2, %v5262_v31 }
 0x363   :  { %4619 = vmatprep.subr.bf16.mxu0 %v5262_v31 }
 0x366   :  { %4620 = vmatpush3.bf16.msra.mxu0 %v4961_v37 }
 0x367   :  { %4621 = vmatprep.subr.bf16.mxu0 %v5262_v31 }
 0x36a   :  { %4622 = vmatpush3.bf16.msra.mxu0 %v4962_v38 }
 0x36b   :  { %4623 = vmatprep.subr.bf16.mxu0 %v5262_v31 }
 0x36e   :  { %4624 = vmatpush3.bf16.msra.mxu0 %v4963_v39 }
 0x36f   :  { %4625 = vmatprep.subr.bf16.mxu0 %v5262_v31 }
 0x370   :  { %v573_v41 = vpop.f32.mrf.mxu1 }
 0x371   :  { %v574_v46 = vadd.f32 %v3835_v42, %v573_v41 }
 0x372   :  { %v4603_v43 = vpop.f32.mrf.mxu1  ;;  %4626 = vmatpush3.bf16.msra.mxu0 %v4964_v40 }
 0x373   :  { %4627 = vmatprep.subr.bf16.mxu0 %v5262_v31 }
 0x374   :  { %v576_v45 = vpop.f32.mrf.mxu1 }
 0x375   :  { %v577_v47 = vadd.f32 %v3835_v42, %v576_v45  ;;  %v4984_v45 = vld [vmem:[%s6555_s30 + $0x18] sm:$0xff]  }
 0x376   :  { %v4604_v48 = vpop.f32.mrf.mxu1  ;;  %4628 = vmatpush3.bf16.msra.mxu0 %v4965_v44 }
 0x377   :  { %v658_v50 = vpack.c.bf16 %v577_v47, %v574_v46  ;;  %4629 = vmatprep.subr.bf16.mxu0 %v5262_v31  ;;  %v4985_v46 = vld [vmem:[%s6555_s30 + $0x10] sm:$0xff]  }
 0x379   :  { %4612 = vmatpush3.bf16.msra.mxu1 %v658_v50 }
 0x37a   :  { %4630 = vmatpush3.bf16.msra.mxu0 %v4966_v49  ;;  %4637 = vmatprep.subr.bf16.mxu1 %v5262_v31 }
 0x37b   :  { %4631 = vmatprep.subr.bf16.mxu0 %v5262_v31 }
 0x37e   :  { %4632 = vmatpush3.bf16.msra.mxu0 %v4967_v51 }
 0x37f   :  { %4657 = vmatprep.subr.bf16.mxu0 %v5262_v31 }
 0x381   :  { %4634 = vmatmul.mubr.bf16.vlgmr.msra.gmra.mxu0 %v5545_v8 }
 0x382   :  { %4658 = vmatpush3.bf16.msra.mxu0 %v4968_v52  ;;  %4673 = vmatprep.mubr.msk.bf16.mxu0 %vm5263_vm2, %v5262_v31 }
 0x383   :  { %4659 = vmatprep.subr.bf16.mxu0 %v5262_v31 }
 0x386   :  { %4660 = vmatpush3.bf16.msra.mxu0 %v4969_v53  ;;  %v4976_v53 = vld [vmem:[%s6547_s0 + $0xf8] sm:$0xff]  }
 0x387   :  { %4661 = vmatprep.subr.bf16.mxu0 %v5262_v31 }
 0x38a   :  { %4662 = vmatpush3.bf16.msra.mxu0 %v4970_v54 }
 0x38b   :  { %4663 = vmatprep.subr.bf16.mxu0 %v5262_v31 }
 0x38e   :  { %4664 = vmatpush3.bf16.msra.mxu0 %v4971_v55  ;;  %v4977_v55 = vld [vmem:[%s6547_s0 + $0xf0] sm:$0xff]  }
 0x38f   :  { %4665 = vmatprep.subr.bf16.mxu0 %v5262_v31 }
 0x392   :  { %4666 = vmatpush3.bf16.msra.mxu0 %v4972_v56  ;;  %v4978_v56 = vld [vmem:[%s6547_s0 + $0xe8] sm:$0xff]  }
 0x393   :  { %4667 = vmatprep.subr.bf16.mxu0 %v5262_v31 }
 0x396   :  { %4668 = vmatpush3.bf16.msra.mxu0 %v4973_v57  ;;  %v4979_v57 = vld [vmem:[%s6547_s0 + $0xe0] sm:$0xff]  }
 0x397   :  { %4669 = vmatprep.subr.bf16.mxu0 %v5262_v31 }
 0x39a   :  { %4670 = vmatpush3.bf16.msra.mxu0 %v4974_v58  ;;  %v4980_v58 = vld [vmem:[%s6547_s0 + $0xd8] sm:$0xff]  }
 0x39b   :  { %4671 = vmatprep.subr.bf16.mxu0 %v5262_v31 }
 0x39e   :  { %4672 = vmatpush3.bf16.msra.mxu0 %v4975_v59  ;;  %v4981_v59 = vld [vmem:[%s6547_s0 + $0xd0] sm:$0xff]  }
 0x39f   :  { %4701 = vmatprep.subr.bf16.mxu0 %v5262_v31 }
 0x3a1   :  { %4674 = vmatmul.mubr.bf16.vlgmr.msra.gmra.mxu0 %v5545_v8 }
 0x3a2   :  { %4709 = vmatprep.mubr.msk.bf16.mxu0 %vm5263_vm2, %v5262_v31  ;;  %4702 = vmatpush3.bf16.msra.mxu0 %v4984_v45 }
 0x3a3   :  { %4703 = vmatprep.subr.bf16.mxu0 %v5262_v31 }
 0x3a6   :  { %4704 = vmatpush3.bf16.msra.mxu0 %v4985_v46 }
 0x3a7   :  { %4705 = vmatprep.subr.bf16.mxu0 %v5262_v31 }
 0x3aa   :  { %4706 = vmatpush3.bf16.msra.mxu0 %v4986_v63 }
 0x3ab   :  { %4707 = vmatprep.subr.bf16.mxu0 %v5262_v31 }
 0x421   :  { %v623_v0 = vpop.f32.mrf.mxu0 }
 0x422   :  { %v630_v4 = vmul.f32 0.125, %v623_v0  ;;  %v4987_v0 = vld [vmem:[%s6555_s30] sm:$0xff]  }
 0x423   :  { %v4609_v7 = vpop.f32.mrf.mxu0  ;;  %4708 = vmatpush3.bf16.msra.mxu0 %v4987_v0  ;;  %v3944_v0 = vld [vmem:[%s6556_s29] ss:$0 sm:$0xff] }
 0x424   :  { %v632_v9 = vsel %vm5676_vm4, %v630_v4, -1e+30 }
 0x425   :  { %v626_v19 = vpop.f32.mrf.mxu0  ;;  %v635_v10 = vsel %vm634_vm5, %v632_v9, -inf }
 0x426   :  { %v631_v12 = vmul.f32 0.125, %v626_v19  ;;  %636 = vmax.xlane.f32.xlu1 %v635_v10  ;;  %v3889_v10 = vld [vmem:[%s6550_s9 + $0x3] ss:$0 sm:$0xff] }
 0x427   :  { %v4610_v13 = vpop.f32.mrf.mxu0 }
 0x428   :  { %v633_v14 = vsel %vm5683_vm6, %v631_v12, -1e+30 }
 0x429   :  { %v638_v15 = vsel %vm634_vm5, %v633_v14, -inf }
 0x42a   :  { %639 = vmax.xlane.f32.xlu1 %v638_v15 }
 0x441   :  { %v819_v16 = vpop.f32.mrf.mxu0 }
 0x442   :  { %v5693_v22 = vadd.f32 %v3863_v17, %v819_v16 }
 0x443   :  { %v4635_v18 = vpop.f32.mrf.mxu0 }
 0x445   :  { %v822_v21 = vpop.f32.mrf.mxu0 }
 0x446   :  { %v5695_v23 = vadd.f32 %v3863_v17, %v822_v21 }
 0x447   :  { %v4636_v24 = vpop.f32.mrf.mxu0 }
 0x448   :  { %v1054_v25 = vpack.c.bf16 %v5695_v23, %v5693_v22 }
 0x461   :  { %v1047_v26 = vpop.f32.mrf.mxu0 }
 0x462   :  { %v5702_v30 = vadd.f32 %v3915_v27, %v1047_v26 }
 0x463   :  { %v4675_v28 = vpop.f32.mrf.mxu0 }
 0x465   :  { %v1050_v29 = vpop.f32.mrf.mxu0 }
 0x466   :  { %v5704_v32 = vadd.f32 %v3915_v27, %v1050_v29 }
 0x467   :  { %v4676_v33 = vpop.f32.mrf.mxu0 }
 0x468   :  { %v1130_v34 = vpack.c.bf16 %v5704_v32, %v5702_v30 }
 0x4af   :  { %v637_v35 = vpop.xlane.xlu1 %636 }
 0x4b0   :  { %v641_v36 = vsub.f32 %v632_v9, %v637_v35 }
 0x4b2   :  { %v643_v37 = vmul.f32 1.442695, %v641_v36 }
 0x4b3   :  { %v640_v38 = vpop.xlane.xlu1 %639 }
 0x4b4   :  { %5148 = vpow2.f32 %v643_v37  ;;  %v642_v39 = vsub.f32 %v633_v14, %v640_v38 }
 0x4b6   :  { %v645_v40 = vmul.f32 1.442695, %v642_v39 }
 0x4b8   :  { %5150 = vpow2.f32 %v645_v40 }
 0x4c1   :  { %v5149_v41 = vpop.eup %5148 }
 0x4c2   :  { %v647_v42 = vsel %vm634_vm5, %v5149_v41, 0.0 }
 0x4c3   :  { %648 = vadd.xlane.f32.xlu1 %v647_v42 }
 0x4c5   :  { %v5151_v43 = vpop.eup %5150 }
 0x4c6   :  { %v650_v44 = vsel %vm634_vm5, %v5151_v43, 0.0 }
 0x4c7   :  { %651 = vadd.xlane.f32.xlu1 %v650_v44 }
 0x54c   :  { %v649_v47 = vpop.xlane.xlu1 %648 }
 0x54d   :  { %5152 = vrcp.f32 %v649_v47 }
 0x550   :  { %v652_v48 = vpop.xlane.xlu1 %651 }
 0x551   :  { %5154 = vrcp.f32 %v652_v48 }
 0x55a   :  { %v5153_v49 = vpop.eup %5152 }
 0x55b   :  { %v654_v51 = vmul.f32 %v5153_v49, %v5149_v41 }
 0x55e   :  { %v5155_v50 = vpop.eup %5154 }
 0x55f   :  { %v656_v52 = vmul.f32 %v5155_v50, %v5151_v43 }
 0x561   :  { %v657_v54 = vpack.c.bf16 %v656_v52, %v654_v51  ;;  %v4988_v52 = vld [vmem:[%s6555_s30 + $0x38] sm:$0xff]  }
 0x563   :  { %4614 = vmatmul.mubr.msk.bf16.vlgmr.msra.gmra.mxu1 %vm634_vm5, %v657_v54  ;;  %v4989_v54 = vld [vmem:[%s6555_s30 + $0x30] sm:$0xff]  }
 0x564   :  { %4638 = vmatpush3.bf16.msra.mxu1 %v4976_v53  ;;  %4653 = vmatprep.mubr.msk.bf16.mxu1 %vm5263_vm2, %v5262_v31 }
 0x565   :  { %4639 = vmatprep.subr.bf16.mxu1 %v5262_v31 }
 0x568   :  { %4640 = vmatpush3.bf16.msra.mxu1 %v4977_v55  ;;  %v4990_v55 = vld [vmem:[%s6555_s30 + $0x28] sm:$0xff]  }
 0x569   :  { %4641 = vmatprep.subr.bf16.mxu1 %v5262_v31 }
 0x56c   :  { %4642 = vmatpush3.bf16.msra.mxu1 %v4978_v56  ;;  %v4991_v56 = vld [vmem:[%s6555_s30 + $0x20] sm:$0xff]  }
 0x56d   :  { %4643 = vmatprep.subr.bf16.mxu1 %v5262_v31 }
 0x570   :  { %4644 = vmatpush3.bf16.msra.mxu1 %v4979_v57 }
 0x571   :  { %4645 = vmatprep.subr.bf16.mxu1 %v5262_v31 }
 0x574   :  { %4646 = vmatpush3.bf16.msra.mxu1 %v4980_v58 }
 0x575   :  { %4647 = vmatprep.subr.bf16.mxu1 %v5262_v31 }
 0x578   :  { %4648 = vmatpush3.bf16.msra.mxu1 %v4981_v59 }
 0x579   :  { %4649 = vmatprep.subr.bf16.mxu1 %v5262_v31 }
 0x57c   :  { %4650 = vmatpush3.bf16.msra.mxu1 %v4982_v61 }
 0x57d   :  { %4651 = vmatprep.subr.bf16.mxu1 %v5262_v31 }
 0x580   :  { %4652 = vmatpush3.bf16.msra.mxu1 %v4983_v62 }
 0x581   :  { %4677 = vmatprep.subr.bf16.mxu1 %v5262_v31 }
 0x583   :  { %4654 = vmatmul.mubr.bf16.vlgmr.msra.gmra.mxu1 %v5545_v8 }
 0x584   :  { %4679 = vmatprep.mubr.msk.bf16.mxu1 %vm5263_vm2, %v5262_v31 }
 0x623   :  { %v696_v3 = vpop.f32.mrf.mxu1 }
 0x625   :  { %v4615_v4 = vpop.f32.mrf.mxu1 }
 0x627   :  { %v699_v7 = vpop.f32.mrf.mxu1 }
 0x628   :  { %v703_v9 = vpack.c.bf16 %v699_v7, %v696_v3 }
 0x629   :  { %v4616_v8 = vpop.f32.mrf.mxu1 }
 0x62a   :  { %4710 = vmatmul.mubr.msk.bf16.vlgmr.msra.gmra.mxu0 %vm582_vm3, %v703_v9 }
 0x643   :  { %v933_v19 = vpop.f32.mrf.mxu1 }
 0x644   :  { %v934_v14 = vadd.f32 %v3889_v10, %v933_v19 }
 0x645   :  { %v4655_v12 = vpop.f32.mrf.mxu1 }
 0x647   :  { %v936_v13 = vpop.f32.mrf.mxu1 }
 0x648   :  { %v937_v15 = vadd.f32 %v3889_v10, %v936_v13 }
 0x649   :  { %v4656_v16 = vpop.f32.mrf.mxu1 }
 0x64a   :  { %v1055_v17 = vpack.c.bf16 %v937_v15, %v934_v14  ;;  %v4992_v14 = vld [vmem:[%s6514_s12 + $0x70] ss:$8 sps:$4 sm:$0xff]   ;;  %v4994_v15 = vld [vmem:[%s6514_s12 + $0x74] ss:$8 sps:$4 sm:$0xff]  }
 0x64c   :  { %v1060_v18 = vsel %vm582_vm3, %v1055_v17, 0 }
 0x64d   :  { %4678 = vmatpush3.bf16.xpose.msra.mxu1 %v1060_v18 }
 0x64e   :  { %4683 = vmatprep.subr.bf16.mxu1 %v5262_v31 }
 0x654   :  { %4680 = vmatmul.mubr.msk.bf16.vlgmr.msra.gmra.mxu1 %vm582_vm3, %v1054_v25 }
 0x655   :  { %4684 = vmatpush3.bf16.msra.mxu1 %v1130_v34  ;;  %4685 = vmatprep.mubr.msk.bf16.mxu1 %vm5263_vm2, %v5262_v31 }
 0x656   :  { %4689 = vmatprep.subr.bf16.mxu1 %v5262_v31 }
 0x6ea   :  { %v1314_v21 = vpop.f32.mrf.mxu0 }
 0x6ec   :  { %v4711_v24 = vpop.f32.mrf.mxu0 }
 0x6ee   :  { %v5779_v26 = vpop.f32.mrf.mxu0 }
 0x6f0   :  { %v4712_v27 = vpop.f32.mrf.mxu0 }
 0x6f1   :  { %v4997_v27 = vld [vmem:[%s6514_s12 + $0x64] ss:$8 sps:$4 sm:$0xff]  }
 0x714   :  { %v1096_v28 = vpop.f32.mrf.mxu1 }
 0x715   :  { %v1103_v29 = vmul.f32 0.125, %v1096_v28  ;;  %v4995_v28 = vld [vmem:[%s6514_s12 + $0x60] ss:$8 sps:$4 sm:$0xff]  }
 0x716   :  { %v4681_v33 = vpop.f32.mrf.mxu1 }
 0x717   :  { %v1105_v22 = vsel %vm5676_vm4, %v1103_v29, -1e+30  ;;  %v5000_v29 = vld [vmem:[%s6514_s12 + $0x54] ss:$8 sps:$4 sm:$0xff]   ;;  %v4998_v33 = vld [vmem:[%s6514_s12 + $0x50] ss:$8 sps:$4 sm:$0xff]  }
 0x718   :  { %v1099_v23 = vpop.f32.mrf.mxu1  ;;  %v1107_v25 = vsel %vm634_vm5, %v1105_v22, -inf }
 0x719   :  { %v1104_v30 = vmul.f32 0.125, %v1099_v23  ;;  %1108 = vmax.xlane.f32.xlu1 %v1107_v25  ;;  %v5003_v23 = vld [vmem:[%s6514_s12 + $0x44] ss:$8 sps:$4 sm:$0xff]   ;;  %v5006_v25 = vld [vmem:[%s6514_s12 + $0x34] ss:$8 sps:$4 sm:$0xff]  }
 0x71a   :  { %v4682_v32 = vpop.f32.mrf.mxu1 }
 0x71b   :  { %v1106_v34 = vsel %vm5683_vm6, %v1104_v30, -1e+30  ;;  %v5004_v30 = vld [vmem:[%s6514_s12 + $0x30] ss:$8 sps:$4 sm:$0xff]   ;;  %v5009_v32 = vld [vmem:[%s6514_s12 + $0x24] ss:$8 sps:$4 sm:$0xff]  }
 0x71c   :  { %v1110_v35 = vsel %vm634_vm5, %v1106_v34, -inf }
 0x71d   :  { %1111 = vmax.xlane.f32.xlu1 %v1110_v35  ;;  %v5012_v35 = vld [vmem:[%s6514_s12 + $0x14] ss:$8 sps:$4 sm:$0xff]  }
 0x7a2   :  { %v1109_v36 = vpop.xlane.xlu1 %1108 }
 0x7a3   :  { %v1113_v37 = vsub.f32 %v1105_v22, %v1109_v36  ;;  %v5001_v22 = vld [vmem:[%s6514_s12 + $0x40] ss:$8 sps:$4 sm:$0xff]   ;;  %v5010_v36 = vld [vmem:[%s6514_s12 + $0x10] ss:$8 sps:$4 sm:$0xff]  }
 0x7a5   :  { %v1115_v38 = vmul.f32 1.442695, %v1113_v37  ;;  %v5015_v37 = vld [vmem:[%s6514_s12 + $0x4] ss:$8 sps:$4 sm:$0xff]  }
 0x7a6   :  { %v1112_v39 = vpop.xlane.xlu1 %1111 }
 0x7a7   :  { %5156 = vpow2.f32 %v1115_v38  ;;  %v1114_v40 = vsub.f32 %v1106_v34, %v1112_v39  ;;  %v5007_v34 = vld [vmem:[%s6514_s12 + $0x20] ss:$8 sps:$4 sm:$0xff]  }
 0x7a8   :  { %v5013_v38 = vld [vmem:[%s6514_s12] ss:$8 sps:$4 sm:$0xff]  }
 0x7a9   :  { %v1117_v41 = vmul.f32 1.442695, %v1114_v40 }
 0x7ab   :  { %5158 = vpow2.f32 %v1117_v41 }
 0x7b4   :  { %v5157_v42 = vpop.eup %5156 }
 0x7b5   :  { %v1119_v43 = vsel %vm634_vm5, %v5157_v42, 0.0 }
 0x7b6   :  { %1120 = vadd.xlane.f32.xlu1 %v1119_v43 }
 0x7b8   :  { %v5159_v44 = vpop.eup %5158 }
 0x7b9   :  { %v1122_v45 = vsel %vm634_vm5, %v5159_v44, 0.0 }
 0x7ba   :  { %1123 = vadd.xlane.f32.xlu0 %v1122_v45 }
 0x83f   :  { %v1121_v46 = vpop.xlane.xlu1 %1120 }
 0x840   :  { %5160 = vrcp.f32 %v1121_v46 }
 0x843   :  { %v1124_v47 = vpop.xlane.xlu0 %1123 }
 0x844   :  { %5162 = vrcp.f32 %v1124_v47  ;;  %v3945_v47 = vld [vmem:[%s6512_s10] ss:$0 sm:$0xff] }
 0x84d   :  { %v5161_v48 = vpop.eup %5160 }
 0x84e   :  { %v1126_v50 = vmul.f32 %v5161_v48, %v5157_v42 }
 0x851   :  { %v5163_v49 = vpop.eup %5162 }
 0x852   :  { %v1128_v51 = vmul.f32 %v5163_v49, %v5159_v44 }
 0x854   :  { %v1129_v53 = vpack.c.bf16 %v1128_v51, %v1126_v50  ;;  %v3946_v51 = vld [vmem:[%s6513_s11] ss:$0 sm:$0xff] }
 0x856   :  { %4686 = vmatmul.mubr.msk.bf16.vlgmr.msra.gmra.mxu1 %vm634_vm5, %v1129_v53 }
 0x857   :  { %4690 = vmatpush3.bf16.msra.mxu1 %v4988_v52  ;;  %4697 = vmatprep.mubr.msk.bf16.mxu1 %vm5263_vm2, %v5262_v31 }
 0x858   :  { %4691 = vmatprep.subr.bf16.mxu1 %v5262_v31 }
 0x85b   :  { %4692 = vmatpush3.bf16.msra.mxu1 %v4989_v54 }
 0x85c   :  { %4693 = vmatprep.subr.bf16.mxu1 %v5262_v31 }
 0x85f   :  { %4694 = vmatpush3.bf16.msra.mxu1 %v4990_v55 }
 0x860   :  { %4695 = vmatprep.subr.bf16.mxu1 %v5262_v31 }
 0x863   :  { %4696 = vmatpush3.bf16.msra.mxu1 %v4991_v56  ;;  %v5016_v56 = vld [vmem:[%s6516_s14 + $0x78] sm:$0xff]  }
 0x864   :  { %1481 = vmatprep.subr.bf16.mxu1 %v4994_v15  ;;  %4373 = vmatprep.subr.bf16.mxu0 %v5016_v56  ;;  %v1397_v15 = vsub.s32 1, %v5671_v60 }
 0x916   :  { %v1168_v57 = vpop.f32.mrf.mxu1 }
 0x918   :  { %v4687_v58 = vpop.f32.mrf.mxu1 }
 0x919   :  { %v5018_v58 = vld [vmem:[%s6516_s14 + $0x70] sm:$0xff]  }
 0x91a   :  { %v1171_v59 = vpop.f32.mrf.mxu1 }
 0x91b   :  { %v1175_v61 = vpack.c.bf16 %v1171_v59, %v1168_v57  ;;  %v5017_v57 = vld [vmem:[%s6516_s14 + $0x38] sm:$0xff]   ;;  %v5019_v59 = vld [vmem:[%s6516_s14 + $0x30] sm:$0xff]  }
 0x91c   :  { %v4688_v62 = vpop.f32.mrf.mxu1  ;;  %4374 = vmatpush3.bf16.msra.mxu0 %v5017_v57 }
 0x91d   :  { %4698 = vmatmul.mubr.msk.bf16.vlgmr.msra.gmra.mxu1 %vm582_vm3, %v1175_v61  ;;  %4375 = vmatprep.subr.bf16.mxu0 %v5018_v58  ;;  %v5020_v61 = vld [vmem:[%s6516_s14 + $0x68] sm:$0xff]  }
 0x91e   :  { %1513 = vmatprep.mubr.bf16.mxu1 %v5260_v2  ;;  %1482 = vmatpush1.bf16.msra.mxu1 %v4992_v14  ;;  %v5021_v62 = vld [vmem:[%s6516_s14 + $0x28] sm:$0xff]   ;;  %v1389_v14 = vld [vmem:[%s6515_s13] sm:$0x3] }
 0x91f   :  { %1483 = vmatprep.subr.bf16.mxu1 %v4997_v27 }
 0x920   :  { %4376 = vmatpush3.bf16.msra.mxu0 %v5019_v59 }
 0x921   :  { %4377 = vmatprep.subr.bf16.mxu0 %v5020_v61 }
 0x922   :  { %1484 = vmatpush1.bf16.msra.mxu1 %v4995_v28 }
 0x923   :  { %1485 = vmatprep.subr.bf16.mxu1 %v5000_v29 }
 0x924   :  { %4378 = vmatpush3.bf16.msra.mxu0 %v5021_v62 }
 0x926   :  { %1486 = vmatpush1.bf16.msra.mxu1 %v4998_v33 }
 0x927   :  { %1487 = vmatprep.subr.bf16.mxu1 %v5003_v23 }
 0x92a   :  { %1488 = vmatpush1.bf16.msra.mxu1 %v5001_v22 }
 0x92b   :  { %1489 = vmatprep.subr.bf16.mxu1 %v5006_v25 }
 0x92e   :  { %1490 = vmatpush1.bf16.msra.mxu1 %v5004_v30 }
 0x92f   :  { %1491 = vmatprep.subr.bf16.mxu1 %v5009_v32 }
 0x932   :  { %1492 = vmatpush1.bf16.msra.mxu1 %v5007_v34 }
 0x933   :  { %1493 = vmatprep.subr.bf16.mxu1 %v5012_v35 }
 0x936   :  { %1494 = vmatpush1.bf16.msra.mxu1 %v5010_v36 }
 0x937   :  { %1495 = vmatprep.subr.bf16.mxu1 %v5015_v37 }
 0x93a   :  { %1496 = vmatpush1.bf16.msra.mxu1 %v5013_v38 }
 0x93b   :  { %4713 = vmatprep.subr.bf16.mxu1 %v5262_v31 }
 0x9dd   :  { %v1246_v63 = vpop.f32.mrf.mxu1 }
 0x9de   :  { %v1315_v3 = vadd.f32 %v1314_v21, %v1246_v63  ;;  %v5022_v63 = vld [vmem:[%s6516_s14 + $0x60] sm:$0xff]  }
 0x9df   :  { %v4699_v4 = vpop.f32.mrf.mxu1  ;;  %4379 = vmatprep.subr.bf16.mxu0 %v5022_v63 }
 0x9e0   :  { %v1328_v7 = vadd.f32 %v3944_v0, %v1315_v3  ;;  %v5024_v3 = vld [vmem:[%s6516_s14 + $0x58] sm:$0xff]  }
 0x9e1   :  { %v1249_v9 = vpop.f32.mrf.mxu1  ;;  %v5025_v4 = vld [vmem:[%s6516_s14 + $0x18] sm:$0xff]  }
 0x9e2   :  { %v1318_v8 = vadd.f32 %v5779_v26, %v1249_v9  ;;  %v1330_v19 = vadd.f32 %v1328_v7, %v5536_v5  ;;  %v5026_v7 = vld [vmem:[%s6516_s14 + $0x50] sm:$0xff]  }
 0x9e3   :  { %v4700_v10 = vpop.f32.mrf.mxu1  ;;  %v5027_v9 = vld [vmem:[%s6516_s14 + $0x10] sm:$0xff]  }
 0x9e4   :  { %v1329_v12 = vadd.f32 %v3944_v0, %v1318_v8  ;;  %1334 = vadd.xlane.f32.xlu1 %v1330_v19  ;;  %v5023_v0 = vld [vmem:[%s6516_s14 + $0x20] sm:$0xff]   ;;  %v5028_v8 = vld [vmem:[%s6516_s14 + $0x48] sm:$0xff]  }
 0x9e5   :  { %4380 = vmatpush3.bf16.msra.mxu0 %v5023_v0  ;;  %v5030_v10 = vld [vmem:[%s6516_s14 + $0x40] sm:$0xff]  }
 0x9e6   :  { %v1331_v13 = vadd.f32 %v1329_v12, %v5538_v6  ;;  %4381 = vmatprep.subr.bf16.mxu0 %v5024_v3  ;;  %v5031_v12 = vld [vmem:[%s6516_s14] sm:$0xff]  }
 0x9e8   :  { %1336 = vadd.xlane.f32.xlu0 %v1331_v13 }
 0x9e9   :  { %4382 = vmatpush3.bf16.msra.mxu0 %v5025_v4 }
 0x9ea   :  { %4383 = vmatprep.subr.bf16.mxu0 %v5026_v7 }
 0x9ed   :  { %4384 = vmatpush3.bf16.msra.mxu0 %v5027_v9 }
 0x9ee   :  { %4385 = vmatprep.subr.bf16.mxu0 %v5028_v8  ;;  %v3963_v8 = vld [vmem:[%s6517_s15] ss:$0 sm:$0xff] }
 0xa6d   :  { %v1335_v16 = vpop.xlane.xlu1 %1334 }
 0xa6e   :  { %v1338_v17 = vmul.f32 0.0078125, %v1335_v16 }
 0xa70   :  { %v1340_v18 = vsub.f32 %v1330_v19, %v1338_v17  ;;  %v5029_v19 = vld [vmem:[%s6516_s14 + $0x8] sm:$0xff]   ;;  %v1398_v17 = vrot.slane %v1389_v14, %v1397_v15 }
 0xa71   :  { %v1337_v5 = vpop.xlane.xlu0 %1336  ;;  %4386 = vmatpush3.bf16.msra.mxu0 %v5029_v19 }
 0xa72   :  { %v1339_v21 = vmul.f32 0.0078125, %v1337_v5  ;;  %v1342_v24 = vmul.f32 %v1340_v18, %v1340_v18  ;;  %4387 = vmatprep.subr.bf16.mxu0 %v5030_v10 }
 0xa74   :  { %v1341_v26 = vsub.f32 %v1331_v13, %v1339_v21  ;;  %1344 = vadd.xlane.f32.xlu1 %v1342_v24  ;;  %v1393_v13 = vsub.s32 0, %v5671_v60 }
 0xa75   :  { %4388 = vmatpush3.bf16.msra.mxu0 %v5031_v12 }
 0xa76   :  { %v1343_v6 = vmul.f32 %v1341_v26, %v1341_v26  ;;  %4733 = vmatprep.subr.bf16.mxu0 %v5262_v31  ;;  %v1394_v16 = vrot.slane %v1389_v14, %v1393_v13 }
 0xa78   :  { %1346 = vadd.xlane.f32.xlu0 %v1343_v6 }
 0xafd   :  { %v1345_v39 = vpop.xlane.xlu1 %1344 }
 0xafe   :  { %v1348_v40 = vmul.f32 0.0078125, %v1345_v39 }
 0xb00   :  { %v1350_v41 = vadd.f32 1e-05, %v1348_v40 }
 0xb01   :  { %v1347_v42 = vpop.xlane.xlu0 %1346 }
 0xb02   :  { %5164 = vrsqrt.f32 %v1350_v41  ;;  %v1349_v43 = vmul.f32 0.0078125, %v1347_v42 }
 0xb04   :  { %v1351_v44 = vadd.f32 1e-05, %v1349_v43 }
 0xb06   :  { %5166 = vrsqrt.f32 %v1351_v44 }
 0xb0f   :  { %v5165_v45 = vpop.eup %5164 }
 0xb10   :  { %v1354_v46 = vmul.f32 %v5165_v45, %v1340_v18 }
 0xb12   :  { %v1362_v50 = vmul.f32 %v3945_v47, %v1354_v46 }
 0xb13   :  { %v5167_v48 = vpop.eup %5166 }
 0xb14   :  { %v1355_v49 = vmul.f32 %v5167_v48, %v1341_v26  ;;  %v5870_v53 = vadd.f32 %v3946_v51, %v1362_v50 }
 0xb16   :  { %v1363_v52 = vmul.f32 %v3945_v47, %v1355_v49 }
 0xb18   :  { %v5872_v54 = vadd.f32 %v3946_v51, %v1363_v52 }
 0xb1a   :  { %v1372_v55 = vpack.c.bf16 %v5872_v54, %v5870_v53 }
 0xb1c   :  { %1514 = vmatmul.mubr.bf16.vlgmr.msra.gmra.mxu1 %v1372_v55 }
 0xb1d   :  { %4729 = vmatprep.mubr.msk.bf16.mxu1 %vm5263_vm2, %v5262_v31 }
 0xbdc   :  { %v1515_v18 = vpop.f32.mrf.mxu1 }
 0xbdd   :  { %v1516_v5 = vadd.f32 %v1515_v18, %v1394_v16 }
 0xbde   :  { %v1517_v21 = vpop.f32.mrf.mxu1 }
 0xbdf   :  { %v1524_v24 = vmul.f32 %v1516_v5, %v1516_v5  ;;  %v1518_v26 = vadd.f32 %v1517_v21, %v1398_v17 }
 0xbe0   :  { %v1519_v6 = vpop.f32.mrf.mxu1 }
 0xbe1   :  { %v1528_v27 = vmul.f32 %v1524_v24, %v1516_v5  ;;  %v1525_v28 = vmul.f32 %v1518_v26, %v1518_v26  ;;  %v1520_v29 = vadd.f32 %v1519_v6, %v1394_v16  ;;  %v5032_v24 = vld [vmem:[%s6547_s0 + $0x1b8] sm:$0xff]  }
 0xbe2   :  { %v1521_v33 = vpop.f32.mrf.mxu1  ;;  %4714 = vmatpush3.bf16.msra.mxu1 %v5032_v24  ;;  %v5063_v24 = vld [vmem:[%s6547_s0 + $0x240] sm:$0xff]  }
 0xbe3   :  { %v1532_v22 = vmul.f32 0.044715, %v1528_v27  ;;  %v1529_v23 = vmul.f32 %v1525_v28, %v1518_v26  ;;  %v1526_v25 = vmul.f32 %v1520_v29, %v1520_v29  ;;  %v1522_v30 = vadd.f32 %v1521_v33, %v1398_v17  ;;  %4715 = vmatprep.subr.bf16.mxu1 %v5262_v31 }
 0xbe5   :  { %v1536_v32 = vadd.f32 %v1532_v22, %v1516_v5  ;;  %v1533_v34 = vmul.f32 0.044715, %v1529_v23  ;;  %v1530_v35 = vmul.f32 %v1526_v25, %v1520_v29  ;;  %v1527_v36 = vmul.f32 %v1522_v30, %v1522_v30  ;;  %v5034_v23 = vld [vmem:[%s6547_s0 + $0x1b0] sm:$0xff]  }
 0xbe6   :  { %v5035_v25 = vld [vmem:[%s6547_s0 + $0x230] sm:$0xff]   ;;  %4716 = vmatpush3.bf16.msra.mxu1 %v5034_v23 }
 0xbe7   :  { %v1540_v37 = vmul.f32 0.7978846, %v1536_v32  ;;  %v1537_v38 = vadd.f32 %v1533_v34, %v1518_v26  ;;  %v1534_v39 = vmul.f32 0.044715, %v1530_v35  ;;  %v1531_v40 = vmul.f32 %v1527_v36, %v1522_v30  ;;  %4717 = vmatprep.subr.bf16.mxu1 %v5262_v31  ;;  %v5037_v32 = vld [vmem:[%s6547_s0 + $0x228] sm:$0xff]   ;;  %v5038_v34 = vld [vmem:[%s6547_s0 + $0x1a0] sm:$0xff]  }
 0xbe8   :  { %v5039_v35 = vld [vmem:[%s6547_s0 + $0x220] sm:$0xff]   ;;  %v5040_v36 = vld [vmem:[%s6547_s0 + $0x198] sm:$0xff]  }
 0xbe9   :  { %v1541_v41 = vmul.f32 0.7978846, %v1537_v38  ;;  %v1538_v42 = vadd.f32 %v1534_v39, %v1520_v29  ;;  %v1535_v43 = vmul.f32 0.044715, %v1531_v40  ;;  %5168 = vtanh.f32 %v1540_v37  ;;  %v5041_v37 = vld [vmem:[%s6547_s0 + $0x218] sm:$0xff]   ;;  %v5042_v38 = vld [vmem:[%s6547_s0 + $0x190] sm:$0xff]  }
 0xbea   :  { %v5043_v39 = vld [vmem:[%s6547_s0 + $0x210] sm:$0xff]   ;;  %v5044_v40 = vld [vmem:[%s6547_s0 + $0x188] sm:$0xff]  }
 0xbeb   :  { %5170 = vtanh.f32 %v1541_v41  ;;  %v1542_v44 = vmul.f32 0.7978846, %v1538_v42  ;;  %v1539_v45 = vadd.f32 %v1535_v43, %v1522_v30  ;;  %v5045_v41 = vld [vmem:[%s6547_s0 + $0x208] sm:$0xff]   ;;  %v5046_v42 = vld [vmem:[%s6547_s0 + $0x180] sm:$0xff]  }
 0xbec   :  { %v5047_v43 = vld [vmem:[%s6547_s0 + $0x200] sm:$0xff]  }
 0xbed   :  { %5172 = vtanh.f32 %v1542_v44  ;;  %v1543_v46 = vmul.f32 0.7978846, %v1539_v45 }
 0xbef   :  { %5174 = vtanh.f32 %v1543_v46 }
 0xbf6   :  { %v5169_v47 = vpop.eup %5168 }
 0xbf7   :  { %v1548_v51 = vadd.f32 1.0, %v5169_v47 }
 0xbf8   :  { %v5171_v48 = vpop.eup %5170 }
 0xbf9   :  { %v1549_v49 = vadd.f32 1.0, %v5171_v48  ;;  %v1552_v59 = vmul.f32 0.5, %v1548_v51 }
 0xbfa   :  { %v5173_v50 = vpop.eup %5172 }
 0xbfb   :  { %v1550_v52 = vadd.f32 1.0, %v5173_v50  ;;  %v1553_v58 = vmul.f32 0.5, %v1549_v49  ;;  %v1556_v3 = vmul.f32 %v1552_v59, %v1516_v5 }
 0xbfc   :  { %v5175_v55 = vpop.eup %5174 }
 0xbfd   :  { %v1554_v56 = vmul.f32 0.5, %v1550_v52  ;;  %v1551_v57 = vadd.f32 1.0, %v5175_v55  ;;  %v1557_v63 = vmul.f32 %v1553_v58, %v1518_v26  ;;  %v5033_v26 = vld [vmem:[%s6547_s0 + $0x238] sm:$0xff]   ;;  %v3980_v52 = vld [vmem:[%s6518_s16] ss:$0 sm:$0xff] }
 0xbfe   :  { %v3981_v58 = vld [vmem:[%s6519_s17] ss:$0 sm:$0xff] }
 0xbff   :  { %v1555_v61 = vmul.f32 0.5, %v1551_v57  ;;  %v1558_v62 = vmul.f32 %v1554_v56, %v1520_v29 }
 0xc01   :  { %v1559_v0 = vmul.f32 %v1555_v61, %v1522_v30  ;;  %v1560_v7 = vpack.c.bf16 %v1558_v62, %v1556_v3  ;;  %v5036_v30 = vld [vmem:[%s6547_s0 + $0x1a8] sm:$0xff]   ;;  %v5049_v3 = vld [vmem:[%s6547_s0 + $0x2b0] sm:$0xff]  }
 0xc02   :  { %4718 = vmatpush3.bf16.msra.mxu1 %v5036_v30 }
 0xc03   :  { %v1561_v4 = vpack.c.bf16 %v1559_v0, %v1557_v63  ;;  %4719 = vmatprep.subr.bf16.mxu1 %v5262_v31  ;;  %v5048_v63 = vld [vmem:[%s6547_s0 + $0x2b8] sm:$0xff]  }
 0xc05   :  { %1729 = vmatprep.mubr.bf16.mxu0 %v1561_v4  ;;  %v5050_v4 = vld [vmem:[%s6547_s0 + $0x2a8] sm:$0xff]  }
 0xc06   :  { %1730 = vmatmul.mubr.bf16.vlgmr.msra.gmra.mxu0 %v1560_v7  ;;  %4720 = vmatpush3.bf16.msra.mxu1 %v5038_v34  ;;  %v5051_v7 = vld [vmem:[%s6547_s0 + $0x2a0] sm:$0xff]  }
 0xc07   :  { %4749 = vmatprep.mubr.msk.bf16.mxu0 %vm5263_vm2, %v5262_v31  ;;  %4734 = vmatpush3.bf16.msra.mxu0 %v5033_v26  ;;  %v3999_v34 = vld [vmem:[%s6550_s9 + $0x6] ss:$0 sm:$0xff] }
 0xc08   :  { %4735 = vmatprep.subr.bf16.mxu0 %v5262_v31  ;;  %4721 = vmatprep.subr.bf16.mxu1 %v5262_v31 }
 0xc0a   :  { %4722 = vmatpush3.bf16.msra.mxu1 %v5040_v36 }
 0xc0b   :  { %4736 = vmatpush3.bf16.msra.mxu0 %v5035_v25  ;;  %4723 = vmatprep.subr.bf16.mxu1 %v5262_v31 }
 0xc0c   :  { %4737 = vmatprep.subr.bf16.mxu0 %v5262_v31 }
 0xc0e   :  { %4724 = vmatpush3.bf16.msra.mxu1 %v5042_v38 }
 0xc0f   :  { %4738 = vmatpush3.bf16.msra.mxu0 %v5037_v32  ;;  %4725 = vmatprep.subr.bf16.mxu1 %v5262_v31 }
 0xc10   :  { %4739 = vmatprep.subr.bf16.mxu0 %v5262_v31 }
 0xc12   :  { %4726 = vmatpush3.bf16.msra.mxu1 %v5044_v40 }
 0xc13   :  { %4740 = vmatpush3.bf16.msra.mxu0 %v5039_v35  ;;  %4727 = vmatprep.subr.bf16.mxu1 %v5262_v31 }
 0xc14   :  { %4741 = vmatprep.subr.bf16.mxu0 %v5262_v31 }
 0xc16   :  { %4728 = vmatpush3.bf16.msra.mxu1 %v5046_v42 }
 0xc17   :  { %4742 = vmatpush3.bf16.msra.mxu0 %v5041_v37  ;;  %4753 = vmatprep.subr.bf16.mxu1 %v5262_v31 }
 0xc18   :  { %4743 = vmatprep.subr.bf16.mxu0 %v5262_v31 }
 0xc1b   :  { %4744 = vmatpush3.bf16.msra.mxu0 %v5043_v39  ;;  %v4051_v39 = vld [vmem:[%s6550_s9 + $0xa] ss:$0 sm:$0xff] }
 0xc1c   :  { %4745 = vmatprep.subr.bf16.mxu0 %v5262_v31 }
 0xc1f   :  { %4746 = vmatpush3.bf16.msra.mxu0 %v5045_v41 }
 0xc20   :  { %4747 = vmatprep.subr.bf16.mxu0 %v5262_v31 }
 0xc23   :  { %4748 = vmatpush3.bf16.msra.mxu0 %v5047_v43 }
 0xc24   :  { %4773 = vmatprep.subr.bf16.mxu0 %v5262_v31 }
 0xcc6   :  { %v4389_v9 = vpop.f32.mrf.mxu0 }
 0xcc8   :  { %v4390_v19 = vpop.f32.mrf.mxu0 }
 0xcc9   :  { %v4391_v10 = vadd.f32 %v4390_v19, %v4389_v9  ;;  %v5052_v9 = vld [vmem:[%s6547_s0 + $0x298] sm:$0xff]   ;;  %v5054_v19 = vld [vmem:[%s6547_s0 + $0x288] sm:$0xff]  }
 0xcca   :  { %v4392_v12 = vpop.f32.mrf.mxu0 }
 0xccb   :  { %v1732_v14 = vadd.f32 %v4391_v10, %v3963_v8  ;;  %v5055_v10 = vld [vmem:[%s6547_s0 + $0x280] sm:$0xff]  }
 0xccc   :  { %v4393_v16 = vpop.f32.mrf.mxu0 }
 0xccd   :  { %v4394_v17 = vadd.f32 %v4393_v16, %v4392_v12  ;;  %v1738_v18 = vadd.f32 %v1732_v14, %v5870_v53  ;;  %v5056_v12 = vld [vmem:[%s6547_s0 + $0x278] sm:$0xff]   ;;  %v5057_v14 = vld [vmem:[%s6547_s0 + $0x270] sm:$0xff]   ;;  %v5058_v16 = vld [vmem:[%s6547_s0 + $0x268] sm:$0xff]  }
 0xccf   :  { %v1735_v5 = vadd.f32 %v4394_v17, %v3963_v8  ;;  %1742 = vadd.xlane.f32.xlu1 %v1738_v18  ;;  %v5053_v8 = vld [vmem:[%s6547_s0 + $0x290] sm:$0xff]   ;;  %v5059_v17 = vld [vmem:[%s6547_s0 + $0x260] sm:$0xff]  }
 0xcd1   :  { %v1739_v21 = vadd.f32 %v1735_v5, %v5872_v54  ;;  %v5061_v5 = vld [vmem:[%s6547_s0 + $0x250] sm:$0xff]  }
 0xcd3   :  { %1744 = vadd.xlane.f32.xlu0 %v1739_v21 }
 0xd58   :  { %v1743_v53 = vpop.xlane.xlu1 %1742 }
 0xd59   :  { %v1746_v6 = vmul.f32 0.0078125, %v1743_v53 }
 0xd5b   :  { %v1748_v27 = vsub.f32 %v1738_v18, %v1746_v6  ;;  %v5060_v18 = vld [vmem:[%s6547_s0 + $0x258] sm:$0xff]   ;;  %v4025_v6 = vld [vmem:[%s6550_s9 + $0x8] ss:$0 sm:$0xff] }
 0xd5c   :  { %v1745_v28 = vpop.xlane.xlu0 %1744 }
 0xd5d   :  { %v1747_v54 = vmul.f32 0.0078125, %v1745_v28  ;;  %v1750_v29 = vmul.f32 %v1748_v27, %v1748_v27 }
 0xd5f   :  { %v1749_v33 = vsub.f32 %v1739_v21, %v1747_v54  ;;  %1752 = vadd.xlane.f32.xlu1 %v1750_v29  ;;  %v5062_v21 = vld [vmem:[%s6547_s0 + $0x248] sm:$0xff]  }
 0xd61   :  { %v1751_v22 = vmul.f32 %v1749_v33, %v1749_v33 }
 0xd63   :  { %1754 = vadd.xlane.f32.xlu0 %v1751_v22 }
 0xde8   :  { %v1753_v44 = vpop.xlane.xlu1 %1752 }
 0xde9   :  { %v1756_v45 = vmul.f32 0.0078125, %v1753_v44 }
 0xdeb   :  { %v1758_v46 = vadd.f32 1e-05, %v1756_v45 }
 0xdec   :  { %v1755_v47 = vpop.xlane.xlu0 %1754 }
 0xded   :  { %5176 = vrsqrt.f32 %v1758_v46  ;;  %v1757_v48 = vmul.f32 0.0078125, %v1755_v47  ;;  %v4113_v47 = vld [vmem:[%s6550_s9 + $0x9] ss:$0 sm:$0xff] }
 0xdef   :  { %v1759_v49 = vadd.f32 1e-05, %v1757_v48 }
 0xdf1   :  { %5178 = vrsqrt.f32 %v1759_v49 }
 0xdfa   :  { %v5177_v50 = vpop.eup %5176 }
 0xdfb   :  { %v1762_v51 = vmul.f32 %v5177_v50, %v1748_v27 }
 0xdfd   :  { %v1770_v56 = vmul.f32 %v3980_v52, %v1762_v51 }
 0xdfe   :  { %v5179_v55 = vpop.eup %5178 }
 0xdff   :  { %v1763_v57 = vmul.f32 %v5179_v55, %v1749_v33  ;;  %v6013_v61 = vadd.f32 %v3981_v58, %v1770_v56 }
 0xe01   :  { %v1771_v59 = vmul.f32 %v3980_v52, %v1763_v57 }
 0xe03   :  { %v6015_v62 = vadd.f32 %v3981_v58, %v1771_v59 }
 0xe05   :  { %v6022_v0 = vpack.c.bf16 %v6015_v62, %v6013_v61 }
 0xe07   :  { %4730 = vmatmul.mubr.bf16.vlgmr.msra.gmra.mxu1 %v6022_v0  ;;  %4750 = vmatmul.mubr.bf16.vlgmr.msra.gmra.mxu0 %v6022_v0 }
 0xe08   :  { %4754 = vmatpush3.bf16.msra.mxu1 %v5048_v63  ;;  %4769 = vmatprep.mubr.msk.bf16.mxu1 %vm5263_vm2, %v5262_v31 }
 0xe09   :  { %4755 = vmatprep.subr.bf16.mxu1 %v5262_v31  ;;  %4775 = vmatprep.mubr.msk.bf16.mxu0 %vm5263_vm2, %v5262_v31 }
 0xe0c   :  { %4756 = vmatpush3.bf16.msra.mxu1 %v5049_v3 }
 0xe0d   :  { %4757 = vmatprep.subr.bf16.mxu1 %v5262_v31 }
 0xe10   :  { %4758 = vmatpush3.bf16.msra.mxu1 %v5050_v4 }
 0xe11   :  { %4759 = vmatprep.subr.bf16.mxu1 %v5262_v31 }
 0xe14   :  { %4760 = vmatpush3.bf16.msra.mxu1 %v5051_v7 }
 0xe15   :  { %4761 = vmatprep.subr.bf16.mxu1 %v5262_v31 }
 0xe18   :  { %4762 = vmatpush3.bf16.msra.mxu1 %v5052_v9 }
 0xe19   :  { %4763 = vmatprep.subr.bf16.mxu1 %v5262_v31 }
 0xe1c   :  { %4764 = vmatpush3.bf16.msra.mxu1 %v5053_v8 }
 0xe1d   :  { %4765 = vmatprep.subr.bf16.mxu1 %v5262_v31 }
 0xe20   :  { %4766 = vmatpush3.bf16.msra.mxu1 %v5054_v19 }
 0xe21   :  { %4767 = vmatprep.subr.bf16.mxu1 %v5262_v31 }
 0xe24   :  { %4768 = vmatpush3.bf16.msra.mxu1 %v5055_v10 }
 0xe25   :  { %4805 = vmatprep.subr.bf16.mxu1 %v5262_v31 }
 0xe27   :  { %4770 = vmatmul.mubr.bf16.vlgmr.msra.gmra.mxu1 %v6022_v0 }
 0xe28   :  { %4806 = vmatpush3.bf16.msra.mxu1 %v5056_v12  ;;  %4821 = vmatprep.mubr.msk.bf16.mxu1 %vm5263_vm2, %v5262_v31 }
 0xe29   :  { %4807 = vmatprep.subr.bf16.mxu1 %v5262_v31 }
 0xe2c   :  { %4808 = vmatpush3.bf16.msra.mxu1 %v5057_v14 }
 0xe2d   :  { %4809 = vmatprep.subr.bf16.mxu1 %v5262_v31 }
 0xe30   :  { %4810 = vmatpush3.bf16.msra.mxu1 %v5058_v16 }
 0xe31   :  { %4811 = vmatprep.subr.bf16.mxu1 %v5262_v31 }
 0xe34   :  { %4812 = vmatpush3.bf16.msra.mxu1 %v5059_v17 }
 0xe35   :  { %4813 = vmatprep.subr.bf16.mxu1 %v5262_v31 }
 0xe38   :  { %4814 = vmatpush3.bf16.msra.mxu1 %v5060_v18 }
 0xe39   :  { %4815 = vmatprep.subr.bf16.mxu1 %v5262_v31 }
 0xe3c   :  { %4816 = vmatpush3.bf16.msra.mxu1 %v5061_v5 }
 0xe3d   :  { %4817 = vmatprep.subr.bf16.mxu1 %v5262_v31 }
 0xe40   :  { %4818 = vmatpush3.bf16.msra.mxu1 %v5062_v21 }
 0xe41   :  { %4819 = vmatprep.subr.bf16.mxu1 %v5262_v31 }
 0xe44   :  { %4820 = vmatpush3.bf16.msra.mxu1 %v5063_v24 }
 0xe45   :  { %4845 = vmatprep.subr.bf16.mxu1 %v5262_v31 }
 0xe47   :  { %4822 = vmatmul.mubr.bf16.vlgmr.msra.gmra.mxu1 %v6022_v0 }
 0xe48   :  { %4847 = vmatprep.mubr.msk.bf16.mxu1 %vm5263_vm2, %v5262_v31 }
 0xec7   :  { %v1888_v26 = vpop.f32.mrf.mxu1  ;;  %v2002_v53 = vpop.f32.mrf.mxu0 }
 0xec8   :  { %v2003_v33 = vadd.f32 %v4025_v6, %v2002_v53  ;;  %v1889_v36 = vadd.f32 %v3999_v34, %v1888_v26 }
 0xec9   :  { %v4731_v27 = vpop.f32.mrf.mxu1  ;;  %v4751_v28 = vpop.f32.mrf.mxu0 }
 0xecb   :  { %v1891_v54 = vpop.f32.mrf.mxu1  ;;  %v2005_v29 = vpop.f32.mrf.mxu0 }
 0xecc   :  { %v2006_v22 = vadd.f32 %v4025_v6, %v2005_v29  ;;  %v1892_v35 = vadd.f32 %v3999_v34, %v1891_v54  ;;  %v5069_v34 = vld [vmem:[%s6547_s0 + $0x1d0] sm:$0xff]  }
 0xecd   :  { %v4732_v23 = vpop.f32.mrf.mxu1  ;;  %v4752_v25 = vpop.f32.mrf.mxu0 }
 0xece   :  { %v2124_v30 = vpack.c.bf16 %v2006_v22, %v2003_v33  ;;  %v2123_v37 = vpack.c.bf16 %v1892_v35, %v1889_v36  ;;  %v5064_v33 = vld [vmem:[%s6547_s0 + $0x1f8] sm:$0xff]   ;;  %v5065_v23 = vld [vmem:[%s6547_s0 + $0x1f0] sm:$0xff]   ;;  %v5066_v25 = vld [vmem:[%s6547_s0 + $0x1e8] sm:$0xff]  }
 0xecf   :  { %v5070_v35 = vld [vmem:[%s6547_s0 + $0x1c8] sm:$0xff]   ;;  %v5071_v36 = vld [vmem:[%s6547_s0 + $0x1c0] sm:$0xff]  }
 0xed0   :  { %v2129_v32 = vsel %vm582_vm3, %v2124_v30, 0  ;;  %v5067_v30 = vld [vmem:[%s6547_s0 + $0x1e0] sm:$0xff]  }
 0xed1   :  { %4774 = vmatpush3.bf16.xpose.msra.mxu0 %v2129_v32  ;;  %v5068_v32 = vld [vmem:[%s6547_s0 + $0x1d8] sm:$0xff]  }
 0xed2   :  { %4779 = vmatprep.subr.bf16.mxu0 %v5262_v31 }
 0xed8   :  { %4776 = vmatmul.mubr.msk.bf16.vlgmr.msra.gmra.mxu0 %vm582_vm3, %v2123_v37  ;;  %v5072_v37 = vld [vmem:[%s6547_s0 + $0x2f8] sm:$0xff]  }
 0xed9   :  { %4781 = vmatprep.mubr.msk.bf16.mxu0 %vm5263_vm2, %v5262_v31 }
 0xee7   :  { %v2116_v38 = vpop.f32.mrf.mxu1 }
 0xee8   :  { %v2117_v42 = vadd.f32 %v4051_v39, %v2116_v38  ;;  %v5073_v38 = vld [vmem:[%s6547_s0 + $0x2f0] sm:$0xff]  }
 0xee9   :  { %v4771_v40 = vpop.f32.mrf.mxu1 }
 0xeea   :  { %v5075_v40 = vld [vmem:[%s6547_s0 + $0x2e0] sm:$0xff]  }
 0xeeb   :  { %v2119_v41 = vpop.f32.mrf.mxu1 }
 0xeec   :  { %v2120_v43 = vadd.f32 %v4051_v39, %v2119_v41  ;;  %v5074_v39 = vld [vmem:[%s6547_s0 + $0x2e8] sm:$0xff]   ;;  %v5076_v41 = vld [vmem:[%s6547_s0 + $0x2d8] sm:$0xff]  }
 0xeed   :  { %v4772_v44 = vpop.f32.mrf.mxu1 }
 0xeee   :  { %v2199_v45 = vpack.c.bf16 %v2120_v43, %v2117_v42  ;;  %v5077_v42 = vld [vmem:[%s6547_s0 + $0x2d0] sm:$0xff]   ;;  %v5078_v43 = vld [vmem:[%s6547_s0 + $0x2c8] sm:$0xff]   ;;  %v5079_v44 = vld [vmem:[%s6547_s0 + $0x2c0] sm:$0xff]  }
 0xef0   :  { %4780 = vmatpush3.bf16.msra.mxu0 %v2199_v45  ;;  %v5080_v45 = vld [vmem:[%s6555_s30 + $0x58] sm:$0xff]  }
 0xef1   :  { %4785 = vmatprep.subr.bf16.mxu0 %v5262_v31 }
 0xf07   :  { %v2475_v46 = vpop.f32.mrf.mxu1 }
 0xf08   :  { %v2476_v50 = vadd.f32 %v4113_v47, %v2475_v46  ;;  %v5081_v46 = vld [vmem:[%s6555_s30 + $0x50] sm:$0xff]  }
 0xf09   :  { %v4823_v48 = vpop.f32.mrf.mxu1 }
 0xf0b   :  { %v2478_v49 = vpop.f32.mrf.mxu1 }
 0xf0c   :  { %v2479_v51 = vadd.f32 %v4113_v47, %v2478_v49  ;;  %v5082_v47 = vld [vmem:[%s6555_s30 + $0x48] sm:$0xff]  }
 0xf0d   :  { %v4824_v52 = vpop.f32.mrf.mxu1 }
 0xf0e   :  { %v2597_v55 = vpack.c.bf16 %v2479_v51, %v2476_v50 }
 0xf10   :  { %v2602_v56 = vsel %vm582_vm3, %v2597_v55, 0 }
 0xf11   :  { %4846 = vmatpush3.bf16.xpose.msra.mxu1 %v2602_v56  ;;  %v4087_v56 = vld [vmem:[%s6550_s9 + $0x7] ss:$0 sm:$0xff] }
 0xf12   :  { %4851 = vmatprep.subr.bf16.mxu1 %v5262_v31 }
 0xf98   :  { %v2165_v57 = vpop.f32.mrf.mxu0 }
 0xf99   :  { %v2172_v58 = vmul.f32 0.125, %v2165_v57 }
 0xf9a   :  { %v4777_v59 = vpop.f32.mrf.mxu0 }
 0xf9b   :  { %v2174_v63 = vsel %vm5676_vm4, %v2172_v58, -1e+30 }
 0xf9c   :  { %v2168_v3 = vpop.f32.mrf.mxu0  ;;  %v2176_v4 = vsel %vm634_vm5, %v2174_v63, -inf }
 0xf9d   :  { %v2173_v7 = vmul.f32 0.125, %v2168_v3  ;;  %2177 = vmax.xlane.f32.xlu1 %v2176_v4 }
 0xf9e   :  { %v4778_v9 = vpop.f32.mrf.mxu0 }
 0xf9f   :  { %v2175_v8 = vsel %vm5683_vm6, %v2173_v7, -1e+30  ;;  %v4139_v9 = vld [vmem:[%s6550_s9 + $0xb] ss:$0 sm:$0xff] }
 0xfa0   :  { %v2179_v19 = vsel %vm634_vm5, %v2175_v8, -inf }
 0xfa1   :  { %2180 = vmax.xlane.f32.xlu0 %v2179_v19 }
0x1026   :  { %v2178_v10 = vpop.xlane.xlu1 %2177 }
0x1027   :  { %v2182_v12 = vsub.f32 %v2174_v63, %v2178_v10 }
0x1029   :  { %v2184_v14 = vmul.f32 1.442695, %v2182_v12 }
0x102a   :  { %v2181_v16 = vpop.xlane.xlu0 %2180 }
0x102b   :  { %5180 = vpow2.f32 %v2184_v14  ;;  %v2183_v17 = vsub.f32 %v2175_v8, %v2181_v16 }
0x102d   :  { %v2186_v18 = vmul.f32 1.442695, %v2183_v17 }
0x102f   :  { %5182 = vpow2.f32 %v2186_v18 }
0x1038   :  { %v5181_v5 = vpop.eup %5180 }
0x1039   :  { %v2188_v21 = vsel %vm634_vm5, %v5181_v5, 0.0 }
0x103a   :  { %2189 = vadd.xlane.f32.xlu1 %v2188_v21 }
0x103c   :  { %v5183_v24 = vpop.eup %5182 }
0x103d   :  { %v2191_v26 = vsel %vm634_vm5, %v5183_v24, 0.0 }
0x103e   :  { %2192 = vadd.xlane.f32.xlu0 %v2191_v26 }
0x10c3   :  { %v2190_v53 = vpop.xlane.xlu1 %2189 }
0x10c4   :  { %5184 = vrcp.f32 %v2190_v53 }
0x10c7   :  { %v2193_v6 = vpop.xlane.xlu0 %2192 }
0x10c8   :  { %5186 = vrcp.f32 %v2193_v6 }
0x10d1   :  { %v5185_v27 = vpop.eup %5184 }
0x10d2   :  { %v2195_v54 = vmul.f32 %v5185_v27, %v5181_v5 }
0x10d5   :  { %v5187_v28 = vpop.eup %5186 }
0x10d6   :  { %v2197_v29 = vmul.f32 %v5187_v28, %v5183_v24 }
0x10d8   :  { %v2198_v22 = vpack.c.bf16 %v2197_v29, %v2195_v54 }
0x10da   :  { %4782 = vmatmul.mubr.msk.bf16.vlgmr.msra.gmra.mxu0 %vm634_vm5, %v2198_v22 }
0x10db   :  { %4786 = vmatpush3.bf16.msra.mxu0 %v5064_v33  ;;  %4801 = vmatprep.mubr.msk.bf16.mxu0 %vm5263_vm2, %v5262_v31 }
0x10dc   :  { %4787 = vmatprep.subr.bf16.mxu0 %v5262_v31 }
0x10df   :  { %4788 = vmatpush3.bf16.msra.mxu0 %v5065_v23 }
0x10e0   :  { %4789 = vmatprep.subr.bf16.mxu0 %v5262_v31 }
0x10e3   :  { %4790 = vmatpush3.bf16.msra.mxu0 %v5066_v25 }
0x10e4   :  { %4791 = vmatprep.subr.bf16.mxu0 %v5262_v31 }
0x10e7   :  { %4792 = vmatpush3.bf16.msra.mxu0 %v5067_v30 }
0x10e8   :  { %4793 = vmatprep.subr.bf16.mxu0 %v5262_v31 }
0x10eb   :  { %4794 = vmatpush3.bf16.msra.mxu0 %v5068_v32 }
0x10ec   :  { %4795 = vmatprep.subr.bf16.mxu0 %v5262_v31 }
0x10ef   :  { %4796 = vmatpush3.bf16.msra.mxu0 %v5069_v34 }
0x10f0   :  { %4797 = vmatprep.subr.bf16.mxu0 %v5262_v31 }
0x10f3   :  { %4798 = vmatpush3.bf16.msra.mxu0 %v5070_v35 }
0x10f4   :  { %4799 = vmatprep.subr.bf16.mxu0 %v5262_v31 }
0x10f7   :  { %4800 = vmatpush3.bf16.msra.mxu0 %v5071_v36 }
0x10f8   :  { %4825 = vmatprep.subr.bf16.mxu0 %v5262_v31 }
0x10fa   :  { %4802 = vmatmul.mubr.bf16.vlgmr.msra.gmra.mxu0 %v6022_v0 }
0x10fb   :  { %4826 = vmatpush3.bf16.msra.mxu0 %v5072_v37  ;;  %4841 = vmatprep.mubr.msk.bf16.mxu0 %vm5263_vm2, %v5262_v31 }
0x10fc   :  { %4827 = vmatprep.subr.bf16.mxu0 %v5262_v31 }
0x10ff   :  { %4828 = vmatpush3.bf16.msra.mxu0 %v5073_v38 }
0x1100   :  { %4829 = vmatprep.subr.bf16.mxu0 %v5262_v31 }
0x1103   :  { %4830 = vmatpush3.bf16.msra.mxu0 %v5074_v39 }
0x1104   :  { %4831 = vmatprep.subr.bf16.mxu0 %v5262_v31 }
0x1107   :  { %4832 = vmatpush3.bf16.msra.mxu0 %v5075_v40 }
0x1108   :  { %4833 = vmatprep.subr.bf16.mxu0 %v5262_v31 }
0x110b   :  { %4834 = vmatpush3.bf16.msra.mxu0 %v5076_v41 }
0x110c   :  { %4835 = vmatprep.subr.bf16.mxu0 %v5262_v31 }
0x110f   :  { %4836 = vmatpush3.bf16.msra.mxu0 %v5077_v42 }
0x1110   :  { %4837 = vmatprep.subr.bf16.mxu0 %v5262_v31 }
0x1113   :  { %4838 = vmatpush3.bf16.msra.mxu0 %v5078_v43 }
0x1114   :  { %4839 = vmatprep.subr.bf16.mxu0 %v5262_v31 }
0x1117   :  { %4840 = vmatpush3.bf16.msra.mxu0 %v5079_v44  ;;  %v5084_v44 = vld [vmem:[%s6555_s30 + $0x78] sm:$0xff]  }
0x1118   :  { %4869 = vmatprep.subr.bf16.mxu0 %v5262_v31 }
0x111a   :  { %4842 = vmatmul.mubr.bf16.vlgmr.msra.gmra.mxu0 %v6022_v0  ;;  %v5083_v0 = vld [vmem:[%s6555_s30 + $0x40] sm:$0xff]  }
0x111b   :  { %4870 = vmatpush3.bf16.msra.mxu0 %v5080_v45  ;;  %4877 = vmatprep.mubr.msk.bf16.mxu0 %vm5263_vm2, %v5262_v31 }
0x111c   :  { %4871 = vmatprep.subr.bf16.mxu0 %v5262_v31 }
0x111f   :  { %4872 = vmatpush3.bf16.msra.mxu0 %v5081_v46  ;;  %v5085_v46 = vld [vmem:[%s6555_s30 + $0x70] sm:$0xff]  }
0x1120   :  { %4873 = vmatprep.subr.bf16.mxu0 %v5262_v31 }
0x1123   :  { %4874 = vmatpush3.bf16.msra.mxu0 %v5082_v47  ;;  %v5086_v47 = vld [vmem:[%s6555_s30 + $0x68] sm:$0xff]  }
0x1124   :  { %4875 = vmatprep.subr.bf16.mxu0 %v5262_v31 }
0x1127   :  { %4876 = vmatpush3.bf16.msra.mxu0 %v5083_v0  ;;  %v5087_v0 = vld [vmem:[%s6555_s30 + $0x60] sm:$0xff]  }
0x119a   :  { %v2237_v48 = vpop.f32.mrf.mxu0 }
0x119c   :  { %v4783_v49 = vpop.f32.mrf.mxu0 }
0x119e   :  { %v2240_v50 = vpop.f32.mrf.mxu0 }
0x119f   :  { %v2244_v51 = vpack.c.bf16 %v2240_v50, %v2237_v48 }
0x11a0   :  { %v4784_v52 = vpop.f32.mrf.mxu0 }
0x11a1   :  { %4878 = vmatmul.mubr.msk.bf16.vlgmr.msra.gmra.mxu0 %vm582_vm3, %v2244_v51 }
0x11ba   :  { %v2361_v55 = vpop.f32.mrf.mxu0 }
0x11bb   :  { %v2362_v59 = vadd.f32 %v4087_v56, %v2361_v55 }
0x11bc   :  { %v4803_v57 = vpop.f32.mrf.mxu0 }
0x11be   :  { %v2364_v58 = vpop.f32.mrf.mxu0 }
0x11bf   :  { %v2365_v63 = vadd.f32 %v4087_v56, %v2364_v58  ;;  %v4169_v56 = vld [vmem:[%s6556_s29 + $0x1] ss:$0 sm:$0xff] }
0x11c0   :  { %v4804_v3 = vpop.f32.mrf.mxu0 }
0x11c1   :  { %v2596_v4 = vpack.c.bf16 %v2365_v63, %v2362_v59 }
0x11c3   :  { %4848 = vmatmul.mubr.msk.bf16.vlgmr.msra.gmra.mxu1 %vm582_vm3, %v2596_v4 }
0x11c4   :  { %4853 = vmatprep.mubr.msk.bf16.mxu1 %vm5263_vm2, %v5262_v31 }
0x11da   :  { %v2589_v7 = vpop.f32.mrf.mxu0 }
0x11db   :  { %v2590_v10 = vadd.f32 %v4139_v9, %v2589_v7 }
0x11dc   :  { %v4843_v8 = vpop.f32.mrf.mxu0 }
0x11de   :  { %v2592_v19 = vpop.f32.mrf.mxu0 }
0x11df   :  { %v2593_v12 = vadd.f32 %v4139_v9, %v2592_v19  ;;  %v5090_v19 = vld [vmem:[%s6514_s12 + $0xf4] ss:$8 sps:$4 sm:$0xff]  }
0x11e0   :  { %v4844_v14 = vpop.f32.mrf.mxu0 }
0x11e1   :  { %v2672_v16 = vpack.c.bf16 %v2593_v12, %v2590_v10 }
0x11e3   :  { %4852 = vmatpush3.bf16.msra.mxu1 %v2672_v16 }
0x11e4   :  { %4857 = vmatprep.subr.bf16.mxu1 %v5262_v31 }
0x1261   :  { %v2856_v17 = vpop.f32.mrf.mxu0 }
0x1263   :  { %v4879_v18 = vpop.f32.mrf.mxu0 }
0x1265   :  { %v6224_v5 = vpop.f32.mrf.mxu0 }
0x1267   :  { %v4880_v21 = vpop.f32.mrf.mxu0 }
0x1268   :  { %v5091_v21 = vld [vmem:[%s6514_s12 + $0xe0] ss:$8 sps:$4 sm:$0xff]  }
0x1283   :  { %v2638_v24 = vpop.f32.mrf.mxu1 }
0x1284   :  { %v2645_v26 = vmul.f32 0.125, %v2638_v24  ;;  %v5096_v24 = vld [vmem:[%s6514_s12 + $0xd4] ss:$8 sps:$4 sm:$0xff]  }
0x1285   :  { %v4849_v53 = vpop.f32.mrf.mxu1 }
0x1286   :  { %v2647_v6 = vsel %vm5676_vm4, %v2645_v26, -1e+30  ;;  %v5094_v26 = vld [vmem:[%s6514_s12 + $0xd0] ss:$8 sps:$4 sm:$0xff]   ;;  %v5097_v53 = vld [vmem:[%s6514_s12 + $0xc0] ss:$8 sps:$4 sm:$0xff]  }
0x1287   :  { %v2641_v27 = vpop.f32.mrf.mxu1  ;;  %v2649_v28 = vsel %vm634_vm5, %v2647_v6, -inf }
0x1288   :  { %v2646_v54 = vmul.f32 0.125, %v2641_v27  ;;  %2650 = vmax.xlane.f32.xlu1 %v2649_v28  ;;  %v5102_v27 = vld [vmem:[%s6514_s12 + $0xb4] ss:$8 sps:$4 sm:$0xff]   ;;  %v5100_v28 = vld [vmem:[%s6514_s12 + $0xb0] ss:$8 sps:$4 sm:$0xff]  }
0x1289   :  { %v4850_v29 = vpop.f32.mrf.mxu1 }
0x128a   :  { %v2648_v33 = vsel %vm5683_vm6, %v2646_v54, -1e+30  ;;  %v5105_v54 = vld [vmem:[%s6514_s12 + $0xa4] ss:$8 sps:$4 sm:$0xff]   ;;  %v5103_v29 = vld [vmem:[%s6514_s12 + $0xa0] ss:$8 sps:$4 sm:$0xff]  }
0x128b   :  { %v2652_v22 = vsel %vm634_vm5, %v2648_v33, -inf }
0x128c   :  { %2653 = vmax.xlane.f32.xlu0 %v2652_v22  ;;  %v5106_v22 = vld [vmem:[%s6514_s12 + $0x90] ss:$8 sps:$4 sm:$0xff]  }
0x1311   :  { %v2651_v23 = vpop.xlane.xlu1 %2650 }
0x1312   :  { %v2655_v25 = vsub.f32 %v2647_v6, %v2651_v23  ;;  %v5099_v6 = vld [vmem:[%s6514_s12 + $0xc4] ss:$8 sps:$4 sm:$0xff]  }
0x1313   :  { %v5111_v23 = vld [vmem:[%s6514_s12 + $0x84] ss:$8 sps:$4 sm:$0xff]  }
0x1314   :  { %v2657_v30 = vmul.f32 1.442695, %v2655_v25  ;;  %v5109_v25 = vld [vmem:[%s6514_s12 + $0x80] ss:$8 sps:$4 sm:$0xff]  }
0x1315   :  { %v2654_v32 = vpop.xlane.xlu0 %2653 }
0x1316   :  { %5188 = vpow2.f32 %v2657_v30  ;;  %v2656_v34 = vsub.f32 %v2648_v33, %v2654_v32  ;;  %v5108_v33 = vld [vmem:[%s6514_s12 + $0x94] ss:$8 sps:$4 sm:$0xff]  }
0x1318   :  { %v2659_v1 = vmul.f32 1.442695, %v2656_v34 }
0x131a   :  { %5190 = vpow2.f32 %v2659_v1 }
0x1323   :  { %v5189_v35 = vpop.eup %5188 }
0x1324   :  { %v2661_v36 = vsel %vm634_vm5, %v5189_v35, 0.0 }
0x1325   :  { %2662 = vadd.xlane.f32.xlu1 %v2661_v36 }
0x1327   :  { %v5191_v37 = vpop.eup %5190 }
0x1328   :  { %v2664_v38 = vsel %vm634_vm5, %v5191_v37, 0.0 }
0x1329   :  { %2665 = vadd.xlane.f32.xlu0 %v2664_v38 }
0x13ae   :  { %v2663_v11 = vpop.xlane.xlu1 %2662 }
0x13af   :  { %5192 = vrcp.f32 %v2663_v11  ;;  %v4172_v11 = vld [vmem:[%s6512_s10 + $0x1] ss:$0 sm:$0xff] }
0x13b2   :  { %v2666_v39 = vpop.xlane.xlu0 %2665 }
0x13b3   :  { %5194 = vrcp.f32 %v2666_v39 }
0x13bc   :  { %v5193_v40 = vpop.eup %5192 }
0x13bd   :  { %v2668_v42 = vmul.f32 %v5193_v40, %v5189_v35 }
0x13c0   :  { %v5195_v41 = vpop.eup %5194 }
0x13c1   :  { %v2670_v43 = vmul.f32 %v5195_v41, %v5191_v37 }
0x13c3   :  { %v2671_v45 = vpack.c.bf16 %v2670_v43, %v2668_v42  ;;  %v4173_v42 = vld [vmem:[%s6513_s11 + $0x1] ss:$0 sm:$0xff] }
0x13c5   :  { %4854 = vmatmul.mubr.msk.bf16.vlgmr.msra.gmra.mxu1 %vm634_vm5, %v2671_v45 }
0x13c6   :  { %4858 = vmatpush3.bf16.msra.mxu1 %v5084_v44  ;;  %4865 = vmatprep.mubr.msk.bf16.mxu1 %vm5263_vm2, %v5262_v31 }
0x13c7   :  { %4859 = vmatprep.subr.bf16.mxu1 %v5262_v31 }
0x13ca   :  { %4860 = vmatpush3.bf16.msra.mxu1 %v5085_v46 }
0x13cb   :  { %4861 = vmatprep.subr.bf16.mxu1 %v5262_v31 }
0x13ce   :  { %4862 = vmatpush3.bf16.msra.mxu1 %v5086_v47  ;;  %v5112_v47 = vld [vmem:[%s6516_s14 + $0xf8] sm:$0xff]  }
0x13cf   :  { %4863 = vmatprep.subr.bf16.mxu1 %v5262_v31  ;;  %4467 = vmatprep.subr.bf16.mxu0 %v5112_v47 }
0x13d2   :  { %4864 = vmatpush3.bf16.msra.mxu1 %v5087_v0  ;;  %v5113_v0 = vld [vmem:[%s6516_s14 + $0xb8] sm:$0xff]  }
0x13d3   :  { %3028 = vmatprep.subr.bf16.mxu1 %v5090_v19  ;;  %4468 = vmatpush3.bf16.msra.mxu0 %v5113_v0 }
0x1485   :  { %v2710_v48 = vpop.f32.mrf.mxu1 }
0x1487   :  { %v4855_v49 = vpop.f32.mrf.mxu1 }
0x1488   :  { %v5115_v49 = vld [vmem:[%s6516_s14 + $0xb0] sm:$0xff]  }
0x1489   :  { %v2713_v50 = vpop.f32.mrf.mxu1 }
0x148a   :  { %v2717_v51 = vpack.c.bf16 %v2713_v50, %v2710_v48  ;;  %v5114_v48 = vld [vmem:[%s6516_s14 + $0xf0] sm:$0xff]   ;;  %v5116_v50 = vld [vmem:[%s6516_s14 + $0xe8] sm:$0xff]  }
0x148b   :  { %v4856_v52 = vpop.f32.mrf.mxu1  ;;  %4469 = vmatprep.subr.bf16.mxu0 %v5114_v48 }
0x148c   :  { %4866 = vmatmul.mubr.msk.bf16.vlgmr.msra.gmra.mxu1 %vm582_vm3, %v2717_v51  ;;  %4470 = vmatpush3.bf16.msra.mxu0 %v5115_v49  ;;  %v5117_v51 = vld [vmem:[%s6516_s14 + $0xa8] sm:$0xff]   ;;  %v5118_v52 = vld [vmem:[%s6516_s14 + $0xe0] sm:$0xff]  }
0x148d   :  { %3060 = vmatprep.mubr.bf16.mxu1 %v5260_v2  ;;  %v5088_v2 = vld [vmem:[%s6514_s12 + $0xf0] ss:$8 sps:$4 sm:$0xff]   ;;  %4471 = vmatprep.subr.bf16.mxu0 %v5116_v50 }
0x148e   :  { %3029 = vmatpush1.bf16.msra.mxu1 %v5088_v2 }
0x1490   :  { %4472 = vmatpush3.bf16.msra.mxu0 %v5117_v51 }
0x1491   :  { %4473 = vmatprep.subr.bf16.mxu0 %v5118_v52  ;;  %v4240_v52 = vld [vmem:[%s6517_s15 + $0x1] ss:$0 sm:$0xff] }
0x154c   :  { %v2788_v55 = vpop.f32.mrf.mxu1 }
0x154d   :  { %v2857_v57 = vadd.f32 %v2856_v17, %v2788_v55  ;;  %v5119_v55 = vld [vmem:[%s6516_s14 + $0xa0] sm:$0xff]  }
0x154e   :  { %v4867_v58 = vpop.f32.mrf.mxu1  ;;  %4474 = vmatpush3.bf16.msra.mxu0 %v5119_v55 }
0x154f   :  { %v2871_v59 = vadd.f32 %v4169_v56, %v2857_v57  ;;  %v5121_v57 = vld [vmem:[%s6516_s14 + $0x98] sm:$0xff]   ;;  %v5122_v58 = vld [vmem:[%s6516_s14 + $0xd0] sm:$0xff]  }
0x1550   :  { %v2791_v63 = vpop.f32.mrf.mxu1 }
0x1551   :  { %v2860_v3 = vadd.f32 %v6224_v5, %v2791_v63  ;;  %v2873_v4 = vadd.f32 %v2871_v59, %v6013_v61  ;;  %v5093_v5 = vld [vmem:[%s6514_s12 + $0xe4] ss:$8 sps:$4 sm:$0xff]   ;;  %v5123_v59 = vld [vmem:[%s6516_s14 + $0x90] sm:$0xff]  }
0x1552   :  { %v4868_v7 = vpop.f32.mrf.mxu1  ;;  %3030 = vmatprep.subr.bf16.mxu1 %v5093_v5  ;;  %v5124_v63 = vld [vmem:[%s6516_s14 + $0xc8] sm:$0xff]  }
0x1553   :  { %v2872_v9 = vadd.f32 %v4169_v56, %v2860_v3  ;;  %2879 = vadd.xlane.f32.xlu1 %v2873_v4  ;;  %3031 = vmatpush1.bf16.msra.mxu1 %v5091_v21  ;;  %v5120_v56 = vld [vmem:[%s6516_s14 + $0xd8] sm:$0xff]   ;;  %v5125_v3 = vld [vmem:[%s6516_s14 + $0x88] sm:$0xff]   ;;  %v5127_v7 = vld [vmem:[%s6516_s14 + $0x80] sm:$0xff]  }
0x1554   :  { %3032 = vmatprep.subr.bf16.mxu1 %v5096_v24  ;;  %4475 = vmatprep.subr.bf16.mxu0 %v5120_v56 }
0x1555   :  { %v2874_v8 = vadd.f32 %v2872_v9, %v6015_v62  ;;  %4476 = vmatpush3.bf16.msra.mxu0 %v5121_v57  ;;  %v4190_v9 = vld [vmem:[%s6515_s13 + $0x2] sm:$0x3] }
0x1556   :  { %4477 = vmatprep.subr.bf16.mxu0 %v5122_v58  ;;  %v2945_v2 = vrot.slane %v4190_v9, %v1397_v15 }
0x1557   :  { %2881 = vadd.xlane.f32.xlu0 %v2874_v8  ;;  %3033 = vmatpush1.bf16.msra.mxu1 %v5094_v26 }
0x1558   :  { %3034 = vmatprep.subr.bf16.mxu1 %v5099_v6 }
0x1559   :  { %4478 = vmatpush3.bf16.msra.mxu0 %v5123_v59 }
0x155a   :  { %4479 = vmatprep.subr.bf16.mxu0 %v5124_v63 }
0x155b   :  { %3035 = vmatpush1.bf16.msra.mxu1 %v5097_v53 }
0x155c   :  { %3036 = vmatprep.subr.bf16.mxu1 %v5102_v27 }
0x155d   :  { %4480 = vmatpush3.bf16.msra.mxu0 %v5125_v3 }
0x155f   :  { %3037 = vmatpush1.bf16.msra.mxu1 %v5100_v28 }
0x1560   :  { %3038 = vmatprep.subr.bf16.mxu1 %v5105_v54 }
0x1563   :  { %3039 = vmatpush1.bf16.msra.mxu1 %v5103_v29 }
0x1564   :  { %3040 = vmatprep.subr.bf16.mxu1 %v5108_v33 }
0x1567   :  { %3041 = vmatpush1.bf16.msra.mxu1 %v5106_v22 }
0x1568   :  { %3042 = vmatprep.subr.bf16.mxu1 %v5111_v23 }
0x156b   :  { %3043 = vmatpush1.bf16.msra.mxu1 %v5109_v25 }
0x156c   :  { %4881 = vmatprep.subr.mxu1 %v5262_v31 }
0x15dc   :  { %v2880_v10 = vpop.xlane.xlu1 %2879 }
0x15dd   :  { %v2883_v12 = vmul.f32 0.0078125, %v2880_v10 }
0x15df   :  { %v2885_v14 = vsub.f32 %v2873_v4, %v2883_v12  ;;  %v5126_v4 = vld [vmem:[%s6516_s14 + $0xc0] sm:$0xff]  }
0x15e0   :  { %v2882_v61 = vpop.xlane.xlu0 %2881  ;;  %4481 = vmatprep.subr.bf16.mxu0 %v5126_v4 }
0x15e1   :  { %v2884_v16 = vmul.f32 0.0078125, %v2882_v61  ;;  %v2887_v17 = vmul.f32 %v2885_v14, %v2885_v14  ;;  %4482 = vmatpush3.bf16.msra.mxu0 %v5127_v7 }
0x15e2   :  { %4908 = vmatprep.subr.bf16.mxu0 %v5262_v31 }
0x15e3   :  { %v2886_v18 = vsub.f32 %v2874_v8, %v2884_v16  ;;  %2889 = vadd.xlane.f32.xlu1 %v2887_v17  ;;  %v2941_v8 = vrot.slane %v4190_v9, %v1393_v13 }
0x15e5   :  { %v2888_v62 = vmul.f32 %v2886_v18, %v2886_v18 }
0x15e7   :  { %2891 = vadd.xlane.f32.xlu0 %v2888_v62 }
0x166c   :  { %v2890_v30 = vpop.xlane.xlu1 %2889 }
0x166d   :  { %v2893_v32 = vmul.f32 0.0078125, %v2890_v30 }
0x166f   :  { %v2895_v34 = vadd.f32 1e-05, %v2893_v32 }
0x1670   :  { %v2892_v1 = vpop.xlane.xlu0 %2891 }
0x1671   :  { %5196 = vrsqrt.f32 %v2895_v34  ;;  %v2894_v35 = vmul.f32 0.0078125, %v2892_v1 }
0x1673   :  { %v2896_v36 = vadd.f32 1e-05, %v2894_v35 }
0x1675   :  { %5198 = vrsqrt.f32 %v2896_v36 }
0x167e   :  { %v5197_v37 = vpop.eup %5196 }
0x167f   :  { %v2899_v38 = vmul.f32 %v5197_v37, %v2885_v14 }
0x1681   :  { %v2907_v41 = vmul.f32 %v4172_v11, %v2899_v38 }
0x1682   :  { %v5199_v39 = vpop.eup %5198 }
0x1683   :  { %v2900_v40 = vmul.f32 %v5199_v39, %v2886_v18  ;;  %v6315_v44 = vadd.f32 %v4173_v42, %v2907_v41 }
0x1685   :  { %v2908_v43 = vmul.f32 %v4172_v11, %v2900_v40 }
0x1687   :  { %v6317_v45 = vadd.f32 %v4173_v42, %v2908_v43 }
0x1689   :  { %v2917_v46 = vpack.c.bf16 %v6317_v45, %v6315_v44 }
0x168b   :  { %3061 = vmatmul.mubr.bf16.vlgmr.msra.gmra.mxu1 %v2917_v46 }
0x168c   :  { %4885 = vmatprep.mubr.msk.f32.mxu1 %vm5263_vm2, %v5262_v31 }
0x174b   :  { %v3062_v19 = vpop.f32.mrf.mxu1 }
0x174c   :  { %v3063_v10 = vadd.f32 %v3062_v19, %v2941_v8 }
0x174d   :  { %v3064_v12 = vpop.f32.mrf.mxu1 }
0x174e   :  { %v3071_v14 = vmul.f32 %v3063_v10, %v3063_v10  ;;  %v3065_v61 = vadd.f32 %v3064_v12, %v2945_v2 }
0x174f   :  { %v3066_v16 = vpop.f32.mrf.mxu1 }
0x1750   :  { %v3075_v17 = vmul.f32 %v3071_v14, %v3063_v10  ;;  %v3072_v18 = vmul.f32 %v3065_v61, %v3065_v61  ;;  %v3067_v62 = vadd.f32 %v3066_v16, %v2941_v8  ;;  %v3331_v16 = vld [vmem:[%s6557_s26] sm:$0x3] }
0x1751   :  { %v3068_v5 = vpop.f32.mrf.mxu1 }
0x1752   :  { %v3079_v21 = vmul.f32 0.044715, %v3075_v17  ;;  %v3076_v24 = vmul.f32 %v3072_v18, %v3065_v61  ;;  %v3073_v26 = vmul.f32 %v3067_v62, %v3067_v62  ;;  %v3069_v53 = vadd.f32 %v3068_v5, %v2945_v2 }
0x1754   :  { %v3083_v6 = vadd.f32 %v3079_v21, %v3063_v10  ;;  %v3080_v27 = vmul.f32 0.044715, %v3076_v24  ;;  %v3077_v13 = vmul.f32 %v3073_v26, %v3067_v62  ;;  %v3074_v28 = vmul.f32 %v3069_v53, %v3069_v53 }
0x1756   :  { %v3087_v60 = vmul.f32 0.7978846, %v3083_v6  ;;  %v3084_v15 = vadd.f32 %v3080_v27, %v3065_v61  ;;  %v3081_v54 = vmul.f32 0.044715, %v3077_v13  ;;  %v3078_v29 = vmul.f32 %v3074_v28, %v3069_v53 }
0x1758   :  { %v3088_v33 = vmul.f32 0.7978846, %v3084_v15  ;;  %v3085_v22 = vadd.f32 %v3081_v54, %v3067_v62  ;;  %v3082_v23 = vmul.f32 0.044715, %v3078_v29  ;;  %5200 = vtanh.f32 %v3087_v60  ;;  %v4260_v60 = vld [vmem:[%s6519_s17 + $0x1] ss:$0 sm:$0xff] }
0x175a   :  { %5202 = vtanh.f32 %v3088_v33  ;;  %v3089_v25 = vmul.f32 0.7978846, %v3085_v22  ;;  %v3086_v30 = vadd.f32 %v3082_v23, %v3069_v53  ;;  %v5128_v33 = vld [vmem:[%s6520_s18 + $0x38] sm:$0xff]   ;;  %v5129_v22 = vld [vmem:[%s6520_s18 + $0x30] sm:$0xff]   ;;  %v5130_v23 = vld [vmem:[%s6520_s18 + $0x28] sm:$0xff]  }
0x175c   :  { %5204 = vtanh.f32 %v3089_v25  ;;  %v3090_v32 = vmul.f32 0.7978846, %v3086_v30  ;;  %v5131_v25 = vld [vmem:[%s6520_s18 + $0x20] sm:$0xff]   ;;  %v5132_v30 = vld [vmem:[%s6520_s18 + $0x18] sm:$0xff]  }
0x175e   :  { %5206 = vtanh.f32 %v3090_v32  ;;  %v5133_v32 = vld [vmem:[%s6520_s18 + $0x10] sm:$0xff]  }
0x1765   :  { %v5201_v34 = vpop.eup %5200 }
0x1766   :  { %v3095_v37 = vadd.f32 1.0, %v5201_v34  ;;  %v5134_v34 = vld [vmem:[%s6520_s18 + $0x8] sm:$0xff]  }
0x1767   :  { %v5203_v1 = vpop.eup %5202 }
0x1768   :  { %v3096_v35 = vadd.f32 1.0, %v5203_v1  ;;  %v3099_v42 = vmul.f32 0.5, %v3095_v37  ;;  %v5135_v1 = vld [vmem:[%s6520_s18] sm:$0xff]  }
0x1769   :  { %v5205_v36 = vpop.eup %5204 }
0x176a   :  { %v3097_v38 = vadd.f32 1.0, %v5205_v36  ;;  %v3100_v41 = vmul.f32 0.5, %v3096_v35  ;;  %v3103_v48 = vmul.f32 %v3099_v42, %v3063_v10 }
0x176b   :  { %v5207_v11 = vpop.eup %5206 }
0x176c   :  { %v3101_v39 = vmul.f32 0.5, %v3097_v38  ;;  %v3098_v40 = vadd.f32 1.0, %v5207_v11  ;;  %v3104_v47 = vmul.f32 %v3100_v41, %v3065_v61  ;;  %v4263_v38 = vld [vmem:[%s6521_s19] ss:$0 sm:$0xff] }
0x176e   :  { %v3102_v43 = vmul.f32 0.5, %v3098_v40  ;;  %v3105_v46 = vmul.f32 %v3101_v39, %v3067_v62 }
0x1770   :  { %v3106_v0 = vmul.f32 %v3102_v43, %v3069_v53  ;;  %v3107_v50 = vpack.c.bf16 %v3105_v46, %v3103_v48  ;;  %v4259_v53 = vld [vmem:[%s6518_s16 + $0x1] ss:$0 sm:$0xff] }
0x1772   :  { %v3108_v49 = vpack.c.bf16 %v3106_v0, %v3104_v47 }
0x1774   :  { %3278 = vmatprep.mubr.bf16.mxu0 %v3108_v49 }
0x1775   :  { %3279 = vmatmul.mubr.bf16.vlgmr.msra.gmra.mxu0 %v3107_v50 }
0x1776   :  { %4924 = vmatprep.mubr.msk.bf16.mxu0 %vm5263_vm2, %v5262_v31 }
0x1835   :  { %v4483_v51 = vpop.f32.mrf.mxu0 }
0x1837   :  { %v4484_v55 = vpop.f32.mrf.mxu0 }
0x1838   :  { %v4485_v56 = vadd.f32 %v4484_v55, %v4483_v51 }
0x1839   :  { %v4486_v57 = vpop.f32.mrf.mxu0 }
0x183a   :  { %v3281_v58 = vadd.f32 %v4485_v56, %v4240_v52  ;;  %v5136_v56 = vld [vmem:[%s6524_s22 + $0x38] sm:$0xff]  }
0x183b   :  { %v4487_v59 = vpop.f32.mrf.mxu0  ;;  %4909 = vmatpush3.bf16.msra.mxu0 %v5136_v56 }
0x183c   :  { %v4488_v63 = vadd.f32 %v4487_v59, %v4486_v57  ;;  %v3287_v3 = vadd.f32 %v3281_v58, %v6315_v44  ;;  %v5137_v57 = vld [vmem:[%s6524_s22 + $0x30] sm:$0xff]   ;;  %4910 = vmatprep.subr.bf16.mxu0 %v5262_v31 }
0x183e   :  { %v3284_v4 = vadd.f32 %v4488_v63, %v4240_v52  ;;  %3293 = vadd.xlane.f32.xlu0 %v3287_v3 }
0x183f   :  { %4911 = vmatpush3.bf16.msra.mxu0 %v5137_v57 }
0x1840   :  { %v3288_v7 = vadd.f32 %v3284_v4, %v6317_v45  ;;  %4912 = vmatprep.subr.bf16.mxu0 %v5262_v31 }
0x1842   :  { %3295 = vadd.xlane.f32.xlu1 %v3288_v7 }
0x18c7   :  { %v3294_v9 = vpop.xlane.xlu0 %3293 }
0x18c8   :  { %v3297_v8 = vmul.f32 0.0078125, %v3294_v9  ;;  %v5139_v9 = vld [vmem:[%s6524_s22 + $0x20] sm:$0xff]  }
0x18ca   :  { %v3299_v2 = vsub.f32 %v3287_v3, %v3297_v8  ;;  %v5140_v8 = vld [vmem:[%s6524_s22 + $0x18] sm:$0xff]  }
0x18cb   :  { %v3296_v19 = vpop.xlane.xlu1 %3295 }
0x18cc   :  { %v3298_v10 = vmul.f32 0.0078125, %v3296_v19  ;;  %v3301_v12 = vmul.f32 %v3299_v2, %v3299_v2  ;;  %v5142_v19 = vld [vmem:[%s6524_s22 + $0x8] sm:$0xff]  }
0x18ce   :  { %v3300_v14 = vsub.f32 %v3288_v7, %v3298_v10  ;;  %3303 = vadd.xlane.f32.xlu0 %v3301_v12  ;;  %v5138_v7 = vld [vmem:[%s6524_s22 + $0x28] sm:$0xff]   ;;  %v5143_v10 = vld [vmem:[%s6524_s22] sm:$0xff]  }
0x18cf   :  { %4913 = vmatpush3.bf16.msra.mxu0 %v5138_v7 }
0x18d0   :  { %v3302_v61 = vmul.f32 %v3300_v14, %v3300_v14  ;;  %4914 = vmatprep.subr.bf16.mxu0 %v5262_v31 }
0x18d2   :  { %3305 = vadd.xlane.f32.xlu1 %v3302_v61 }
0x18d3   :  { %4915 = vmatpush3.bf16.msra.mxu0 %v5139_v9 }
0x18d4   :  { %4916 = vmatprep.subr.bf16.mxu0 %v5262_v31 }
0x18d7   :  { %4917 = vmatpush3.bf16.msra.mxu0 %v5140_v8 }
0x18d8   :  { %4918 = vmatprep.subr.bf16.mxu0 %v5262_v31 }
0x18e3   :  { %3333 = vperm.xlu1 %4935, %v3331_v16  }
0x1957   :  { %v3304_v44 = vpop.xlane.xlu0 %3303 }
0x1958   :  { %v3307_v17 = vmul.f32 0.0078125, %v3304_v44  ;;  %v4272_v44 = vld [vmem:[%s6522_s20] ss:$0 sm:$0xff]  ;;  %s5264_s20 = smov [#allocation2]  }
0x195a   :  { %v3309_v18 = vadd.f32 1e-05, %v3307_v17 }
0x195b   :  { %v3306_v45 = vpop.xlane.xlu1 %3305 }
0x195c   :  { %5208 = vrsqrt.f32 %v3309_v18  ;;  %v3308_v62 = vmul.f32 0.0078125, %v3306_v45  ;;  %v4273_v18 = vld [vmem:[%s6523_s21] ss:$0 sm:$0xff]  ;;  %s3755_s21 = sshll.u32 %s5264_s20, 4  ;;  %s3756_s21 = int_to_ptr.vmem [resolvable:$true] %s3755_s21 }
0x195d   :  { %p5221_p1 = scmp.lt.s32.totalorder %s3756_s21, %s3756_s21 }
0x195e   :  { %v3310_v5 = vadd.f32 1e-05, %v3308_v62 }
0x195f   :  { %v3334_v27 = vpop.permute.xlu1 %3333 }
0x1960   :  { %5210 = vrsqrt.f32 %v3310_v5  ;;  %vm3335_vm7 = vcmp.eq.s32.totalorder %v5453_v20, %v3334_v27 }
0x1961   :  { %v4261_v54 = vsel %vm3335_vm7, 1.0, %v5262_v31 }
0x1969   :  { %v5209_v21 = vpop.eup %5208 }
0x196a   :  { %v3313_v24 = vmul.f32 %v5209_v21, %v3299_v2  ;;  %v5141_v2 = vld [vmem:[%s6524_s22 + $0x10] sm:$0xff]  }
0x196b   :  { %4919 = vmatpush3.bf16.msra.mxu0 %v5141_v2 }
0x196c   :  { %v3321_v28 = vmul.f32 %v4259_v53, %v3313_v24  ;;  %4920 = vmatprep.subr.bf16.mxu0 %v5262_v31 }
0x196d   :  { %v5211_v26 = vpop.eup %5210 }
0x196e   :  { %v3314_v6 = vmul.f32 %v5211_v26, %v3300_v14  ;;  %v3329_v29 = vadd.f32 %v4260_v60, %v3321_v28 }
0x196f   :  { %4921 = vmatpush3.bf16.msra.mxu0 %v5142_v19 }
0x1970   :  { %v3322_v13 = vmul.f32 %v4259_v53, %v3314_v6  ;;  %4922 = vmatprep.subr.bf16.mxu0 %v5262_v31 }
0x1972   :  { %v3330_v15 = vadd.f32 %v4260_v60, %v3322_v13 }
0x1973   :  { %4923 = vmatpush3.bf16.msra.mxu0 %v5143_v10 }
0x1974   :  { %4882 = vmatpush3.msra.mxu1 %v3330_v15 }
0x1975   :  { %4883 = vmatprep.subr.mxu1 %v5262_v31 }
0x1976   :  { %4884 = vmatpush3.msra.mxu1 %v3329_v29 }
0x1977   :  { %4886 = vmatmul.mubr.msk.f32.vlgmr.msra.gmra.mxu1 %vm634_vm5, %v4261_v54  ;;  %4888 = vmatprep.subr.bf16.mxu1 %v5262_v31 }
0x1978   :  { %4889 = vmatpush3.bf16.msra.mxu1 %v5128_v33  ;;  %4904 = vmatprep.mubr.msk.bf16.mxu1 %vm5263_vm2, %v5262_v31 }
0x1979   :  { %4890 = vmatprep.subr.bf16.mxu1 %v5262_v31 }
0x197c   :  { %4891 = vmatpush3.bf16.msra.mxu1 %v5129_v22 }
0x197d   :  { %4892 = vmatprep.subr.bf16.mxu1 %v5262_v31 }
0x1980   :  { %4893 = vmatpush3.bf16.msra.mxu1 %v5130_v23 }
0x1981   :  { %4894 = vmatprep.subr.bf16.mxu1 %v5262_v31 }
0x1984   :  { %4895 = vmatpush3.bf16.msra.mxu1 %v5131_v25 }
0x1985   :  { %4896 = vmatprep.subr.bf16.mxu1 %v5262_v31 }
0x1988   :  { %4897 = vmatpush3.bf16.msra.mxu1 %v5132_v30 }
0x1989   :  { %4898 = vmatprep.subr.bf16.mxu1 %v5262_v31 }
0x198c   :  { %4899 = vmatpush3.bf16.msra.mxu1 %v5133_v32 }
0x198d   :  { %4900 = vmatprep.subr.bf16.mxu1 %v5262_v31 }
0x1990   :  { %4901 = vmatpush3.bf16.msra.mxu1 %v5134_v34 }
0x1991   :  { %4902 = vmatprep.subr.bf16.mxu1 %v5262_v31  ;;  %v4274_v31 = vld [vmem:[%s6525_s23] ss:$0 sm:$0xff]  ;;  %s5216_s23 = scalar_lea.vmem %s3756_s21, 32 }
0x1992   :  { %p5217_p0 = scmp.ne.s32.totalorder %s3756_s21, %s5216_s23  ;;  %p5222_p2 = scmp.lt.s32.totalorder %s5216_s23, %s5216_s23 }
0x1994   :  { %4903 = vmatpush3.bf16.msra.mxu1 %v5135_v1  ;;  %p5223_p3 = por %p5222_p2, %p5221_p1 }
0x1996   :  { %p5224_p4 = pnand %p5223_p3, %p5217_p0 }
0x1a37   :  { %v3407_v35 = vpop.f32.mrf.mxu1 }
0x1a38   :  { %v3411_v36 = vpack.c.bf16 %v3407_v35, %v3407_v35 }
0x1a39   :  { %v4887_v37 = vpop.f32.mrf.mxu1 }
0x1a3a   :  { %4905 = vmatmul.mubr.bf16.vlgmr.msra.gmra.mxu1 %v3411_v36 }
0x1afa   :  { %v3517_v11 = vpop.f32.mrf.mxu1 }
0x1afb   :  { %v3518_v39 = vadd.f32 %v4263_v38, %v3517_v11 }
0x1afc   :  { %v4906_v40 = vpop.f32.mrf.mxu1 }
0x1afd   :  { %v3523_v41 = vmul.f32 %v3518_v39, %v3518_v39 }
0x1afe   :  { %v3520_v42 = vpop.f32.mrf.mxu1 }
0x1aff   :  { %v3524_v43 = vmul.f32 %v3523_v41, %v3518_v39 }
0x1b00   :  { %v4907_v46 = vpop.f32.mrf.mxu1 }
0x1b01   :  { %v3525_v47 = vmul.f32 0.044715, %v3524_v43 }
0x1b03   :  { %v3526_v0 = vadd.f32 %v3525_v47, %v3518_v39 }
0x1b05   :  { %v3527_v48 = vmul.f32 0.7978846, %v3526_v0 }
0x1b07   :  { %5212 = vtanh.f32 %v3527_v48 }
0x1b14   :  { %v5213_v49 = vpop.eup %5212 }
0x1b15   :  { %v3529_v50 = vadd.f32 1.0, %v5213_v49 }
0x1b17   :  { %v3530_v51 = vmul.f32 0.5, %v3529_v50 }
0x1b19   :  { %v3531_v52 = vmul.f32 %v3530_v51, %v3518_v39 }
0x1b1b   :  { %v3535_v55 = vsel %vm3534_vm8, %v3531_v52, 0.0 }
0x1b1c   :  { %3536 = vadd.xlane.f32.xlu0 %v3535_v55 }
0x1ba5   :  { %v3537_v58 = vpop.xlane.xlu0 %3536 }
0x1ba6   :  { %v3538_v59 = vmul.f32 0.0078125, %v3537_v58 }
0x1ba8   :  { %v3539_v63 = vsub.f32 %v3531_v52, %v3538_v59 }
0x1baa   :  { %v3540_v3 = vmul.f32 %v3539_v63, %v3539_v63 }
0x1bac   :  { %v3541_v4 = vsel %vm3534_vm8, %v3540_v3, 0.0 }
0x1bad   :  { %3542 = vadd.xlane.f32.xlu0 %v3541_v4 }
0x1c36   :  { %v3543_v12 = vpop.xlane.xlu0 %3542 }
0x1c37   :  { %v3544_v14 = vmul.f32 0.0078125, %v3543_v12 }
0x1c39   :  { %v3545_v61 = vadd.f32 1e-05, %v3544_v14 }
0x1c3b   :  { %5214 = vrsqrt.f32 %v3545_v61 }
0x1c48   :  { %v5215_v16 = vpop.eup %5214 }
0x1c49   :  { %v3547_v17 = vmul.f32 %v5215_v16, %v3539_v63 }
0x1c4b   :  { %v3554_v45 = vmul.f32 %v4272_v44, %v3547_v17 }
0x1c4d   :  { %v3561_v62 = vadd.f32 %v4273_v18, %v3554_v45 }
0x1c4f   :  { %v3562_v5 = vpack.c.bf16 %v3561_v62, %v3561_v62 }
0x1c51   :  { %4925 = vmatmul.mubr.bf16.vlgmr.msra.gmra.mxu0 %v3562_v5 }
0x1d11   :  { %v3668_v21 = vpop.f32.mrf.mxu0 }
0x1d12   :  { %v3669_v24 = vadd.f32 %v4274_v31, %v3668_v21 }
0x1d13   :  { %v4926_v26 = vpop.f32.mrf.mxu0 }
0x1d14   :  { %v3674_v53 = vsel %vm3534_vm8, %v3669_v24, -inf }
0x1d15   :  { %3675 = vmax.xlane.f32.xlu0 %v3674_v53  ;;  %v3671_v6 = vpop.f32.mrf.mxu0 }
0x1d17   :  { %v4927_v27 = vpop.f32.mrf.mxu0 }
0x1d9e   :  { %v3676_v13 = vpop.xlane.xlu0 %3675 }
0x1d9f   :  { %vm3677_vm9 = vcmp.eq.f32.partialorder %v3669_v24, %v3676_v13  ;;  %v3695_v57 = vsel %vm3694_vm14, %v3676_v13, 0.0 }
0x1da0   :  { %v3678_v28 = vsel %vm3677_vm9, %v5453_v20, 128 }
0x1da1   :  { %v3679_v60 = vsel %vm3534_vm8, %v3678_v28, 2147483647 }
0x1da2   :  { %v3681_v15 = vshra.s32 %v3679_v60, 16  ;;  %v3680_v29 = vand.u32 65535, %v3679_v60 }
0x1da4   :  { %v3683_v54 = vcvt.s32.f32 %v3681_v15  ;;  %v3682_v22 = vcvt.s32.f32 %v3680_v29 }
0x1da6   :  { %3684 = vmin.xlane.f32.xlu0 %v3683_v54 }
0x1e2f   :  { %v3685_v33 = vpop.xlane.xlu0 %3684 }
0x1e30   :  { %vm3686_vm10 = vcmp.eq.f32.partialorder %v3683_v54, %v3685_v33  ;;  %v3691_v25 = vcvt.f32.s32 %v3685_v33 }
0x1e31   :  { %v3687_v23 = vsel %vm3686_vm10, %v3682_v22, inf }
0x1e32   :  { %3688 = vmin.xlane.f32.xlu1 %v3687_v23  ;;  %v3692_v32 = vshll.u32 %v3691_v25, 16 }
0x1ebb   :  { %v3689_v30 = vpop.xlane.xlu1 %3688 }
0x1ebc   :  { %v3690_v34 = vcvt.f32.s32 %v3689_v30 }
0x1ebe   :  { %v3693_v1 = vadd.s32 %v3692_v32, %v3690_v34 }
0x1ec0   :  { %vm3697_vm11 = vcmp.eq.s32.totalorder %v5453_v20, %v3693_v1  ;;  %v3696_v51 = vsel %vm3694_vm14, %v3693_v1, 0 }
0x1ec1   :  { %v3698_v35 = vsel %vm3697_vm11, -inf, %v3669_v24 }
0x1ec2   :  { %v3699_v36 = vsel %vm3534_vm8, %v3698_v35, -inf }
0x1ec3   :  { %3700 = vmax.xlane.f32.xlu0 %v3699_v36 }
0x1f4c   :  { %v3701_v37 = vpop.xlane.xlu0 %3700 }
0x1f4d   :  { %vm3702_vm12 = vcmp.eq.f32.partialorder %v3698_v35, %v3701_v37  ;;  %v3720_v58 = vsel %vm3719_vm15, %v3701_v37, %v3695_v57 }
0x1f4e   :  { %v3703_v38 = vsel %vm3702_vm12, %v5453_v20, 128 }
0x1f4f   :  { %v3704_v11 = vsel %vm3534_vm8, %v3703_v38, 2147483647 }
0x1f50   :  { %v3706_v39 = vshra.s32 %v3704_v11, 16  ;;  %v3705_v41 = vand.u32 65535, %v3704_v11 }
0x1f52   :  { %v3708_v40 = vcvt.s32.f32 %v3706_v39  ;;  %v3707_v43 = vcvt.s32.f32 %v3705_v41 }
0x1f54   :  { %3709 = vmin.xlane.f32.xlu0 %v3708_v40 }
0x1fdd   :  { %v3710_v42 = vpop.xlane.xlu0 %3709 }
0x1fde   :  { %vm3711_vm13 = vcmp.eq.f32.partialorder %v3708_v40, %v3710_v42  ;;  %v3716_v47 = vcvt.f32.s32 %v3710_v42 }
0x1fdf   :  { %v3712_v46 = vsel %vm3711_vm13, %v3707_v43, inf }
0x1fe0   :  { %3713 = vmin.xlane.f32.xlu0 %v3712_v46  ;;  %v3717_v48 = vshll.u32 %v3716_v47, 16 }
0x2069   :  { %v3714_v0 = vpop.xlane.xlu0 %3713 }
0x206a   :  { %v3715_v49 = vcvt.f32.s32 %v3714_v0 }
0x206c   :  { %v3718_v50 = vadd.s32 %v3717_v48, %v3715_v49 }
0x206e   :  { %vm3722_vm0 = vcmp.eq.s32.totalorder %v5453_v20, %v3718_v50  ;;  %v3721_v52 = vsel %vm3719_vm15, %v3718_v50, %v3696_v51 }
0x206f   :  { %v3723_v55 = vsel %vm3722_vm0, -inf, %v3698_v35 }
0x2070   :  { %v3724_v56 = vsel %vm3534_vm8, %v3723_v55, -inf }
0x2071   :  { %3725 = vmax.xlane.f32.xlu0 %v3724_v56 }
0x20fa   :  { %v3726_v59 = vpop.xlane.xlu0 %3725 }
0x20fb   :  { %vm3727_vm2 = vcmp.eq.f32.partialorder %v3723_v55, %v3726_v59  ;;  %v3745_v63 = vsel %vm3744_vm1, %v3726_v59, %v3720_v58 }
0x20fc   :  { %v3728_v3 = vsel %vm3727_vm2, %v5453_v20, 128  ;;  %3747 = vst [vmem:[#allocation2] sm:$0x3] %v3745_v63 }
0x20fd   :  { %v3729_v4 = vsel %vm3534_vm8, %v3728_v3, 2147483647 }
0x20fe   :  { %v3731_v7 = vshra.s32 %v3729_v4, 16  ;;  %v3730_v8 = vand.u32 65535, %v3729_v4 }
0x2100   :  { %v3733_v9 = vcvt.s32.f32 %v3731_v7  ;;  %v3732_v19 = vcvt.s32.f32 %v3730_v8 }
0x2102   :  { %3734 = vmin.xlane.f32.xlu0 %v3733_v9 }
0x218b   :  { %v3735_v2 = vpop.xlane.xlu0 %3734 }
0x218c   :  { %vm3736_vm3 = vcmp.eq.f32.partialorder %v3733_v9, %v3735_v2 }
0x218d   :  { %v3737_v10 = vsel %vm3736_vm3, %v3732_v19, inf }
0x218e   :  { %3738 = vmin.xlane.f32.xlu0 %v3737_v10 }
0x218f   :  { %5227 = shalt.err (!%p5224_p4)
}
0x2190   :  { %3758 = dma.vmem_to_hbm [thread:$0]  %s3756_s21, 32, %s6526_s24, [#allocation3]   ;;  %v3741_v12 = vcvt.f32.s32 %v3735_v2 }
0x2191   :  { %s5265_s15 = smov [#allocation4]  }
0x2192   :  { %v3742_v61 = vshll.u32 %v3741_v12, 16  ;;  %s3765_s12 = sshll.u32 %s5265_s15, 4  ;;  %s3766_s12 = int_to_ptr.vmem [resolvable:$true] %s3765_s12 }
0x2193   :  { %s5236_s18 = scalar_lea.vmem %s3766_s12, 32  ;;  %p5241_p6 = scmp.lt.s32.totalorder %s3766_s12, %s3766_s12 }
0x2194   :  { %p5237_p5 = scmp.ne.s32.totalorder %s3766_s12, %s5236_s18  ;;  %p5242_p7 = scmp.lt.s32.totalorder %s5236_s18, %s5236_s18 }
0x2196   :  { %p5243_p8 = por %p5242_p7, %p5241_p6 }
0x2198   :  { %p5244_p9 = pnand %p5243_p8, %p5237_p5 }
0x2217   :  { %v3739_v14 = vpop.xlane.xlu0 %3738 }
0x2218   :  { %v3740_v16 = vcvt.f32.s32 %v3739_v14 }
0x221a   :  { %v3743_v44 = vadd.s32 %v3742_v61, %v3740_v16 }
0x221c   :  { %v3746_v17 = vsel %vm3744_vm1, %v3743_v44, %v3721_v52 }
0x221d   :  { %3748 = vst [vmem:[#allocation4] sm:$0x3] %v3746_v17 }
0x221e   :  { %5247 = shalt.err (!%p5244_p9)
}
0x221f   :  { %3768 = dma.vmem_to_hbm [thread:$0]  %s3766_s12, 32, %s6527_s25, [#allocation5]  }
0x2220   :  { %5256 = dma.done.wait [#allocation3], 32  }
0x2221   :  { %5257 = vsyncadd [#allocation3], 4294967264 }
0x2222   :  { %5258 = dma.done.wait [#allocation5], 32  }
0x2223   :  { %5259 = vsyncadd [#allocation5], 4294967264 }
0x2224   :  { %3775 = vsyncpa [#allocation3], 1 }
0x2225   :  { %3776 = vsyncpa [#allocation5], 1 }

</bundles_post_ra>
